<compile_context>
chip_gen: v7x
topology: tpu7x:2x2x1
jax: 0.10.0
libtpu: 0.0.40
codegen_flags: <defaults>
</compile_context>

<pallas_src>
import functools

import jax
import jax.numpy as jnp
from jax import lax
from jax.experimental import pallas as pl
from jax.experimental.pallas import tpu as pltpu


def _round_up(n, m):
    return ((n + m - 1) // m) * m


def lstm_chunk_kernel(x_ref, wih_ref, whh_ref, b_ref,     # inputs
                      out_ref, cN_ref,                    # outputs
                      h_sc, c_sc, pre_sc,                 # scratch
                      *, hidden_pad, chunk, unroll):
    """Grid step t (time axis has T//chunk + 1 steps):
      (a) project input chunk t into pre_sc half t % 2           (skipped on drain)
      (b) run the serial recurrence over chunk t-1 from half (t-1) % 2
          and write output chunk t-1                             (skipped on prologue)
    Issuing (a) and (b) in the same body lets the throughput-heavy projection
    matmul hide under the latency-bound h -> gates -> h chain.
    """
    t = pl.program_id(1)
    n_chunks = pl.num_programs(1) - 1          # number of real time chunks
    Hp = hidden_pad
    Tc = chunk
    Bt = x_ref.shape[1]
    I = x_ref.shape[2]
    rows = Tc * Bt

    def project():
        # One MXU matmul for the whole chunk (M = Tc*Bt) + fused bias.
        # No operand casts; f32 accumulation on the MXU.
        x_chunk = x_ref[...].reshape(rows, I)
        pre = jnp.dot(x_chunk, wih_ref[...], preferred_element_type=jnp.float32)
        pre = pre + b_ref[...]                          # (1, 4Hp) broadcasts
        base = pl.multiple_of((t % 2) * rows, rows)
        pre_sc[pl.ds(base, rows), :] = pre.astype(pre_sc.dtype)

    def recur():
        whh = whh_ref[...]                              # resident recurrent weight
        base = ((t - 1) % 2) * rows

        def step(s, carry):
            h, c = carry                                # f32 (Bt, Hp)
            row0 = pl.multiple_of(base + s * Bt, Bt)
            gates = pre_sc[pl.ds(row0, Bt), :].astype(jnp.float32)
            gates = gates + jnp.dot(h, whh, preferred_element_type=jnp.float32)
            # Lane-aligned gate slices (Hp is a multiple of 128).
            # sigmoid(z) = 0.5*tanh(0.5*z) + 0.5 -> one EUP push per gate.
            i_g = 0.5 * jnp.tanh(0.5 * gates[:, 0 * Hp:1 * Hp]) + 0.5
            f_g = 0.5 * jnp.tanh(0.5 * gates[:, 1 * Hp:2 * Hp]) + 0.5
            g_g = jnp.tanh(gates[:, 2 * Hp:3 * Hp])
            o_g = 0.5 * jnp.tanh(0.5 * gates[:, 3 * Hp:4 * Hp]) + 0.5
            c_new = f_g * c + i_g * g_g                 # elementwise stays f32
            h_new = o_g * jnp.tanh(c_new)
            out_ref[s] = h_new.astype(out_ref.dtype)    # lane-dense (Hp) store
            return h_new, c_new

        h, c = lax.fori_loop(0, Tc, step, (h_sc[...], c_sc[...]), unroll=unroll)
        h_sc[...] = h
        c_sc[...] = c
        return c

    @pl.when(t == 0)
    def _prologue():
        # hx=None path: zero initial state per batch tile; prime the pipeline.
        h_sc[...] = jnp.zeros_like(h_sc)
        c_sc[...] = jnp.zeros_like(c_sc)
        project()

    @pl.when(jnp.logical_and(t > 0, t < n_chunks))
    def _steady():
        project()
        recur()

    @pl.when(t == n_chunks)
    def _drain():
        c = recur()
        cN_ref[...] = c.astype(cN_ref.dtype)            # final cell state


def _pack_weights(weight_ih, weight_hh, bias_ih, bias_hh, H, Hp, compute_dtype):
    """Pre-transpose to W^T, pad each gate block to a 128-lane stride (Hp),
    fuse the two biases into one (1, 4*Hp) row.  Gate order i,f,g,o kept."""
    def gate_cols(w):                                   # w: (4H, D) -> (D, 4Hp)
        cols = []
        for k in range(4):
            g = jnp.transpose(w[k * H:(k + 1) * H, :])  # (D, H)
            if Hp != H:
                g = jnp.pad(g, ((0, 0), (0, Hp - H)))
            cols.append(g)
        return jnp.concatenate(cols, axis=1)

    wih_t = gate_cols(weight_ih)                        # (I,  4Hp)
    whh_t = gate_cols(weight_hh)                        # (H,  4Hp)
    if Hp != H:
        whh_t = jnp.pad(whh_t, ((0, Hp - H), (0, 0)))   # (Hp, 4Hp), zero rows

    b = bias_ih + bias_hh
    bcols = []
    for k in range(4):
        g = b[k * H:(k + 1) * H]
        if Hp != H:
            g = jnp.pad(g, (0, Hp - H))
        bcols.append(g)
    b_row = jnp.concatenate(bcols).reshape(1, 4 * Hp).astype(jnp.float32)

    if compute_dtype is not None:
        wih_t = wih_t.astype(compute_dtype)
        whh_t = whh_t.astype(compute_dtype)
    return wih_t, whh_t, b_row


def _vmem_estimate(Tc, Bt, I, Hp, x_bytes, w_bytes, pre_bytes):
    rows = Tc * Bt
    blocks = 2 * rows * I * x_bytes + 2 * rows * Hp * x_bytes       # x / out (double-buffered)
    weights = 2 * (I + Hp) * 4 * Hp * w_bytes + 2 * 4 * Hp * 4      # resident W_ih^T/W_hh^T/bias
    scratch = 2 * rows * 4 * Hp * pre_bytes + 2 * Bt * Hp * 4       # pre double-buffer + h/c
    cn = 2 * Bt * Hp * x_bytes
    return blocks + weights + scratch + cn


def _pick_chunk(T, Bt, I, Hp, x_bytes, w_bytes, pre_bytes, vmem_budget, max_chunk=128):
    """Largest divisor of T (<= max_chunk) whose VMEM footprint fits the budget.
    Bigger chunks amortize the ~0.35us per-grid-step overhead and feed the MXU
    a full M tile (target Tc*Bt >= 256 on v6e/v7x) when B is small."""
    best = 1
    for c in range(1, min(T, max_chunk) + 1):
        if T % c:
            continue
        if _vmem_estimate(c, Bt, I, Hp, x_bytes, w_bytes, pre_bytes) <= vmem_budget:
            best = c
    return best


def my_lstm_forward(x, weight_ih, weight_hh, bias_ih, bias_hh, *,
                    chunk=None,
                    num_batch_blocks=1,       # set 2 on v7x (2 TCs) when B % 16 == 0
                    compute_dtype=None,       # e.g. jnp.bfloat16: MXU-native operands
                    pre_dtype=jnp.float32,    # jnp.bfloat16 halves pre-activation scratch
                    unroll=8,                 # inner-loop unroll cap (vreg pressure)
                    vmem_budget_bytes=48 * 1024 * 1024):
    """x: (T, B, I); weight_ih: (4H, I); weight_hh: (4H, H); biases: (4H,).
    Returns (output (T, B, H), (h_n, c_n)) matching MyLSTM.forward(x) (hx=None)."""
    T, B, I = x.shape
    H = weight_hh.shape[1]
    Hp = _round_up(H, 128)                    # lane-aligned gate stride

    assert B % num_batch_blocks == 0
    Bt = B // num_batch_blocks
    assert num_batch_blocks == 1 or Bt % 8 == 0, \
        "batch tiles must be sublane-aligned (multiple of 8)"

    out_dtype = x.dtype
    x_c = x if compute_dtype is None else x.astype(compute_dtype)
    wih_t, whh_t, b_row = _pack_weights(weight_ih, weight_hh, bias_ih, bias_hh,
                                        H, Hp, compute_dtype)

    x_bytes = jnp.dtype(x_c.dtype).itemsize
    w_bytes = jnp.dtype(wih_t.dtype).itemsize
    pre_bytes = jnp.dtype(pre_dtype).itemsize

    Tc = (_pick_chunk(T, Bt, I, Hp, x_bytes, w_bytes, pre_bytes, vmem_budget_bytes)
          if chunk is None else int(chunk))
    assert T % Tc == 0, "chunk must divide seq_len"
    n_chunks = T // Tc
    rows = Tc * Bt

    est = _vmem_estimate(Tc, Bt, I, Hp, x_bytes, w_bytes, pre_bytes)
    vmem_limit = int(min(max(est * 1.3, 32 * 1024 * 1024), 100 * 1024 * 1024))

    kernel = functools.partial(lstm_chunk_kernel, hidden_pad=Hp, chunk=Tc,
                               unroll=min(Tc, int(unroll)))

    out_p, c_n_p = pl.pallas_call(
        kernel,
        out_shape=(
            jax.ShapeDtypeStruct((T, B, Hp), out_dtype),   # per-step hidden states (padded lanes)
            jax.ShapeDtypeStruct((B, Hp), out_dtype),      # final cell state (padded lanes)
        ),
        grid_spec=pltpu.PrefetchScalarGridSpec(
            num_scalar_prefetch=0,
            grid=(num_batch_blocks, n_chunks + 1),         # +1 drain step (pipelined projection)
            in_specs=[
                # x chunk t (clamped on the drain step — same block, no extra DMA)
                pl.BlockSpec((Tc, Bt, I),
                             lambda bb, t: (jnp.minimum(t, n_chunks - 1), bb, 0)),
                pl.BlockSpec((I, 4 * Hp), lambda bb, t: (0, 0)),    # W_ih^T (resident)
                pl.BlockSpec((Hp, 4 * Hp), lambda bb, t: (0, 0)),   # W_hh^T (resident)
                pl.BlockSpec((1, 4 * Hp), lambda bb, t: (0, 0)),    # fused bias
            ],
            out_specs=[
                # output chunk t-1 (written one grid step after its projection)
                pl.BlockSpec((Tc, Bt, Hp),
                             lambda bb, t: (jnp.maximum(t - 1, 0), bb, 0)),
                pl.BlockSpec((Bt, Hp), lambda bb, t: (bb, 0)),      # c_n tile (resident)
            ],
            scratch_shapes=[
                pltpu.VMEM((Bt, Hp), jnp.float32),                  # h state (persists over time)
                pltpu.VMEM((Bt, Hp), jnp.float32),                  # c state (persists over time)
                pltpu.VMEM((2 * rows, 4 * Hp), pre_dtype),          # double-buffered gate pre-acts
            ],
        ),
        compiler_params=pltpu.CompilerParams(
            # Batch tiles are independent (shardable across v7x's 2 TCs); the
            # time axis carries the recurrence and MUST stay "arbitrary".
            dimension_semantics=("parallel", "arbitrary"),
            vmem_limit_bytes=vmem_limit),
    )(x_c, wih_t, whh_t, b_row)

    out = out_p if Hp == H else out_p[..., :H]
    c_n = c_n_p if Hp == H else c_n_p[:, :H]
    h_n = out[-1]                              # last time step == final hidden state
    return out, (h_n, c_n)


def my_lstm_reference(x, weight_ih, weight_hh, bias_ih, bias_hh):
    """Pure-JAX reference matching the PyTorch loop semantics."""
    T, B, I = x.shape
    H = weight_hh.shape[1]
    W_ii, W_if, W_ig, W_io = jnp.split(weight_ih, 4, axis=0)
    W_hi, W_hf, W_hg, W_ho = jnp.split(weight_hh, 4, axis=0)
    b_ii, b_if, b_ig, b_io = jnp.split(bias_ih, 4)
    b_hi, b_hf, b_hg, b_ho = jnp.split(bias_hh, 4)

    def step(carry, x_t):
        h, c = carry
        i = jax.nn.sigmoid(x_t @ W_ii.T + b_ii + h @ W_hi.T + b_hi)
        f = jax.nn.sigmoid(x_t @ W_if.T + b_if + h @ W_hf.T + b_hf)
        g = jnp.tanh(x_t @ W_ig.T + b_ig + h @ W_hg.T + b_hg)
        o = jax.nn.sigmoid(x_t @ W_io.T + b_io + h @ W_ho.T + b_ho)
        c = f * c + i * g
        h = o * jnp.tanh(c)
        return (h, c), h

    h0 = jnp.zeros((B, H), dtype=x.dtype)
    c0 = jnp.zeros((B, H), dtype=x.dtype)
    (h, c), ys = jax.lax.scan(step, (h0, c0), x)
    return ys, (h, c)


if __name__ == "__main__":
    seq_len, batch, input_size, hidden = 8, 8, 16, 32

    key = jax.random.PRNGKey(0)
    k_x, k_wih, k_whh, k_bih, k_bhh = jax.random.split(key, 5)
    x = jax.random.normal(k_x, (seq_len, batch, input_size), dtype=jnp.float32)
    weight_ih = 0.1 * jax.random.normal(k_wih, (4 * hidden, input_size), dtype=jnp.float32)
    weight_hh = 0.1 * jax.random.normal(k_whh, (4 * hidden, hidden), dtype=jnp.float32)
    bias_ih = 0.1 * jax.random.normal(k_bih, (4 * hidden,), dtype=jnp.float32)
    bias_hh = 0.1 * jax.random.normal(k_bhh, (4 * hidden,), dtype=jnp.float32)

    out_ref, (h_ref, c_ref) = my_lstm_reference(x, weight_ih, weight_hh, bias_ih, bias_hh)

    # f32 operand path (default; strict accuracy).
    out, (h_n, c_n) = jax.jit(my_lstm_forward)(x, weight_ih, weight_hh, bias_ih, bias_hh)
    jax.block_until_ready(out)
    jax.block_until_ready(h_n)
    jax.block_until_ready(c_n)
    assert jnp.allclose(out, out_ref, atol=3e-5, rtol=3e-5)
    assert jnp.allclose(h_n, h_ref, atol=3e-5, rtol=3e-5)
    assert jnp.allclose(c_n, c_ref, atol=3e-5, rtol=3e-5)

    # bf16 MXU-operand path (recommended for production shapes; looser tolerance).
    out_bf, (h_bf, c_bf) = jax.jit(functools.partial(
        my_lstm_forward, compute_dtype=jnp.bfloat16))(
        x, weight_ih, weight_hh, bias_ih, bias_hh)
    jax.block_until_ready(out_bf)
    jax.block_until_ready(c_bf)
    assert jnp.allclose(out_bf, out_ref, atol=5e-2, rtol=5e-2)
    assert jnp.allclose(c_bf, c_ref, atol=5e-2, rtol=5e-2)

    print("KERNEL_OK")
</pallas_src>

<mosaic_0001>
module attributes {stable_mosaic.version = 11 : i64} {
  func.func @lstm_chunk_kernel(%arg0: i32, %arg1: i32, %arg2: memref<8x8x16xf32, #tpu.memory_space<vmem>>, %arg3: memref<16x512xf32, #tpu.memory_space<vmem>>, %arg4: memref<128x512xf32, #tpu.memory_space<vmem>>, %arg5: memref<1x512xf32, #tpu.memory_space<vmem>>, %arg6: memref<8x8x128xf32, #tpu.memory_space<vmem>>, %arg7: memref<8x128xf32, #tpu.memory_space<vmem>>, %arg8: memref<8x128xf32, #tpu.memory_space<vmem>>, %arg9: memref<8x128xf32, #tpu.memory_space<vmem>>, %arg10: memref<128x512xf32, #tpu.memory_space<vmem>>) attributes {dimension_semantics = [#tpu.dimension_semantics<parallel>, #tpu.dimension_semantics<arbitrary>], iteration_bounds = array<i64: 1, 2>, scalar_prefetch = 0 : i64, scratch_operands = 3 : i64, tpu.core_type = #tpu.core_type<tc>, window_params = [{transform_indices = @transform_0, window_bounds = array<i64: 8, 8, 16>}, {pipeline_mode = #tpu.pipeline_mode<synchronous>, transform_indices = @transform_1, window_bounds = array<i64: 16, 512>}, {pipeline_mode = #tpu.pipeline_mode<synchronous>, transform_indices = @transform_2, window_bounds = array<i64: 128, 512>}, {pipeline_mode = #tpu.pipeline_mode<synchronous>, transform_indices = @transform_3, window_bounds = array<i64: 1, 512>}, {transform_indices = @transform_4, window_bounds = array<i64: 8, 8, 128>}, {transform_indices = @transform_5, window_bounds = array<i64: 8, 128>}]} {
    %c0_i32 = arith.constant 0 : i32
    %0 = arith.cmpi eq, %arg1, %c0_i32 : i32
    %1 = arith.extui %0 : i1 to i32
    %c0_i32_0 = arith.constant 0 : i32
    %2 = arith.cmpi ne, %1, %c0_i32_0 : i32
    scf.if %2 {
      %cst = arith.constant 0.000000e+00 : f32
      %11 = vector.broadcast %cst : f32 to vector<8x128xf32>
      %c0 = arith.constant 0 : index
      %c0_5 = arith.constant 0 : index
      %12 = vector.load %arg8[%c0, %c0_5] : memref<8x128xf32, #tpu.memory_space<vmem>>, vector<8x128xf32>
      tpu.vector_store %arg8[%c0, %c0_5], %11 {strides = array<i32>} : memref<8x128xf32, #tpu.memory_space<vmem>>, vector<8x128xf32>,
      %cst_6 = arith.constant 0.000000e+00 : f32
      %13 = vector.broadcast %cst_6 : f32 to vector<8x128xf32>
      %c0_7 = arith.constant 0 : index
      %c0_8 = arith.constant 0 : index
      %14 = vector.load %arg9[%c0_7, %c0_8] : memref<8x128xf32, #tpu.memory_space<vmem>>, vector<8x128xf32>
      tpu.vector_store %arg9[%c0_7, %c0_8], %13 {strides = array<i32>} : memref<8x128xf32, #tpu.memory_space<vmem>>, vector<8x128xf32>,
      %c0_9 = arith.constant 0 : index
      %c0_10 = arith.constant 0 : index
      %c0_11 = arith.constant 0 : index
      %15 = vector.load %arg2[%c0_9, %c0_10, %c0_11] : memref<8x8x16xf32, #tpu.memory_space<vmem>>, vector<8x8x16xf32>
      %16 = vector.shape_cast %15 : vector<8x8x16xf32> to vector<64x16xf32>
      %c0_12 = arith.constant 0 : index
      %c0_13 = arith.constant 0 : index
      %17 = vector.load %arg3[%c0_12, %c0_13] : memref<16x512xf32, #tpu.memory_space<vmem>>, vector<16x512xf32>
      %cst_14 = arith.constant dense<0.000000e+00> : vector<64x512xf32>
      %18 = tpu.matmul %16, %17, %cst_14 {dimension_numbers = #tpu.dot_dimension_numbers<[1], [0], [0], [1], [0, 0, 1, 1], [], []>} : vector<64x16xf32>, vector<16x512xf32>, vector<64x512xf32> -> vector<64x512xf32>
      %c0_15 = arith.constant 0 : index
      %c0_16 = arith.constant 0 : index
      %19 = vector.load %arg5[%c0_15, %c0_16] : memref<1x512xf32, #tpu.memory_space<vmem>>, vector<1x512xf32>
      %20 = vector.broadcast %19 : vector<1x512xf32> to vector<64x512xf32>
      %21 = arith.addf %18, %20 : vector<64x512xf32>
      %c2_i32 = arith.constant 2 : i32
      %c0_i32_17 = arith.constant 0 : i32
      %22 = arith.cmpi eq, %c2_i32, %c0_i32_17 : i32
      %c1_i32_18 = arith.constant 1 : i32
      %23 = arith.select %22, %c1_i32_18, %c2_i32 : i32
      %24 = arith.remsi %arg1, %23 : i32
      %c0_i32_19 = arith.constant 0 : i32
      %25 = arith.cmpi ne, %24, %c0_i32_19 : i32
      %c0_i32_20 = arith.constant 0 : i32
      %26 = arith.cmpi slt, %24, %c0_i32_20 : i32
      %c0_i32_21 = arith.constant 0 : i32
      %27 = arith.cmpi slt, %23, %c0_i32_21 : i32
      %28 = arith.xori %26, %27 : i1
      %29 = arith.andi %28, %25 : i1
      %30 = arith.addi %24, %23 : i32
      %31 = arith.select %29, %30, %24 : i32
      %c64_i32 = arith.constant 64 : i32
      %32 = arith.muli %31, %c64_i32 : i32
      %33 = tpu.assume_multiple %32, 64 : i32
      %34 = arith.index_cast %33 : i32 to index
      %c0_22 = arith.constant 0 : index
      %35 = vector.load %arg10[%34, %c0_22] : memref<128x512xf32, #tpu.memory_space<vmem>>, vector<64x512xf32>
      tpu.vector_store %arg10[%34, %c0_22], %21 {strides = array<i32>} : memref<128x512xf32, #tpu.memory_space<vmem>>, vector<64x512xf32>,
    } else {
    }
    %c0_i32_1 = arith.constant 0 : i32
    %3 = arith.cmpi sgt, %arg1, %c0_i32_1 : i32
    %c1_i32 = arith.constant 1 : i32
    %4 = arith.cmpi slt, %arg1, %c1_i32 : i32
    %5 = arith.andi %3, %4 : i1
    %6 = arith.extui %5 : i1 to i32
    %c0_i32_2 = arith.constant 0 : i32
    %7 = arith.cmpi ne, %6, %c0_i32_2 : i32
    scf.if %7 {
      %c0 = arith.constant 0 : index
      %c0_5 = arith.constant 0 : index
      %c0_6 = arith.constant 0 : index
      %11 = vector.load %arg2[%c0, %c0_5, %c0_6] : memref<8x8x16xf32, #tpu.memory_space<vmem>>, vector<8x8x16xf32>
      %12 = vector.shape_cast %11 : vector<8x8x16xf32> to vector<64x16xf32>
      %c0_7 = arith.constant 0 : index
      %c0_8 = arith.constant 0 : index
      %13 = vector.load %arg3[%c0_7, %c0_8] : memref<16x512xf32, #tpu.memory_space<vmem>>, vector<16x512xf32>
      %cst = arith.constant dense<0.000000e+00> : vector<64x512xf32>
      %14 = tpu.matmul %12, %13, %cst {dimension_numbers = #tpu.dot_dimension_numbers<[1], [0], [0], [1], [0, 0, 1, 1], [], []>} : vector<64x16xf32>, vector<16x512xf32>, vector<64x512xf32> -> vector<64x512xf32>
      %c0_9 = arith.constant 0 : index
      %c0_10 = arith.constant 0 : index
      %15 = vector.load %arg5[%c0_9, %c0_10] : memref<1x512xf32, #tpu.memory_space<vmem>>, vector<1x512xf32>
      %16 = vector.broadcast %15 : vector<1x512xf32> to vector<64x512xf32>
      %17 = arith.addf %14, %16 : vector<64x512xf32>
      %c2_i32 = arith.constant 2 : i32
      %c0_i32_11 = arith.constant 0 : i32
      %18 = arith.cmpi eq, %c2_i32, %c0_i32_11 : i32
      %c1_i32_12 = arith.constant 1 : i32
      %19 = arith.select %18, %c1_i32_12, %c2_i32 : i32
      %20 = arith.remsi %arg1, %19 : i32
      %c0_i32_13 = arith.constant 0 : i32
      %21 = arith.cmpi ne, %20, %c0_i32_13 : i32
      %c0_i32_14 = arith.constant 0 : i32
      %22 = arith.cmpi slt, %20, %c0_i32_14 : i32
      %c0_i32_15 = arith.constant 0 : i32
      %23 = arith.cmpi slt, %19, %c0_i32_15 : i32
      %24 = arith.xori %22, %23 : i1
      %25 = arith.andi %24, %21 : i1
      %26 = arith.addi %20, %19 : i32
      %27 = arith.select %25, %26, %20 : i32
      %c64_i32 = arith.constant 64 : i32
      %28 = arith.muli %27, %c64_i32 : i32
      %29 = tpu.assume_multiple %28, 64 : i32
      %30 = arith.index_cast %29 : i32 to index
      %c0_16 = arith.constant 0 : index
      %31 = vector.load %arg10[%30, %c0_16] : memref<128x512xf32, #tpu.memory_space<vmem>>, vector<64x512xf32>
      tpu.vector_store %arg10[%30, %c0_16], %17 {strides = array<i32>} : memref<128x512xf32, #tpu.memory_space<vmem>>, vector<64x512xf32>,
      %c0_17 = arith.constant 0 : index
      %c0_18 = arith.constant 0 : index
      %32 = vector.load %arg4[%c0_17, %c0_18] : memref<128x512xf32, #tpu.memory_space<vmem>>, vector<128x512xf32>
      %c1_i32_19 = arith.constant 1 : i32
      %33 = arith.subi %arg1, %c1_i32_19 : i32
      %c2_i32_20 = arith.constant 2 : i32
      %c0_i32_21 = arith.constant 0 : i32
      %34 = arith.cmpi eq, %c2_i32_20, %c0_i32_21 : i32
      %c1_i32_22 = arith.constant 1 : i32
      %35 = arith.select %34, %c1_i32_22, %c2_i32_20 : i32
      %36 = arith.remsi %33, %35 : i32
      %c0_i32_23 = arith.constant 0 : i32
      %37 = arith.cmpi ne, %36, %c0_i32_23 : i32
      %c0_i32_24 = arith.constant 0 : i32
      %38 = arith.cmpi slt, %36, %c0_i32_24 : i32
      %c0_i32_25 = arith.constant 0 : i32
      %39 = arith.cmpi slt, %35, %c0_i32_25 : i32
      %40 = arith.xori %38, %39 : i1
      %41 = arith.andi %40, %37 : i1
      %42 = arith.addi %36, %35 : i32
      %43 = arith.select %41, %42, %36 : i32
      %c64_i32_26 = arith.constant 64 : i32
      %44 = arith.muli %43, %c64_i32_26 : i32
      %c0_27 = arith.constant 0 : index
      %c0_28 = arith.constant 0 : index
      %45 = vector.load %arg8[%c0_27, %c0_28] : memref<8x128xf32, #tpu.memory_space<vmem>>, vector<8x128xf32>
      %c0_29 = arith.constant 0 : index
      %c0_30 = arith.constant 0 : index
      %46 = vector.load %arg9[%c0_29, %c0_30] : memref<8x128xf32, #tpu.memory_space<vmem>>, vector<8x128xf32>
      %c0_i32_31 = arith.constant 0 : i32
      %c8_i32 = arith.constant 8 : i32
      %47 = arith.muli %c0_i32_31, %c8_i32 : i32
      %48 = arith.addi %44, %47 : i32
      %49 = tpu.assume_multiple %48, 8 : i32
      %50 = arith.index_cast %49 : i32 to index
      %c0_32 = arith.constant 0 : index
      %51 = vector.load %arg10[%50, %c0_32] : memref<128x512xf32, #tpu.memory_space<vmem>>, vector<8x512xf32>
      %cst_33 = arith.constant dense<0.000000e+00> : vector<8x512xf32>
      %52 = tpu.matmul %45, %32, %cst_33 {dimension_numbers = #tpu.dot_dimension_numbers<[1], [0], [0], [1], [0, 0, 1, 1], [], []>} : vector<8x128xf32>, vector<128x512xf32>, vector<8x512xf32> -> vector<8x512xf32>
      %53 = arith.addf %51, %52 : vector<8x512xf32>
      %54 = vector.extract_strided_slice %53 {offsets = [0, 0], sizes = [8, 128], strides = [1, 1]} : vector<8x512xf32> to vector<8x128xf32>
      %cst_34 = arith.constant 5.000000e-01 : f32
      %55 = vector.broadcast %cst_34 : f32 to vector<8x128xf32>
      %56 = arith.mulf %55, %54 : vector<8x128xf32>
      %57 = math.tanh %56 : vector<8x128xf32>
      %cst_35 = arith.constant 5.000000e-01 : f32
      %58 = vector.broadcast %cst_35 : f32 to vector<8x128xf32>
      %59 = arith.mulf %58, %57 : vector<8x128xf32>
      %cst_36 = arith.constant 5.000000e-01 : f32
      %60 = vector.broadcast %cst_36 : f32 to vector<8x128xf32>
      %61 = arith.addf %59, %60 : vector<8x128xf32>
      %62 = vector.extract_strided_slice %53 {offsets = [0, 128], sizes = [8, 128], strides = [1, 1]} : vector<8x512xf32> to vector<8x128xf32>
      %cst_37 = arith.constant 5.000000e-01 : f32
      %63 = vector.broadcast %cst_37 : f32 to vector<8x128xf32>
      %64 = arith.mulf %63, %62 : vector<8x128xf32>
      %65 = math.tanh %64 : vector<8x128xf32>
      %cst_38 = arith.constant 5.000000e-01 : f32
      %66 = vector.broadcast %cst_38 : f32 to vector<8x128xf32>
      %67 = arith.mulf %66, %65 : vector<8x128xf32>
      %cst_39 = arith.constant 5.000000e-01 : f32
      %68 = vector.broadcast %cst_39 : f32 to vector<8x128xf32>
      %69 = arith.addf %67, %68 : vector<8x128xf32>
      %70 = vector.extract_strided_slice %53 {offsets = [0, 256], sizes = [8, 128], strides = [1, 1]} : vector<8x512xf32> to vector<8x128xf32>
      %71 = math.tanh %70 : vector<8x128xf32>
      %72 = vector.extract_strided_slice %53 {offsets = [0, 384], sizes = [8, 128], strides = [1, 1]} : vector<8x512xf32> to vector<8x128xf32>
      %cst_40 = arith.constant 5.000000e-01 : f32
      %73 = vector.broadcast %cst_40 : f32 to vector<8x128xf32>
      %74 = arith.mulf %73, %72 : vector<8x128xf32>
      %75 = math.tanh %74 : vector<8x128xf32>
      %cst_41 = arith.constant 5.000000e-01 : f32
      %76 = vector.broadcast %cst_41 : f32 to vector<8x128xf32>
      %77 = arith.mulf %76, %75 : vector<8x128xf32>
      %cst_42 = arith.constant 5.000000e-01 : f32
      %78 = vector.broadcast %cst_42 : f32 to vector<8x128xf32>
      %79 = arith.addf %77, %78 : vector<8x128xf32>
      %80 = arith.mulf %69, %46 : vector<8x128xf32>
      %81 = arith.mulf %61, %71 : vector<8x128xf32>
      %82 = arith.addf %80, %81 : vector<8x128xf32>
      %83 = math.tanh %82 : vector<8x128xf32>
      %84 = arith.mulf %79, %83 : vector<8x128xf32>
      %85 = arith.index_cast %c0_i32_31 : i32 to index
      %c0_43 = arith.constant 0 : index
      %c0_44 = arith.constant 0 : index
      %86 = vector.load %arg6[%85, %c0_43, %c0_44] : memref<8x8x128xf32, #tpu.memory_space<vmem>>, vector<1x8x128xf32>
      %87 = vector.shape_cast %86 : vector<1x8x128xf32> to vector<8x128xf32>
      %88 = vector.shape_cast %84 : vector<8x128xf32> to vector<1x8x128xf32>
      tpu.vector_store %arg6[%85, %c0_43, %c0_44], %88 {strides = array<i32>} : memref<8x8x128xf32, #tpu.memory_space<vmem>>, vector<1x8x128xf32>,
      %c1_i32_45 = arith.constant 1 : i32
      %c8_i32_46 = arith.constant 8 : i32
      %89 = arith.muli %c1_i32_45, %c8_i32_46 : i32
      %90 = arith.addi %44, %89 : i32
      %91 = tpu.assume_multiple %90, 8 : i32
      %92 = arith.index_cast %91 : i32 to index
      %c0_47 = arith.constant 0 : index
      %93 = vector.load %arg10[%92, %c0_47] : memref<128x512xf32, #tpu.memory_space<vmem>>, vector<8x512xf32>
      %cst_48 = arith.constant dense<0.000000e+00> : vector<8x512xf32>
      %94 = tpu.matmul %84, %32, %cst_48 {dimension_numbers = #tpu.dot_dimension_numbers<[1], [0], [0], [1], [0, 0, 1, 1], [], []>} : vector<8x128xf32>, vector<128x512xf32>, vector<8x512xf32> -> vector<8x512xf32>
      %95 = arith.addf %93, %94 : vector<8x512xf32>
      %96 = vector.extract_strided_slice %95 {offsets = [0, 0], sizes = [8, 128], strides = [1, 1]} : vector<8x512xf32> to vector<8x128xf32>
      %cst_49 = arith.constant 5.000000e-01 : f32
      %97 = vector.broadcast %cst_49 : f32 to vector<8x128xf32>
      %98 = arith.mulf %97, %96 : vector<8x128xf32>
      %99 = math.tanh %98 : vector<8x128xf32>
      %cst_50 = arith.constant 5.000000e-01 : f32
      %100 = vector.broadcast %cst_50 : f32 to vector<8x128xf32>
      %101 = arith.mulf %100, %99 : vector<8x128xf32>
      %cst_51 = arith.constant 5.000000e-01 : f32
      %102 = vector.broadcast %cst_51 : f32 to vector<8x128xf32>
      %103 = arith.addf %101, %102 : vector<8x128xf32>
      %104 = vector.extract_strided_slice %95 {offsets = [0, 128], sizes = [8, 128], strides = [1, 1]} : vector<8x512xf32> to vector<8x128xf32>
      %cst_52 = arith.constant 5.000000e-01 : f32
      %105 = vector.broadcast %cst_52 : f32 to vector<8x128xf32>
      %106 = arith.mulf %105, %104 : vector<8x128xf32>
      %107 = math.tanh %106 : vector<8x128xf32>
      %cst_53 = arith.constant 5.000000e-01 : f32
      %108 = vector.broadcast %cst_53 : f32 to vector<8x128xf32>
      %109 = arith.mulf %108, %107 : vector<8x128xf32>
      %cst_54 = arith.constant 5.000000e-01 : f32
      %110 = vector.broadcast %cst_54 : f32 to vector<8x128xf32>
      %111 = arith.addf %109, %110 : vector<8x128xf32>
      %112 = vector.extract_strided_slice %95 {offsets = [0, 256], sizes = [8, 128], strides = [1, 1]} : vector<8x512xf32> to vector<8x128xf32>
      %113 = math.tanh %112 : vector<8x128xf32>
      %114 = vector.extract_strided_slice %95 {offsets = [0, 384], sizes = [8, 128], strides = [1, 1]} : vector<8x512xf32> to vector<8x128xf32>
      %cst_55 = arith.constant 5.000000e-01 : f32
      %115 = vector.broadcast %cst_55 : f32 to vector<8x128xf32>
      %116 = arith.mulf %115, %114 : vector<8x128xf32>
      %117 = math.tanh %116 : vector<8x128xf32>
      %cst_56 = arith.constant 5.000000e-01 : f32
      %118 = vector.broadcast %cst_56 : f32 to vector<8x128xf32>
      %119 = arith.mulf %118, %117 : vector<8x128xf32>
      %cst_57 = arith.constant 5.000000e-01 : f32
      %120 = vector.broadcast %cst_57 : f32 to vector<8x128xf32>
      %121 = arith.addf %119, %120 : vector<8x128xf32>
      %122 = arith.mulf %111, %82 : vector<8x128xf32>
      %123 = arith.mulf %103, %113 : vector<8x128xf32>
      %124 = arith.addf %122, %123 : vector<8x128xf32>
      %125 = math.tanh %124 : vector<8x128xf32>
      %126 = arith.mulf %121, %125 : vector<8x128xf32>
      %127 = arith.index_cast %c1_i32_45 : i32 to index
      %c0_58 = arith.constant 0 : index
      %c0_59 = arith.constant 0 : index
      %128 = vector.load %arg6[%127, %c0_58, %c0_59] : memref<8x8x128xf32, #tpu.memory_space<vmem>>, vector<1x8x128xf32>
      %129 = vector.shape_cast %128 : vector<1x8x128xf32> to vector<8x128xf32>
      %130 = vector.shape_cast %126 : vector<8x128xf32> to vector<1x8x128xf32>
      tpu.vector_store %arg6[%127, %c0_58, %c0_59], %130 {strides = array<i32>} : memref<8x8x128xf32, #tpu.memory_space<vmem>>, vector<1x8x128xf32>,
      %c2_i32_60 = arith.constant 2 : i32
      %c8_i32_61 = arith.constant 8 : i32
      %131 = arith.muli %c2_i32_60, %c8_i32_61 : i32
      %132 = arith.addi %44, %131 : i32
      %133 = tpu.assume_multiple %132, 8 : i32
      %134 = arith.index_cast %133 : i32 to index
      %c0_62 = arith.constant 0 : index
      %135 = vector.load %arg10[%134, %c0_62] : memref<128x512xf32, #tpu.memory_space<vmem>>, vector<8x512xf32>
      %cst_63 = arith.constant dense<0.000000e+00> : vector<8x512xf32>
      %136 = tpu.matmul %126, %32, %cst_63 {dimension_numbers = #tpu.dot_dimension_numbers<[1], [0], [0], [1], [0, 0, 1, 1], [], []>} : vector<8x128xf32>, vector<128x512xf32>, vector<8x512xf32> -> vector<8x512xf32>
      %137 = arith.addf %135, %136 : vector<8x512xf32>
      %138 = vector.extract_strided_slice %137 {offsets = [0, 0], sizes = [8, 128], strides = [1, 1]} : vector<8x512xf32> to vector<8x128xf32>
      %cst_64 = arith.constant 5.000000e-01 : f32
      %139 = vector.broadcast %cst_64 : f32 to vector<8x128xf32>
      %140 = arith.mulf %139, %138 : vector<8x128xf32>
      %141 = math.tanh %140 : vector<8x128xf32>
      %cst_65 = arith.constant 5.000000e-01 : f32
      %142 = vector.broadcast %cst_65 : f32 to vector<8x128xf32>
      %143 = arith.mulf %142, %141 : vector<8x128xf32>
      %cst_66 = arith.constant 5.000000e-01 : f32
      %144 = vector.broadcast %cst_66 : f32 to vector<8x128xf32>
      %145 = arith.addf %143, %144 : vector<8x128xf32>
      %146 = vector.extract_strided_slice %137 {offsets = [0, 128], sizes = [8, 128], strides = [1, 1]} : vector<8x512xf32> to vector<8x128xf32>
      %cst_67 = arith.constant 5.000000e-01 : f32
      %147 = vector.broadcast %cst_67 : f32 to vector<8x128xf32>
      %148 = arith.mulf %147, %146 : vector<8x128xf32>
      %149 = math.tanh %148 : vector<8x128xf32>
      %cst_68 = arith.constant 5.000000e-01 : f32
      %150 = vector.broadcast %cst_68 : f32 to vector<8x128xf32>
      %151 = arith.mulf %150, %149 : vector<8x128xf32>
      %cst_69 = arith.constant 5.000000e-01 : f32
      %152 = vector.broadcast %cst_69 : f32 to vector<8x128xf32>
      %153 = arith.addf %151, %152 : vector<8x128xf32>
      %154 = vector.extract_strided_slice %137 {offsets = [0, 256], sizes = [8, 128], strides = [1, 1]} : vector<8x512xf32> to vector<8x128xf32>
      %155 = math.tanh %154 : vector<8x128xf32>
      %156 = vector.extract_strided_slice %137 {offsets = [0, 384], sizes = [8, 128], strides = [1, 1]} : vector<8x512xf32> to vector<8x128xf32>
      %cst_70 = arith.constant 5.000000e-01 : f32
      %157 = vector.broadcast %cst_70 : f32 to vector<8x128xf32>
      %158 = arith.mulf %157, %156 : vector<8x128xf32>
      %159 = math.tanh %158 : vector<8x128xf32>
      %cst_71 = arith.constant 5.000000e-01 : f32
      %160 = vector.broadcast %cst_71 : f32 to vector<8x128xf32>
      %161 = arith.mulf %160, %159 : vector<8x128xf32>
      %cst_72 = arith.constant 5.000000e-01 : f32
      %162 = vector.broadcast %cst_72 : f32 to vector<8x128xf32>
      %163 = arith.addf %161, %162 : vector<8x128xf32>
      %164 = arith.mulf %153, %124 : vector<8x128xf32>
      %165 = arith.mulf %145, %155 : vector<8x128xf32>
      %166 = arith.addf %164, %165 : vector<8x128xf32>
      %167 = math.tanh %166 : vector<8x128xf32>
      %168 = arith.mulf %163, %167 : vector<8x128xf32>
      %169 = arith.index_cast %c2_i32_60 : i32 to index
      %c0_73 = arith.constant 0 : index
      %c0_74 = arith.constant 0 : index
      %170 = vector.load %arg6[%169, %c0_73, %c0_74] : memref<8x8x128xf32, #tpu.memory_space<vmem>>, vector<1x8x128xf32>
      %171 = vector.shape_cast %170 : vector<1x8x128xf32> to vector<8x128xf32>
      %172 = vector.shape_cast %168 : vector<8x128xf32> to vector<1x8x128xf32>
      tpu.vector_store %arg6[%169, %c0_73, %c0_74], %172 {strides = array<i32>} : memref<8x8x128xf32, #tpu.memory_space<vmem>>, vector<1x8x128xf32>,
      %c3_i32 = arith.constant 3 : i32
      %c8_i32_75 = arith.constant 8 : i32
      %173 = arith.muli %c3_i32, %c8_i32_75 : i32
      %174 = arith.addi %44, %173 : i32
      %175 = tpu.assume_multiple %174, 8 : i32
      %176 = arith.index_cast %175 : i32 to index
      %c0_76 = arith.constant 0 : index
      %177 = vector.load %arg10[%176, %c0_76] : memref<128x512xf32, #tpu.memory_space<vmem>>, vector<8x512xf32>
      %cst_77 = arith.constant dense<0.000000e+00> : vector<8x512xf32>
      %178 = tpu.matmul %168, %32, %cst_77 {dimension_numbers = #tpu.dot_dimension_numbers<[1], [0], [0], [1], [0, 0, 1, 1], [], []>} : vector<8x128xf32>, vector<128x512xf32>, vector<8x512xf32> -> vector<8x512xf32>
      %179 = arith.addf %177, %178 : vector<8x512xf32>
      %180 = vector.extract_strided_slice %179 {offsets = [0, 0], sizes = [8, 128], strides = [1, 1]} : vector<8x512xf32> to vector<8x128xf32>
      %cst_78 = arith.constant 5.000000e-01 : f32
      %181 = vector.broadcast %cst_78 : f32 to vector<8x128xf32>
      %182 = arith.mulf %181, %180 : vector<8x128xf32>
      %183 = math.tanh %182 : vector<8x128xf32>
      %cst_79 = arith.constant 5.000000e-01 : f32
      %184 = vector.broadcast %cst_79 : f32 to vector<8x128xf32>
      %185 = arith.mulf %184, %183 : vector<8x128xf32>
      %cst_80 = arith.constant 5.000000e-01 : f32
      %186 = vector.broadcast %cst_80 : f32 to vector<8x128xf32>
      %187 = arith.addf %185, %186 : vector<8x128xf32>
      %188 = vector.extract_strided_slice %179 {offsets = [0, 128], sizes = [8, 128], strides = [1, 1]} : vector<8x512xf32> to vector<8x128xf32>
      %cst_81 = arith.constant 5.000000e-01 : f32
      %189 = vector.broadcast %cst_81 : f32 to vector<8x128xf32>
      %190 = arith.mulf %189, %188 : vector<8x128xf32>
      %191 = math.tanh %190 : vector<8x128xf32>
      %cst_82 = arith.constant 5.000000e-01 : f32
      %192 = vector.broadcast %cst_82 : f32 to vector<8x128xf32>
      %193 = arith.mulf %192, %191 : vector<8x128xf32>
      %cst_83 = arith.constant 5.000000e-01 : f32
      %194 = vector.broadcast %cst_83 : f32 to vector<8x128xf32>
      %195 = arith.addf %193, %194 : vector<8x128xf32>
      %196 = vector.extract_strided_slice %179 {offsets = [0, 256], sizes = [8, 128], strides = [1, 1]} : vector<8x512xf32> to vector<8x128xf32>
      %197 = math.tanh %196 : vector<8x128xf32>
      %198 = vector.extract_strided_slice %179 {offsets = [0, 384], sizes = [8, 128], strides = [1, 1]} : vector<8x512xf32> to vector<8x128xf32>
      %cst_84 = arith.constant 5.000000e-01 : f32
      %199 = vector.broadcast %cst_84 : f32 to vector<8x128xf32>
      %200 = arith.mulf %199, %198 : vector<8x128xf32>
      %201 = math.tanh %200 : vector<8x128xf32>
      %cst_85 = arith.constant 5.000000e-01 : f32
      %202 = vector.broadcast %cst_85 : f32 to vector<8x128xf32>
      %203 = arith.mulf %202, %201 : vector<8x128xf32>
      %cst_86 = arith.constant 5.000000e-01 : f32
      %204 = vector.broadcast %cst_86 : f32 to vector<8x128xf32>
      %205 = arith.addf %203, %204 : vector<8x128xf32>
      %206 = arith.mulf %195, %166 : vector<8x128xf32>
      %207 = arith.mulf %187, %197 : vector<8x128xf32>
      %208 = arith.addf %206, %207 : vector<8x128xf32>
      %209 = math.tanh %208 : vector<8x128xf32>
      %210 = arith.mulf %205, %209 : vector<8x128xf32>
      %211 = arith.index_cast %c3_i32 : i32 to index
      %c0_87 = arith.constant 0 : index
      %c0_88 = arith.constant 0 : index
      %212 = vector.load %arg6[%211, %c0_87, %c0_88] : memref<8x8x128xf32, #tpu.memory_space<vmem>>, vector<1x8x128xf32>
      %213 = vector.shape_cast %212 : vector<1x8x128xf32> to vector<8x128xf32>
      %214 = vector.shape_cast %210 : vector<8x128xf32> to vector<1x8x128xf32>
      tpu.vector_store %arg6[%211, %c0_87, %c0_88], %214 {strides = array<i32>} : memref<8x8x128xf32, #tpu.memory_space<vmem>>, vector<1x8x128xf32>,
      %c4_i32 = arith.constant 4 : i32
      %c8_i32_89 = arith.constant 8 : i32
      %215 = arith.muli %c4_i32, %c8_i32_89 : i32
      %216 = arith.addi %44, %215 : i32
      %217 = tpu.assume_multiple %216, 8 : i32
      %218 = arith.index_cast %217 : i32 to index
      %c0_90 = arith.constant 0 : index
      %219 = vector.load %arg10[%218, %c0_90] : memref<128x512xf32, #tpu.memory_space<vmem>>, vector<8x512xf32>
      %cst_91 = arith.constant dense<0.000000e+00> : vector<8x512xf32>
      %220 = tpu.matmul %210, %32, %cst_91 {dimension_numbers = #tpu.dot_dimension_numbers<[1], [0], [0], [1], [0, 0, 1, 1], [], []>} : vector<8x128xf32>, vector<128x512xf32>, vector<8x512xf32> -> vector<8x512xf32>
      %221 = arith.addf %219, %220 : vector<8x512xf32>
      %222 = vector.extract_strided_slice %221 {offsets = [0, 0], sizes = [8, 128], strides = [1, 1]} : vector<8x512xf32> to vector<8x128xf32>
      %cst_92 = arith.constant 5.000000e-01 : f32
      %223 = vector.broadcast %cst_92 : f32 to vector<8x128xf32>
      %224 = arith.mulf %223, %222 : vector<8x128xf32>
      %225 = math.tanh %224 : vector<8x128xf32>
      %cst_93 = arith.constant 5.000000e-01 : f32
      %226 = vector.broadcast %cst_93 : f32 to vector<8x128xf32>
      %227 = arith.mulf %226, %225 : vector<8x128xf32>
      %cst_94 = arith.constant 5.000000e-01 : f32
      %228 = vector.broadcast %cst_94 : f32 to vector<8x128xf32>
      %229 = arith.addf %227, %228 : vector<8x128xf32>
      %230 = vector.extract_strided_slice %221 {offsets = [0, 128], sizes = [8, 128], strides = [1, 1]} : vector<8x512xf32> to vector<8x128xf32>
      %cst_95 = arith.constant 5.000000e-01 : f32
      %231 = vector.broadcast %cst_95 : f32 to vector<8x128xf32>
      %232 = arith.mulf %231, %230 : vector<8x128xf32>
      %233 = math.tanh %232 : vector<8x128xf32>
      %cst_96 = arith.constant 5.000000e-01 : f32
      %234 = vector.broadcast %cst_96 : f32 to vector<8x128xf32>
      %235 = arith.mulf %234, %233 : vector<8x128xf32>
      %cst_97 = arith.constant 5.000000e-01 : f32
      %236 = vector.broadcast %cst_97 : f32 to vector<8x128xf32>
      %237 = arith.addf %235, %236 : vector<8x128xf32>
      %238 = vector.extract_strided_slice %221 {offsets = [0, 256], sizes = [8, 128], strides = [1, 1]} : vector<8x512xf32> to vector<8x128xf32>
      %239 = math.tanh %238 : vector<8x128xf32>
      %240 = vector.extract_strided_slice %221 {offsets = [0, 384], sizes = [8, 128], strides = [1, 1]} : vector<8x512xf32> to vector<8x128xf32>
      %cst_98 = arith.constant 5.000000e-01 : f32
      %241 = vector.broadcast %cst_98 : f32 to vector<8x128xf32>
      %242 = arith.mulf %241, %240 : vector<8x128xf32>
      %243 = math.tanh %242 : vector<8x128xf32>
      %cst_99 = arith.constant 5.000000e-01 : f32
      %244 = vector.broadcast %cst_99 : f32 to vector<8x128xf32>
      %245 = arith.mulf %244, %243 : vector<8x128xf32>
      %cst_100 = arith.constant 5.000000e-01 : f32
      %246 = vector.broadcast %cst_100 : f32 to vector<8x128xf32>
      %247 = arith.addf %245, %246 : vector<8x128xf32>
      %248 = arith.mulf %237, %208 : vector<8x128xf32>
      %249 = arith.mulf %229, %239 : vector<8x128xf32>
      %250 = arith.addf %248, %249 : vector<8x128xf32>
      %251 = math.tanh %250 : vector<8x128xf32>
      %252 = arith.mulf %247, %251 : vector<8x128xf32>
      %253 = arith.index_cast %c4_i32 : i32 to index
      %c0_101 = arith.constant 0 : index
      %c0_102 = arith.constant 0 : index
      %254 = vector.load %arg6[%253, %c0_101, %c0_102] : memref<8x8x128xf32, #tpu.memory_space<vmem>>, vector<1x8x128xf32>
      %255 = vector.shape_cast %254 : vector<1x8x128xf32> to vector<8x128xf32>
      %256 = vector.shape_cast %252 : vector<8x128xf32> to vector<1x8x128xf32>
      tpu.vector_store %arg6[%253, %c0_101, %c0_102], %256 {strides = array<i32>} : memref<8x8x128xf32, #tpu.memory_space<vmem>>, vector<1x8x128xf32>,
      %c5_i32 = arith.constant 5 : i32
      %c8_i32_103 = arith.constant 8 : i32
      %257 = arith.muli %c5_i32, %c8_i32_103 : i32
      %258 = arith.addi %44, %257 : i32
      %259 = tpu.assume_multiple %258, 8 : i32
      %260 = arith.index_cast %259 : i32 to index
      %c0_104 = arith.constant 0 : index
      %261 = vector.load %arg10[%260, %c0_104] : memref<128x512xf32, #tpu.memory_space<vmem>>, vector<8x512xf32>
      %cst_105 = arith.constant dense<0.000000e+00> : vector<8x512xf32>
      %262 = tpu.matmul %252, %32, %cst_105 {dimension_numbers = #tpu.dot_dimension_numbers<[1], [0], [0], [1], [0, 0, 1, 1], [], []>} : vector<8x128xf32>, vector<128x512xf32>, vector<8x512xf32> -> vector<8x512xf32>
      %263 = arith.addf %261, %262 : vector<8x512xf32>
      %264 = vector.extract_strided_slice %263 {offsets = [0, 0], sizes = [8, 128], strides = [1, 1]} : vector<8x512xf32> to vector<8x128xf32>
      %cst_106 = arith.constant 5.000000e-01 : f32
      %265 = vector.broadcast %cst_106 : f32 to vector<8x128xf32>
      %266 = arith.mulf %265, %264 : vector<8x128xf32>
      %267 = math.tanh %266 : vector<8x128xf32>
      %cst_107 = arith.constant 5.000000e-01 : f32
      %268 = vector.broadcast %cst_107 : f32 to vector<8x128xf32>
      %269 = arith.mulf %268, %267 : vector<8x128xf32>
      %cst_108 = arith.constant 5.000000e-01 : f32
      %270 = vector.broadcast %cst_108 : f32 to vector<8x128xf32>
      %271 = arith.addf %269, %270 : vector<8x128xf32>
      %272 = vector.extract_strided_slice %263 {offsets = [0, 128], sizes = [8, 128], strides = [1, 1]} : vector<8x512xf32> to vector<8x128xf32>
      %cst_109 = arith.constant 5.000000e-01 : f32
      %273 = vector.broadcast %cst_109 : f32 to vector<8x128xf32>
      %274 = arith.mulf %273, %272 : vector<8x128xf32>
      %275 = math.tanh %274 : vector<8x128xf32>
      %cst_110 = arith.constant 5.000000e-01 : f32
      %276 = vector.broadcast %cst_110 : f32 to vector<8x128xf32>
      %277 = arith.mulf %276, %275 : vector<8x128xf32>
      %cst_111 = arith.constant 5.000000e-01 : f32
      %278 = vector.broadcast %cst_111 : f32 to vector<8x128xf32>
      %279 = arith.addf %277, %278 : vector<8x128xf32>
      %280 = vector.extract_strided_slice %263 {offsets = [0, 256], sizes = [8, 128], strides = [1, 1]} : vector<8x512xf32> to vector<8x128xf32>
      %281 = math.tanh %280 : vector<8x128xf32>
      %282 = vector.extract_strided_slice %263 {offsets = [0, 384], sizes = [8, 128], strides = [1, 1]} : vector<8x512xf32> to vector<8x128xf32>
      %cst_112 = arith.constant 5.000000e-01 : f32
      %283 = vector.broadcast %cst_112 : f32 to vector<8x128xf32>
      %284 = arith.mulf %283, %282 : vector<8x128xf32>
      %285 = math.tanh %284 : vector<8x128xf32>
      %cst_113 = arith.constant 5.000000e-01 : f32
      %286 = vector.broadcast %cst_113 : f32 to vector<8x128xf32>
      %287 = arith.mulf %286, %285 : vector<8x128xf32>
      %cst_114 = arith.constant 5.000000e-01 : f32
      %288 = vector.broadcast %cst_114 : f32 to vector<8x128xf32>
      %289 = arith.addf %287, %288 : vector<8x128xf32>
      %290 = arith.mulf %279, %250 : vector<8x128xf32>
      %291 = arith.mulf %271, %281 : vector<8x128xf32>
      %292 = arith.addf %290, %291 : vector<8x128xf32>
      %293 = math.tanh %292 : vector<8x128xf32>
      %294 = arith.mulf %289, %293 : vector<8x128xf32>
      %295 = arith.index_cast %c5_i32 : i32 to index
      %c0_115 = arith.constant 0 : index
      %c0_116 = arith.constant 0 : index
      %296 = vector.load %arg6[%295, %c0_115, %c0_116] : memref<8x8x128xf32, #tpu.memory_space<vmem>>, vector<1x8x128xf32>
      %297 = vector.shape_cast %296 : vector<1x8x128xf32> to vector<8x128xf32>
      %298 = vector.shape_cast %294 : vector<8x128xf32> to vector<1x8x128xf32>
      tpu.vector_store %arg6[%295, %c0_115, %c0_116], %298 {strides = array<i32>} : memref<8x8x128xf32, #tpu.memory_space<vmem>>, vector<1x8x128xf32>,
      %c6_i32 = arith.constant 6 : i32
      %c8_i32_117 = arith.constant 8 : i32
      %299 = arith.muli %c6_i32, %c8_i32_117 : i32
      %300 = arith.addi %44, %299 : i32
      %301 = tpu.assume_multiple %300, 8 : i32
      %302 = arith.index_cast %301 : i32 to index
      %c0_118 = arith.constant 0 : index
      %303 = vector.load %arg10[%302, %c0_118] : memref<128x512xf32, #tpu.memory_space<vmem>>, vector<8x512xf32>
      %cst_119 = arith.constant dense<0.000000e+00> : vector<8x512xf32>
      %304 = tpu.matmul %294, %32, %cst_119 {dimension_numbers = #tpu.dot_dimension_numbers<[1], [0], [0], [1], [0, 0, 1, 1], [], []>} : vector<8x128xf32>, vector<128x512xf32>, vector<8x512xf32> -> vector<8x512xf32>
      %305 = arith.addf %303, %304 : vector<8x512xf32>
      %306 = vector.extract_strided_slice %305 {offsets = [0, 0], sizes = [8, 128], strides = [1, 1]} : vector<8x512xf32> to vector<8x128xf32>
      %cst_120 = arith.constant 5.000000e-01 : f32
      %307 = vector.broadcast %cst_120 : f32 to vector<8x128xf32>
      %308 = arith.mulf %307, %306 : vector<8x128xf32>
      %309 = math.tanh %308 : vector<8x128xf32>
      %cst_121 = arith.constant 5.000000e-01 : f32
      %310 = vector.broadcast %cst_121 : f32 to vector<8x128xf32>
      %311 = arith.mulf %310, %309 : vector<8x128xf32>
      %cst_122 = arith.constant 5.000000e-01 : f32
      %312 = vector.broadcast %cst_122 : f32 to vector<8x128xf32>
      %313 = arith.addf %311, %312 : vector<8x128xf32>
      %314 = vector.extract_strided_slice %305 {offsets = [0, 128], sizes = [8, 128], strides = [1, 1]} : vector<8x512xf32> to vector<8x128xf32>
      %cst_123 = arith.constant 5.000000e-01 : f32
      %315 = vector.broadcast %cst_123 : f32 to vector<8x128xf32>
      %316 = arith.mulf %315, %314 : vector<8x128xf32>
      %317 = math.tanh %316 : vector<8x128xf32>
      %cst_124 = arith.constant 5.000000e-01 : f32
      %318 = vector.broadcast %cst_124 : f32 to vector<8x128xf32>
      %319 = arith.mulf %318, %317 : vector<8x128xf32>
      %cst_125 = arith.constant 5.000000e-01 : f32
      %320 = vector.broadcast %cst_125 : f32 to vector<8x128xf32>
      %321 = arith.addf %319, %320 : vector<8x128xf32>
      %322 = vector.extract_strided_slice %305 {offsets = [0, 256], sizes = [8, 128], strides = [1, 1]} : vector<8x512xf32> to vector<8x128xf32>
      %323 = math.tanh %322 : vector<8x128xf32>
      %324 = vector.extract_strided_slice %305 {offsets = [0, 384], sizes = [8, 128], strides = [1, 1]} : vector<8x512xf32> to vector<8x128xf32>
      %cst_126 = arith.constant 5.000000e-01 : f32
      %325 = vector.broadcast %cst_126 : f32 to vector<8x128xf32>
      %326 = arith.mulf %325, %324 : vector<8x128xf32>
      %327 = math.tanh %326 : vector<8x128xf32>
      %cst_127 = arith.constant 5.000000e-01 : f32
      %328 = vector.broadcast %cst_127 : f32 to vector<8x128xf32>
      %329 = arith.mulf %328, %327 : vector<8x128xf32>
      %cst_128 = arith.constant 5.000000e-01 : f32
      %330 = vector.broadcast %cst_128 : f32 to vector<8x128xf32>
      %331 = arith.addf %329, %330 : vector<8x128xf32>
      %332 = arith.mulf %321, %292 : vector<8x128xf32>
      %333 = arith.mulf %313, %323 : vector<8x128xf32>
      %334 = arith.addf %332, %333 : vector<8x128xf32>
      %335 = math.tanh %334 : vector<8x128xf32>
      %336 = arith.mulf %331, %335 : vector<8x128xf32>
      %337 = arith.index_cast %c6_i32 : i32 to index
      %c0_129 = arith.constant 0 : index
      %c0_130 = arith.constant 0 : index
      %338 = vector.load %arg6[%337, %c0_129, %c0_130] : memref<8x8x128xf32, #tpu.memory_space<vmem>>, vector<1x8x128xf32>
      %339 = vector.shape_cast %338 : vector<1x8x128xf32> to vector<8x128xf32>
      %340 = vector.shape_cast %336 : vector<8x128xf32> to vector<1x8x128xf32>
      tpu.vector_store %arg6[%337, %c0_129, %c0_130], %340 {strides = array<i32>} : memref<8x8x128xf32, #tpu.memory_space<vmem>>, vector<1x8x128xf32>,
      %c7_i32 = arith.constant 7 : i32
      %c8_i32_131 = arith.constant 8 : i32
      %341 = arith.muli %c7_i32, %c8_i32_131 : i32
      %342 = arith.addi %44, %341 : i32
      %343 = tpu.assume_multiple %342, 8 : i32
      %344 = arith.index_cast %343 : i32 to index
      %c0_132 = arith.constant 0 : index
      %345 = vector.load %arg10[%344, %c0_132] : memref<128x512xf32, #tpu.memory_space<vmem>>, vector<8x512xf32>
      %cst_133 = arith.constant dense<0.000000e+00> : vector<8x512xf32>
      %346 = tpu.matmul %336, %32, %cst_133 {dimension_numbers = #tpu.dot_dimension_numbers<[1], [0], [0], [1], [0, 0, 1, 1], [], []>} : vector<8x128xf32>, vector<128x512xf32>, vector<8x512xf32> -> vector<8x512xf32>
      %347 = arith.addf %345, %346 : vector<8x512xf32>
      %348 = vector.extract_strided_slice %347 {offsets = [0, 0], sizes = [8, 128], strides = [1, 1]} : vector<8x512xf32> to vector<8x128xf32>
      %cst_134 = arith.constant 5.000000e-01 : f32
      %349 = vector.broadcast %cst_134 : f32 to vector<8x128xf32>
      %350 = arith.mulf %349, %348 : vector<8x128xf32>
      %351 = math.tanh %350 : vector<8x128xf32>
      %cst_135 = arith.constant 5.000000e-01 : f32
      %352 = vector.broadcast %cst_135 : f32 to vector<8x128xf32>
      %353 = arith.mulf %352, %351 : vector<8x128xf32>
      %cst_136 = arith.constant 5.000000e-01 : f32
      %354 = vector.broadcast %cst_136 : f32 to vector<8x128xf32>
      %355 = arith.addf %353, %354 : vector<8x128xf32>
      %356 = vector.extract_strided_slice %347 {offsets = [0, 128], sizes = [8, 128], strides = [1, 1]} : vector<8x512xf32> to vector<8x128xf32>
      %cst_137 = arith.constant 5.000000e-01 : f32
      %357 = vector.broadcast %cst_137 : f32 to vector<8x128xf32>
      %358 = arith.mulf %357, %356 : vector<8x128xf32>
      %359 = math.tanh %358 : vector<8x128xf32>
      %cst_138 = arith.constant 5.000000e-01 : f32
      %360 = vector.broadcast %cst_138 : f32 to vector<8x128xf32>
      %361 = arith.mulf %360, %359 : vector<8x128xf32>
      %cst_139 = arith.constant 5.000000e-01 : f32
      %362 = vector.broadcast %cst_139 : f32 to vector<8x128xf32>
      %363 = arith.addf %361, %362 : vector<8x128xf32>
      %364 = vector.extract_strided_slice %347 {offsets = [0, 256], sizes = [8, 128], strides = [1, 1]} : vector<8x512xf32> to vector<8x128xf32>
      %365 = math.tanh %364 : vector<8x128xf32>
      %366 = vector.extract_strided_slice %347 {offsets = [0, 384], sizes = [8, 128], strides = [1, 1]} : vector<8x512xf32> to vector<8x128xf32>
      %cst_140 = arith.constant 5.000000e-01 : f32
      %367 = vector.broadcast %cst_140 : f32 to vector<8x128xf32>
      %368 = arith.mulf %367, %366 : vector<8x128xf32>
      %369 = math.tanh %368 : vector<8x128xf32>
      %cst_141 = arith.constant 5.000000e-01 : f32
      %370 = vector.broadcast %cst_141 : f32 to vector<8x128xf32>
      %371 = arith.mulf %370, %369 : vector<8x128xf32>
      %cst_142 = arith.constant 5.000000e-01 : f32
      %372 = vector.broadcast %cst_142 : f32 to vector<8x128xf32>
      %373 = arith.addf %371, %372 : vector<8x128xf32>
      %374 = arith.mulf %363, %334 : vector<8x128xf32>
      %375 = arith.mulf %355, %365 : vector<8x128xf32>
      %376 = arith.addf %374, %375 : vector<8x128xf32>
      %377 = math.tanh %376 : vector<8x128xf32>
      %378 = arith.mulf %373, %377 : vector<8x128xf32>
      %379 = arith.index_cast %c7_i32 : i32 to index
      %c0_143 = arith.constant 0 : index
      %c0_144 = arith.constant 0 : index
      %380 = vector.load %arg6[%379, %c0_143, %c0_144] : memref<8x8x128xf32, #tpu.memory_space<vmem>>, vector<1x8x128xf32>
      %381 = vector.shape_cast %380 : vector<1x8x128xf32> to vector<8x128xf32>
      %382 = vector.shape_cast %378 : vector<8x128xf32> to vector<1x8x128xf32>
      tpu.vector_store %arg6[%379, %c0_143, %c0_144], %382 {strides = array<i32>} : memref<8x8x128xf32, #tpu.memory_space<vmem>>, vector<1x8x128xf32>,
      %c8_i32_145 = arith.constant 8 : i32
      %c0_146 = arith.constant 0 : index
      %c0_147 = arith.constant 0 : index
      %383 = vector.load %arg8[%c0_146, %c0_147] : memref<8x128xf32, #tpu.memory_space<vmem>>, vector<8x128xf32>
      tpu.vector_store %arg8[%c0_146, %c0_147], %378 {strides = array<i32>} : memref<8x128xf32, #tpu.memory_space<vmem>>, vector<8x128xf32>,
      %c0_148 = arith.constant 0 : index
      %c0_149 = arith.constant 0 : index
      %384 = vector.load %arg9[%c0_148, %c0_149] : memref<8x128xf32, #tpu.memory_space<vmem>>, vector<8x128xf32>
      tpu.vector_store %arg9[%c0_148, %c0_149], %376 {strides = array<i32>} : memref<8x128xf32, #tpu.memory_space<vmem>>, vector<8x128xf32>,
    } else {
    }
    %c1_i32_3 = arith.constant 1 : i32
    %8 = arith.cmpi eq, %arg1, %c1_i32_3 : i32
    %9 = arith.extui %8 : i1 to i32
    %c0_i32_4 = arith.constant 0 : i32
    %10 = arith.cmpi ne, %9, %c0_i32_4 : i32
    scf.if %10 {
      %c0 = arith.constant 0 : index
      %c0_5 = arith.constant 0 : index
      %11 = vector.load %arg4[%c0, %c0_5] : memref<128x512xf32, #tpu.memory_space<vmem>>, vector<128x512xf32>
      %c1_i32_6 = arith.constant 1 : i32
      %12 = arith.subi %arg1, %c1_i32_6 : i32
      %c2_i32 = arith.constant 2 : i32
      %c0_i32_7 = arith.constant 0 : i32
      %13 = arith.cmpi eq, %c2_i32, %c0_i32_7 : i32
      %c1_i32_8 = arith.constant 1 : i32
      %14 = arith.select %13, %c1_i32_8, %c2_i32 : i32
      %15 = arith.remsi %12, %14 : i32
      %c0_i32_9 = arith.constant 0 : i32
      %16 = arith.cmpi ne, %15, %c0_i32_9 : i32
      %c0_i32_10 = arith.constant 0 : i32
      %17 = arith.cmpi slt, %15, %c0_i32_10 : i32
      %c0_i32_11 = arith.constant 0 : i32
      %18 = arith.cmpi slt, %14, %c0_i32_11 : i32
      %19 = arith.xori %17, %18 : i1
      %20 = arith.andi %19, %16 : i1
      %21 = arith.addi %15, %14 : i32
      %22 = arith.select %20, %21, %15 : i32
      %c64_i32 = arith.constant 64 : i32
      %23 = arith.muli %22, %c64_i32 : i32
      %c0_12 = arith.constant 0 : index
      %c0_13 = arith.constant 0 : index
      %24 = vector.load %arg8[%c0_12, %c0_13] : memref<8x128xf32, #tpu.memory_space<vmem>>, vector<8x128xf32>
      %c0_14 = arith.constant 0 : index
      %c0_15 = arith.constant 0 : index
      %25 = vector.load %arg9[%c0_14, %c0_15] : memref<8x128xf32, #tpu.memory_space<vmem>>, vector<8x128xf32>
      %c0_i32_16 = arith.constant 0 : i32
      %c8_i32 = arith.constant 8 : i32
      %26 = arith.muli %c0_i32_16, %c8_i32 : i32
      %27 = arith.addi %23, %26 : i32
      %28 = tpu.assume_multiple %27, 8 : i32
      %29 = arith.index_cast %28 : i32 to index
      %c0_17 = arith.constant 0 : index
      %30 = vector.load %arg10[%29, %c0_17] : memref<128x512xf32, #tpu.memory_space<vmem>>, vector<8x512xf32>
      %cst = arith.constant dense<0.000000e+00> : vector<8x512xf32>
      %31 = tpu.matmul %24, %11, %cst {dimension_numbers = #tpu.dot_dimension_numbers<[1], [0], [0], [1], [0, 0, 1, 1], [], []>} : vector<8x128xf32>, vector<128x512xf32>, vector<8x512xf32> -> vector<8x512xf32>
      %32 = arith.addf %30, %31 : vector<8x512xf32>
      %33 = vector.extract_strided_slice %32 {offsets = [0, 0], sizes = [8, 128], strides = [1, 1]} : vector<8x512xf32> to vector<8x128xf32>
      %cst_18 = arith.constant 5.000000e-01 : f32
      %34 = vector.broadcast %cst_18 : f32 to vector<8x128xf32>
      %35 = arith.mulf %34, %33 : vector<8x128xf32>
      %36 = math.tanh %35 : vector<8x128xf32>
      %cst_19 = arith.constant 5.000000e-01 : f32
      %37 = vector.broadcast %cst_19 : f32 to vector<8x128xf32>
      %38 = arith.mulf %37, %36 : vector<8x128xf32>
      %cst_20 = arith.constant 5.000000e-01 : f32
      %39 = vector.broadcast %cst_20 : f32 to vector<8x128xf32>
      %40 = arith.addf %38, %39 : vector<8x128xf32>
      %41 = vector.extract_strided_slice %32 {offsets = [0, 128], sizes = [8, 128], strides = [1, 1]} : vector<8x512xf32> to vector<8x128xf32>
      %cst_21 = arith.constant 5.000000e-01 : f32
      %42 = vector.broadcast %cst_21 : f32 to vector<8x128xf32>
      %43 = arith.mulf %42, %41 : vector<8x128xf32>
      %44 = math.tanh %43 : vector<8x128xf32>
      %cst_22 = arith.constant 5.000000e-01 : f32
      %45 = vector.broadcast %cst_22 : f32 to vector<8x128xf32>
      %46 = arith.mulf %45, %44 : vector<8x128xf32>
      %cst_23 = arith.constant 5.000000e-01 : f32
      %47 = vector.broadcast %cst_23 : f32 to vector<8x128xf32>
      %48 = arith.addf %46, %47 : vector<8x128xf32>
      %49 = vector.extract_strided_slice %32 {offsets = [0, 256], sizes = [8, 128], strides = [1, 1]} : vector<8x512xf32> to vector<8x128xf32>
      %50 = math.tanh %49 : vector<8x128xf32>
      %51 = vector.extract_strided_slice %32 {offsets = [0, 384], sizes = [8, 128], strides = [1, 1]} : vector<8x512xf32> to vector<8x128xf32>
      %cst_24 = arith.constant 5.000000e-01 : f32
      %52 = vector.broadcast %cst_24 : f32 to vector<8x128xf32>
      %53 = arith.mulf %52, %51 : vector<8x128xf32>
      %54 = math.tanh %53 : vector<8x128xf32>
      %cst_25 = arith.constant 5.000000e-01 : f32
      %55 = vector.broadcast %cst_25 : f32 to vector<8x128xf32>
      %56 = arith.mulf %55, %54 : vector<8x128xf32>
      %cst_26 = arith.constant 5.000000e-01 : f32
      %57 = vector.broadcast %cst_26 : f32 to vector<8x128xf32>
      %58 = arith.addf %56, %57 : vector<8x128xf32>
      %59 = arith.mulf %48, %25 : vector<8x128xf32>
      %60 = arith.mulf %40, %50 : vector<8x128xf32>
      %61 = arith.addf %59, %60 : vector<8x128xf32>
      %62 = math.tanh %61 : vector<8x128xf32>
      %63 = arith.mulf %58, %62 : vector<8x128xf32>
      %64 = arith.index_cast %c0_i32_16 : i32 to index
      %c0_27 = arith.constant 0 : index
      %c0_28 = arith.constant 0 : index
      %65 = vector.load %arg6[%64, %c0_27, %c0_28] : memref<8x8x128xf32, #tpu.memory_space<vmem>>, vector<1x8x128xf32>
      %66 = vector.shape_cast %65 : vector<1x8x128xf32> to vector<8x128xf32>
      %67 = vector.shape_cast %63 : vector<8x128xf32> to vector<1x8x128xf32>
      tpu.vector_store %arg6[%64, %c0_27, %c0_28], %67 {strides = array<i32>} : memref<8x8x128xf32, #tpu.memory_space<vmem>>, vector<1x8x128xf32>,
      %c1_i32_29 = arith.constant 1 : i32
      %c8_i32_30 = arith.constant 8 : i32
      %68 = arith.muli %c1_i32_29, %c8_i32_30 : i32
      %69 = arith.addi %23, %68 : i32
      %70 = tpu.assume_multiple %69, 8 : i32
      %71 = arith.index_cast %70 : i32 to index
      %c0_31 = arith.constant 0 : index
      %72 = vector.load %arg10[%71, %c0_31] : memref<128x512xf32, #tpu.memory_space<vmem>>, vector<8x512xf32>
      %cst_32 = arith.constant dense<0.000000e+00> : vector<8x512xf32>
      %73 = tpu.matmul %63, %11, %cst_32 {dimension_numbers = #tpu.dot_dimension_numbers<[1], [0], [0], [1], [0, 0, 1, 1], [], []>} : vector<8x128xf32>, vector<128x512xf32>, vector<8x512xf32> -> vector<8x512xf32>
      %74 = arith.addf %72, %73 : vector<8x512xf32>
      %75 = vector.extract_strided_slice %74 {offsets = [0, 0], sizes = [8, 128], strides = [1, 1]} : vector<8x512xf32> to vector<8x128xf32>
      %cst_33 = arith.constant 5.000000e-01 : f32
      %76 = vector.broadcast %cst_33 : f32 to vector<8x128xf32>
      %77 = arith.mulf %76, %75 : vector<8x128xf32>
      %78 = math.tanh %77 : vector<8x128xf32>
      %cst_34 = arith.constant 5.000000e-01 : f32
      %79 = vector.broadcast %cst_34 : f32 to vector<8x128xf32>
      %80 = arith.mulf %79, %78 : vector<8x128xf32>
      %cst_35 = arith.constant 5.000000e-01 : f32
      %81 = vector.broadcast %cst_35 : f32 to vector<8x128xf32>
      %82 = arith.addf %80, %81 : vector<8x128xf32>
      %83 = vector.extract_strided_slice %74 {offsets = [0, 128], sizes = [8, 128], strides = [1, 1]} : vector<8x512xf32> to vector<8x128xf32>
      %cst_36 = arith.constant 5.000000e-01 : f32
      %84 = vector.broadcast %cst_36 : f32 to vector<8x128xf32>
      %85 = arith.mulf %84, %83 : vector<8x128xf32>
      %86 = math.tanh %85 : vector<8x128xf32>
      %cst_37 = arith.constant 5.000000e-01 : f32
      %87 = vector.broadcast %cst_37 : f32 to vector<8x128xf32>
      %88 = arith.mulf %87, %86 : vector<8x128xf32>
      %cst_38 = arith.constant 5.000000e-01 : f32
      %89 = vector.broadcast %cst_38 : f32 to vector<8x128xf32>
      %90 = arith.addf %88, %89 : vector<8x128xf32>
      %91 = vector.extract_strided_slice %74 {offsets = [0, 256], sizes = [8, 128], strides = [1, 1]} : vector<8x512xf32> to vector<8x128xf32>
      %92 = math.tanh %91 : vector<8x128xf32>
      %93 = vector.extract_strided_slice %74 {offsets = [0, 384], sizes = [8, 128], strides = [1, 1]} : vector<8x512xf32> to vector<8x128xf32>
      %cst_39 = arith.constant 5.000000e-01 : f32
      %94 = vector.broadcast %cst_39 : f32 to vector<8x128xf32>
      %95 = arith.mulf %94, %93 : vector<8x128xf32>
      %96 = math.tanh %95 : vector<8x128xf32>
      %cst_40 = arith.constant 5.000000e-01 : f32
      %97 = vector.broadcast %cst_40 : f32 to vector<8x128xf32>
      %98 = arith.mulf %97, %96 : vector<8x128xf32>
      %cst_41 = arith.constant 5.000000e-01 : f32
      %99 = vector.broadcast %cst_41 : f32 to vector<8x128xf32>
      %100 = arith.addf %98, %99 : vector<8x128xf32>
      %101 = arith.mulf %90, %61 : vector<8x128xf32>
      %102 = arith.mulf %82, %92 : vector<8x128xf32>
      %103 = arith.addf %101, %102 : vector<8x128xf32>
      %104 = math.tanh %103 : vector<8x128xf32>
      %105 = arith.mulf %100, %104 : vector<8x128xf32>
      %106 = arith.index_cast %c1_i32_29 : i32 to index
      %c0_42 = arith.constant 0 : index
      %c0_43 = arith.constant 0 : index
      %107 = vector.load %arg6[%106, %c0_42, %c0_43] : memref<8x8x128xf32, #tpu.memory_space<vmem>>, vector<1x8x128xf32>
      %108 = vector.shape_cast %107 : vector<1x8x128xf32> to vector<8x128xf32>
      %109 = vector.shape_cast %105 : vector<8x128xf32> to vector<1x8x128xf32>
      tpu.vector_store %arg6[%106, %c0_42, %c0_43], %109 {strides = array<i32>} : memref<8x8x128xf32, #tpu.memory_space<vmem>>, vector<1x8x128xf32>,
      %c2_i32_44 = arith.constant 2 : i32
      %c8_i32_45 = arith.constant 8 : i32
      %110 = arith.muli %c2_i32_44, %c8_i32_45 : i32
      %111 = arith.addi %23, %110 : i32
      %112 = tpu.assume_multiple %111, 8 : i32
      %113 = arith.index_cast %112 : i32 to index
      %c0_46 = arith.constant 0 : index
      %114 = vector.load %arg10[%113, %c0_46] : memref<128x512xf32, #tpu.memory_space<vmem>>, vector<8x512xf32>
      %cst_47 = arith.constant dense<0.000000e+00> : vector<8x512xf32>
      %115 = tpu.matmul %105, %11, %cst_47 {dimension_numbers = #tpu.dot_dimension_numbers<[1], [0], [0], [1], [0, 0, 1, 1], [], []>} : vector<8x128xf32>, vector<128x512xf32>, vector<8x512xf32> -> vector<8x512xf32>
      %116 = arith.addf %114, %115 : vector<8x512xf32>
      %117 = vector.extract_strided_slice %116 {offsets = [0, 0], sizes = [8, 128], strides = [1, 1]} : vector<8x512xf32> to vector<8x128xf32>
      %cst_48 = arith.constant 5.000000e-01 : f32
      %118 = vector.broadcast %cst_48 : f32 to vector<8x128xf32>
      %119 = arith.mulf %118, %117 : vector<8x128xf32>
      %120 = math.tanh %119 : vector<8x128xf32>
      %cst_49 = arith.constant 5.000000e-01 : f32
      %121 = vector.broadcast %cst_49 : f32 to vector<8x128xf32>
      %122 = arith.mulf %121, %120 : vector<8x128xf32>
      %cst_50 = arith.constant 5.000000e-01 : f32
      %123 = vector.broadcast %cst_50 : f32 to vector<8x128xf32>
      %124 = arith.addf %122, %123 : vector<8x128xf32>
      %125 = vector.extract_strided_slice %116 {offsets = [0, 128], sizes = [8, 128], strides = [1, 1]} : vector<8x512xf32> to vector<8x128xf32>
      %cst_51 = arith.constant 5.000000e-01 : f32
      %126 = vector.broadcast %cst_51 : f32 to vector<8x128xf32>
      %127 = arith.mulf %126, %125 : vector<8x128xf32>
      %128 = math.tanh %127 : vector<8x128xf32>
      %cst_52 = arith.constant 5.000000e-01 : f32
      %129 = vector.broadcast %cst_52 : f32 to vector<8x128xf32>
      %130 = arith.mulf %129, %128 : vector<8x128xf32>
      %cst_53 = arith.constant 5.000000e-01 : f32
      %131 = vector.broadcast %cst_53 : f32 to vector<8x128xf32>
      %132 = arith.addf %130, %131 : vector<8x128xf32>
      %133 = vector.extract_strided_slice %116 {offsets = [0, 256], sizes = [8, 128], strides = [1, 1]} : vector<8x512xf32> to vector<8x128xf32>
      %134 = math.tanh %133 : vector<8x128xf32>
      %135 = vector.extract_strided_slice %116 {offsets = [0, 384], sizes = [8, 128], strides = [1, 1]} : vector<8x512xf32> to vector<8x128xf32>
      %cst_54 = arith.constant 5.000000e-01 : f32
      %136 = vector.broadcast %cst_54 : f32 to vector<8x128xf32>
      %137 = arith.mulf %136, %135 : vector<8x128xf32>
      %138 = math.tanh %137 : vector<8x128xf32>
      %cst_55 = arith.constant 5.000000e-01 : f32
      %139 = vector.broadcast %cst_55 : f32 to vector<8x128xf32>
      %140 = arith.mulf %139, %138 : vector<8x128xf32>
      %cst_56 = arith.constant 5.000000e-01 : f32
      %141 = vector.broadcast %cst_56 : f32 to vector<8x128xf32>
      %142 = arith.addf %140, %141 : vector<8x128xf32>
      %143 = arith.mulf %132, %103 : vector<8x128xf32>
      %144 = arith.mulf %124, %134 : vector<8x128xf32>
      %145 = arith.addf %143, %144 : vector<8x128xf32>
      %146 = math.tanh %145 : vector<8x128xf32>
      %147 = arith.mulf %142, %146 : vector<8x128xf32>
      %148 = arith.index_cast %c2_i32_44 : i32 to index
      %c0_57 = arith.constant 0 : index
      %c0_58 = arith.constant 0 : index
      %149 = vector.load %arg6[%148, %c0_57, %c0_58] : memref<8x8x128xf32, #tpu.memory_space<vmem>>, vector<1x8x128xf32>
      %150 = vector.shape_cast %149 : vector<1x8x128xf32> to vector<8x128xf32>
      %151 = vector.shape_cast %147 : vector<8x128xf32> to vector<1x8x128xf32>
      tpu.vector_store %arg6[%148, %c0_57, %c0_58], %151 {strides = array<i32>} : memref<8x8x128xf32, #tpu.memory_space<vmem>>, vector<1x8x128xf32>,
      %c3_i32 = arith.constant 3 : i32
      %c8_i32_59 = arith.constant 8 : i32
      %152 = arith.muli %c3_i32, %c8_i32_59 : i32
      %153 = arith.addi %23, %152 : i32
      %154 = tpu.assume_multiple %153, 8 : i32
      %155 = arith.index_cast %154 : i32 to index
      %c0_60 = arith.constant 0 : index
      %156 = vector.load %arg10[%155, %c0_60] : memref<128x512xf32, #tpu.memory_space<vmem>>, vector<8x512xf32>
      %cst_61 = arith.constant dense<0.000000e+00> : vector<8x512xf32>
      %157 = tpu.matmul %147, %11, %cst_61 {dimension_numbers = #tpu.dot_dimension_numbers<[1], [0], [0], [1], [0, 0, 1, 1], [], []>} : vector<8x128xf32>, vector<128x512xf32>, vector<8x512xf32> -> vector<8x512xf32>
      %158 = arith.addf %156, %157 : vector<8x512xf32>
      %159 = vector.extract_strided_slice %158 {offsets = [0, 0], sizes = [8, 128], strides = [1, 1]} : vector<8x512xf32> to vector<8x128xf32>
      %cst_62 = arith.constant 5.000000e-01 : f32
      %160 = vector.broadcast %cst_62 : f32 to vector<8x128xf32>
      %161 = arith.mulf %160, %159 : vector<8x128xf32>
      %162 = math.tanh %161 : vector<8x128xf32>
      %cst_63 = arith.constant 5.000000e-01 : f32
      %163 = vector.broadcast %cst_63 : f32 to vector<8x128xf32>
      %164 = arith.mulf %163, %162 : vector<8x128xf32>
      %cst_64 = arith.constant 5.000000e-01 : f32
      %165 = vector.broadcast %cst_64 : f32 to vector<8x128xf32>
      %166 = arith.addf %164, %165 : vector<8x128xf32>
      %167 = vector.extract_strided_slice %158 {offsets = [0, 128], sizes = [8, 128], strides = [1, 1]} : vector<8x512xf32> to vector<8x128xf32>
      %cst_65 = arith.constant 5.000000e-01 : f32
      %168 = vector.broadcast %cst_65 : f32 to vector<8x128xf32>
      %169 = arith.mulf %168, %167 : vector<8x128xf32>
      %170 = math.tanh %169 : vector<8x128xf32>
      %cst_66 = arith.constant 5.000000e-01 : f32
      %171 = vector.broadcast %cst_66 : f32 to vector<8x128xf32>
      %172 = arith.mulf %171, %170 : vector<8x128xf32>
      %cst_67 = arith.constant 5.000000e-01 : f32
      %173 = vector.broadcast %cst_67 : f32 to vector<8x128xf32>
      %174 = arith.addf %172, %173 : vector<8x128xf32>
      %175 = vector.extract_strided_slice %158 {offsets = [0, 256], sizes = [8, 128], strides = [1, 1]} : vector<8x512xf32> to vector<8x128xf32>
      %176 = math.tanh %175 : vector<8x128xf32>
      %177 = vector.extract_strided_slice %158 {offsets = [0, 384], sizes = [8, 128], strides = [1, 1]} : vector<8x512xf32> to vector<8x128xf32>
      %cst_68 = arith.constant 5.000000e-01 : f32
      %178 = vector.broadcast %cst_68 : f32 to vector<8x128xf32>
      %179 = arith.mulf %178, %177 : vector<8x128xf32>
      %180 = math.tanh %179 : vector<8x128xf32>
      %cst_69 = arith.constant 5.000000e-01 : f32
      %181 = vector.broadcast %cst_69 : f32 to vector<8x128xf32>
      %182 = arith.mulf %181, %180 : vector<8x128xf32>
      %cst_70 = arith.constant 5.000000e-01 : f32
      %183 = vector.broadcast %cst_70 : f32 to vector<8x128xf32>
      %184 = arith.addf %182, %183 : vector<8x128xf32>
      %185 = arith.mulf %174, %145 : vector<8x128xf32>
      %186 = arith.mulf %166, %176 : vector<8x128xf32>
      %187 = arith.addf %185, %186 : vector<8x128xf32>
      %188 = math.tanh %187 : vector<8x128xf32>
      %189 = arith.mulf %184, %188 : vector<8x128xf32>
      %190 = arith.index_cast %c3_i32 : i32 to index
      %c0_71 = arith.constant 0 : index
      %c0_72 = arith.constant 0 : index
      %191 = vector.load %arg6[%190, %c0_71, %c0_72] : memref<8x8x128xf32, #tpu.memory_space<vmem>>, vector<1x8x128xf32>
      %192 = vector.shape_cast %191 : vector<1x8x128xf32> to vector<8x128xf32>
      %193 = vector.shape_cast %189 : vector<8x128xf32> to vector<1x8x128xf32>
      tpu.vector_store %arg6[%190, %c0_71, %c0_72], %193 {strides = array<i32>} : memref<8x8x128xf32, #tpu.memory_space<vmem>>, vector<1x8x128xf32>,
      %c4_i32 = arith.constant 4 : i32
      %c8_i32_73 = arith.constant 8 : i32
      %194 = arith.muli %c4_i32, %c8_i32_73 : i32
      %195 = arith.addi %23, %194 : i32
      %196 = tpu.assume_multiple %195, 8 : i32
      %197 = arith.index_cast %196 : i32 to index
      %c0_74 = arith.constant 0 : index
      %198 = vector.load %arg10[%197, %c0_74] : memref<128x512xf32, #tpu.memory_space<vmem>>, vector<8x512xf32>
      %cst_75 = arith.constant dense<0.000000e+00> : vector<8x512xf32>
      %199 = tpu.matmul %189, %11, %cst_75 {dimension_numbers = #tpu.dot_dimension_numbers<[1], [0], [0], [1], [0, 0, 1, 1], [], []>} : vector<8x128xf32>, vector<128x512xf32>, vector<8x512xf32> -> vector<8x512xf32>
      %200 = arith.addf %198, %199 : vector<8x512xf32>
      %201 = vector.extract_strided_slice %200 {offsets = [0, 0], sizes = [8, 128], strides = [1, 1]} : vector<8x512xf32> to vector<8x128xf32>
      %cst_76 = arith.constant 5.000000e-01 : f32
      %202 = vector.broadcast %cst_76 : f32 to vector<8x128xf32>
      %203 = arith.mulf %202, %201 : vector<8x128xf32>
      %204 = math.tanh %203 : vector<8x128xf32>
      %cst_77 = arith.constant 5.000000e-01 : f32
      %205 = vector.broadcast %cst_77 : f32 to vector<8x128xf32>
      %206 = arith.mulf %205, %204 : vector<8x128xf32>
      %cst_78 = arith.constant 5.000000e-01 : f32
      %207 = vector.broadcast %cst_78 : f32 to vector<8x128xf32>
      %208 = arith.addf %206, %207 : vector<8x128xf32>
      %209 = vector.extract_strided_slice %200 {offsets = [0, 128], sizes = [8, 128], strides = [1, 1]} : vector<8x512xf32> to vector<8x128xf32>
      %cst_79 = arith.constant 5.000000e-01 : f32
      %210 = vector.broadcast %cst_79 : f32 to vector<8x128xf32>
      %211 = arith.mulf %210, %209 : vector<8x128xf32>
      %212 = math.tanh %211 : vector<8x128xf32>
      %cst_80 = arith.constant 5.000000e-01 : f32
      %213 = vector.broadcast %cst_80 : f32 to vector<8x128xf32>
      %214 = arith.mulf %213, %212 : vector<8x128xf32>
      %cst_81 = arith.constant 5.000000e-01 : f32
      %215 = vector.broadcast %cst_81 : f32 to vector<8x128xf32>
      %216 = arith.addf %214, %215 : vector<8x128xf32>
      %217 = vector.extract_strided_slice %200 {offsets = [0, 256], sizes = [8, 128], strides = [1, 1]} : vector<8x512xf32> to vector<8x128xf32>
      %218 = math.tanh %217 : vector<8x128xf32>
      %219 = vector.extract_strided_slice %200 {offsets = [0, 384], sizes = [8, 128], strides = [1, 1]} : vector<8x512xf32> to vector<8x128xf32>
      %cst_82 = arith.constant 5.000000e-01 : f32
      %220 = vector.broadcast %cst_82 : f32 to vector<8x128xf32>
      %221 = arith.mulf %220, %219 : vector<8x128xf32>
      %222 = math.tanh %221 : vector<8x128xf32>
      %cst_83 = arith.constant 5.000000e-01 : f32
      %223 = vector.broadcast %cst_83 : f32 to vector<8x128xf32>
      %224 = arith.mulf %223, %222 : vector<8x128xf32>
      %cst_84 = arith.constant 5.000000e-01 : f32
      %225 = vector.broadcast %cst_84 : f32 to vector<8x128xf32>
      %226 = arith.addf %224, %225 : vector<8x128xf32>
      %227 = arith.mulf %216, %187 : vector<8x128xf32>
      %228 = arith.mulf %208, %218 : vector<8x128xf32>
      %229 = arith.addf %227, %228 : vector<8x128xf32>
      %230 = math.tanh %229 : vector<8x128xf32>
      %231 = arith.mulf %226, %230 : vector<8x128xf32>
      %232 = arith.index_cast %c4_i32 : i32 to index
      %c0_85 = arith.constant 0 : index
      %c0_86 = arith.constant 0 : index
      %233 = vector.load %arg6[%232, %c0_85, %c0_86] : memref<8x8x128xf32, #tpu.memory_space<vmem>>, vector<1x8x128xf32>
      %234 = vector.shape_cast %233 : vector<1x8x128xf32> to vector<8x128xf32>
      %235 = vector.shape_cast %231 : vector<8x128xf32> to vector<1x8x128xf32>
      tpu.vector_store %arg6[%232, %c0_85, %c0_86], %235 {strides = array<i32>} : memref<8x8x128xf32, #tpu.memory_space<vmem>>, vector<1x8x128xf32>,
      %c5_i32 = arith.constant 5 : i32
      %c8_i32_87 = arith.constant 8 : i32
      %236 = arith.muli %c5_i32, %c8_i32_87 : i32
      %237 = arith.addi %23, %236 : i32
      %238 = tpu.assume_multiple %237, 8 : i32
      %239 = arith.index_cast %238 : i32 to index
      %c0_88 = arith.constant 0 : index
      %240 = vector.load %arg10[%239, %c0_88] : memref<128x512xf32, #tpu.memory_space<vmem>>, vector<8x512xf32>
      %cst_89 = arith.constant dense<0.000000e+00> : vector<8x512xf32>
      %241 = tpu.matmul %231, %11, %cst_89 {dimension_numbers = #tpu.dot_dimension_numbers<[1], [0], [0], [1], [0, 0, 1, 1], [], []>} : vector<8x128xf32>, vector<128x512xf32>, vector<8x512xf32> -> vector<8x512xf32>
      %242 = arith.addf %240, %241 : vector<8x512xf32>
      %243 = vector.extract_strided_slice %242 {offsets = [0, 0], sizes = [8, 128], strides = [1, 1]} : vector<8x512xf32> to vector<8x128xf32>
      %cst_90 = arith.constant 5.000000e-01 : f32
      %244 = vector.broadcast %cst_90 : f32 to vector<8x128xf32>
      %245 = arith.mulf %244, %243 : vector<8x128xf32>
      %246 = math.tanh %245 : vector<8x128xf32>
      %cst_91 = arith.constant 5.000000e-01 : f32
      %247 = vector.broadcast %cst_91 : f32 to vector<8x128xf32>
      %248 = arith.mulf %247, %246 : vector<8x128xf32>
      %cst_92 = arith.constant 5.000000e-01 : f32
      %249 = vector.broadcast %cst_92 : f32 to vector<8x128xf32>
      %250 = arith.addf %248, %249 : vector<8x128xf32>
      %251 = vector.extract_strided_slice %242 {offsets = [0, 128], sizes = [8, 128], strides = [1, 1]} : vector<8x512xf32> to vector<8x128xf32>
      %cst_93 = arith.constant 5.000000e-01 : f32
      %252 = vector.broadcast %cst_93 : f32 to vector<8x128xf32>
      %253 = arith.mulf %252, %251 : vector<8x128xf32>
      %254 = math.tanh %253 : vector<8x128xf32>
      %cst_94 = arith.constant 5.000000e-01 : f32
      %255 = vector.broadcast %cst_94 : f32 to vector<8x128xf32>
      %256 = arith.mulf %255, %254 : vector<8x128xf32>
      %cst_95 = arith.constant 5.000000e-01 : f32
      %257 = vector.broadcast %cst_95 : f32 to vector<8x128xf32>
      %258 = arith.addf %256, %257 : vector<8x128xf32>
      %259 = vector.extract_strided_slice %242 {offsets = [0, 256], sizes = [8, 128], strides = [1, 1]} : vector<8x512xf32> to vector<8x128xf32>
      %260 = math.tanh %259 : vector<8x128xf32>
      %261 = vector.extract_strided_slice %242 {offsets = [0, 384], sizes = [8, 128], strides = [1, 1]} : vector<8x512xf32> to vector<8x128xf32>
      %cst_96 = arith.constant 5.000000e-01 : f32
      %262 = vector.broadcast %cst_96 : f32 to vector<8x128xf32>
      %263 = arith.mulf %262, %261 : vector<8x128xf32>
      %264 = math.tanh %263 : vector<8x128xf32>
      %cst_97 = arith.constant 5.000000e-01 : f32
      %265 = vector.broadcast %cst_97 : f32 to vector<8x128xf32>
      %266 = arith.mulf %265, %264 : vector<8x128xf32>
      %cst_98 = arith.constant 5.000000e-01 : f32
      %267 = vector.broadcast %cst_98 : f32 to vector<8x128xf32>
      %268 = arith.addf %266, %267 : vector<8x128xf32>
      %269 = arith.mulf %258, %229 : vector<8x128xf32>
      %270 = arith.mulf %250, %260 : vector<8x128xf32>
      %271 = arith.addf %269, %270 : vector<8x128xf32>
      %272 = math.tanh %271 : vector<8x128xf32>
      %273 = arith.mulf %268, %272 : vector<8x128xf32>
      %274 = arith.index_cast %c5_i32 : i32 to index
      %c0_99 = arith.constant 0 : index
      %c0_100 = arith.constant 0 : index
      %275 = vector.load %arg6[%274, %c0_99, %c0_100] : memref<8x8x128xf32, #tpu.memory_space<vmem>>, vector<1x8x128xf32>
      %276 = vector.shape_cast %275 : vector<1x8x128xf32> to vector<8x128xf32>
      %277 = vector.shape_cast %273 : vector<8x128xf32> to vector<1x8x128xf32>
      tpu.vector_store %arg6[%274, %c0_99, %c0_100], %277 {strides = array<i32>} : memref<8x8x128xf32, #tpu.memory_space<vmem>>, vector<1x8x128xf32>,
      %c6_i32 = arith.constant 6 : i32
      %c8_i32_101 = arith.constant 8 : i32
      %278 = arith.muli %c6_i32, %c8_i32_101 : i32
      %279 = arith.addi %23, %278 : i32
      %280 = tpu.assume_multiple %279, 8 : i32
      %281 = arith.index_cast %280 : i32 to index
      %c0_102 = arith.constant 0 : index
      %282 = vector.load %arg10[%281, %c0_102] : memref<128x512xf32, #tpu.memory_space<vmem>>, vector<8x512xf32>
      %cst_103 = arith.constant dense<0.000000e+00> : vector<8x512xf32>
      %283 = tpu.matmul %273, %11, %cst_103 {dimension_numbers = #tpu.dot_dimension_numbers<[1], [0], [0], [1], [0, 0, 1, 1], [], []>} : vector<8x128xf32>, vector<128x512xf32>, vector<8x512xf32> -> vector<8x512xf32>
      %284 = arith.addf %282, %283 : vector<8x512xf32>
      %285 = vector.extract_strided_slice %284 {offsets = [0, 0], sizes = [8, 128], strides = [1, 1]} : vector<8x512xf32> to vector<8x128xf32>
      %cst_104 = arith.constant 5.000000e-01 : f32
      %286 = vector.broadcast %cst_104 : f32 to vector<8x128xf32>
      %287 = arith.mulf %286, %285 : vector<8x128xf32>
      %288 = math.tanh %287 : vector<8x128xf32>
      %cst_105 = arith.constant 5.000000e-01 : f32
      %289 = vector.broadcast %cst_105 : f32 to vector<8x128xf32>
      %290 = arith.mulf %289, %288 : vector<8x128xf32>
      %cst_106 = arith.constant 5.000000e-01 : f32
      %291 = vector.broadcast %cst_106 : f32 to vector<8x128xf32>
      %292 = arith.addf %290, %291 : vector<8x128xf32>
      %293 = vector.extract_strided_slice %284 {offsets = [0, 128], sizes = [8, 128], strides = [1, 1]} : vector<8x512xf32> to vector<8x128xf32>
      %cst_107 = arith.constant 5.000000e-01 : f32
      %294 = vector.broadcast %cst_107 : f32 to vector<8x128xf32>
      %295 = arith.mulf %294, %293 : vector<8x128xf32>
      %296 = math.tanh %295 : vector<8x128xf32>
      %cst_108 = arith.constant 5.000000e-01 : f32
      %297 = vector.broadcast %cst_108 : f32 to vector<8x128xf32>
      %298 = arith.mulf %297, %296 : vector<8x128xf32>
      %cst_109 = arith.constant 5.000000e-01 : f32
      %299 = vector.broadcast %cst_109 : f32 to vector<8x128xf32>
      %300 = arith.addf %298, %299 : vector<8x128xf32>
      %301 = vector.extract_strided_slice %284 {offsets = [0, 256], sizes = [8, 128], strides = [1, 1]} : vector<8x512xf32> to vector<8x128xf32>
      %302 = math.tanh %301 : vector<8x128xf32>
      %303 = vector.extract_strided_slice %284 {offsets = [0, 384], sizes = [8, 128], strides = [1, 1]} : vector<8x512xf32> to vector<8x128xf32>
      %cst_110 = arith.constant 5.000000e-01 : f32
      %304 = vector.broadcast %cst_110 : f32 to vector<8x128xf32>
      %305 = arith.mulf %304, %303 : vector<8x128xf32>
      %306 = math.tanh %305 : vector<8x128xf32>
      %cst_111 = arith.constant 5.000000e-01 : f32
      %307 = vector.broadcast %cst_111 : f32 to vector<8x128xf32>
      %308 = arith.mulf %307, %306 : vector<8x128xf32>
      %cst_112 = arith.constant 5.000000e-01 : f32
      %309 = vector.broadcast %cst_112 : f32 to vector<8x128xf32>
      %310 = arith.addf %308, %309 : vector<8x128xf32>
      %311 = arith.mulf %300, %271 : vector<8x128xf32>
      %312 = arith.mulf %292, %302 : vector<8x128xf32>
      %313 = arith.addf %311, %312 : vector<8x128xf32>
      %314 = math.tanh %313 : vector<8x128xf32>
      %315 = arith.mulf %310, %314 : vector<8x128xf32>
      %316 = arith.index_cast %c6_i32 : i32 to index
      %c0_113 = arith.constant 0 : index
      %c0_114 = arith.constant 0 : index
      %317 = vector.load %arg6[%316, %c0_113, %c0_114] : memref<8x8x128xf32, #tpu.memory_space<vmem>>, vector<1x8x128xf32>
      %318 = vector.shape_cast %317 : vector<1x8x128xf32> to vector<8x128xf32>
      %319 = vector.shape_cast %315 : vector<8x128xf32> to vector<1x8x128xf32>
      tpu.vector_store %arg6[%316, %c0_113, %c0_114], %319 {strides = array<i32>} : memref<8x8x128xf32, #tpu.memory_space<vmem>>, vector<1x8x128xf32>,
      %c7_i32 = arith.constant 7 : i32
      %c8_i32_115 = arith.constant 8 : i32
      %320 = arith.muli %c7_i32, %c8_i32_115 : i32
      %321 = arith.addi %23, %320 : i32
      %322 = tpu.assume_multiple %321, 8 : i32
      %323 = arith.index_cast %322 : i32 to index
      %c0_116 = arith.constant 0 : index
      %324 = vector.load %arg10[%323, %c0_116] : memref<128x512xf32, #tpu.memory_space<vmem>>, vector<8x512xf32>
      %cst_117 = arith.constant dense<0.000000e+00> : vector<8x512xf32>
      %325 = tpu.matmul %315, %11, %cst_117 {dimension_numbers = #tpu.dot_dimension_numbers<[1], [0], [0], [1], [0, 0, 1, 1], [], []>} : vector<8x128xf32>, vector<128x512xf32>, vector<8x512xf32> -> vector<8x512xf32>
      %326 = arith.addf %324, %325 : vector<8x512xf32>
      %327 = vector.extract_strided_slice %326 {offsets = [0, 0], sizes = [8, 128], strides = [1, 1]} : vector<8x512xf32> to vector<8x128xf32>
      %cst_118 = arith.constant 5.000000e-01 : f32
      %328 = vector.broadcast %cst_118 : f32 to vector<8x128xf32>
      %329 = arith.mulf %328, %327 : vector<8x128xf32>
      %330 = math.tanh %329 : vector<8x128xf32>
      %cst_119 = arith.constant 5.000000e-01 : f32
      %331 = vector.broadcast %cst_119 : f32 to vector<8x128xf32>
      %332 = arith.mulf %331, %330 : vector<8x128xf32>
      %cst_120 = arith.constant 5.000000e-01 : f32
      %333 = vector.broadcast %cst_120 : f32 to vector<8x128xf32>
      %334 = arith.addf %332, %333 : vector<8x128xf32>
      %335 = vector.extract_strided_slice %326 {offsets = [0, 128], sizes = [8, 128], strides = [1, 1]} : vector<8x512xf32> to vector<8x128xf32>
      %cst_121 = arith.constant 5.000000e-01 : f32
      %336 = vector.broadcast %cst_121 : f32 to vector<8x128xf32>
      %337 = arith.mulf %336, %335 : vector<8x128xf32>
      %338 = math.tanh %337 : vector<8x128xf32>
      %cst_122 = arith.constant 5.000000e-01 : f32
      %339 = vector.broadcast %cst_122 : f32 to vector<8x128xf32>
      %340 = arith.mulf %339, %338 : vector<8x128xf32>
      %cst_123 = arith.constant 5.000000e-01 : f32
      %341 = vector.broadcast %cst_123 : f32 to vector<8x128xf32>
      %342 = arith.addf %340, %341 : vector<8x128xf32>
      %343 = vector.extract_strided_slice %326 {offsets = [0, 256], sizes = [8, 128], strides = [1, 1]} : vector<8x512xf32> to vector<8x128xf32>
      %344 = math.tanh %343 : vector<8x128xf32>
      %345 = vector.extract_strided_slice %326 {offsets = [0, 384], sizes = [8, 128], strides = [1, 1]} : vector<8x512xf32> to vector<8x128xf32>
      %cst_124 = arith.constant 5.000000e-01 : f32
      %346 = vector.broadcast %cst_124 : f32 to vector<8x128xf32>
      %347 = arith.mulf %346, %345 : vector<8x128xf32>
      %348 = math.tanh %347 : vector<8x128xf32>
      %cst_125 = arith.constant 5.000000e-01 : f32
      %349 = vector.broadcast %cst_125 : f32 to vector<8x128xf32>
      %350 = arith.mulf %349, %348 : vector<8x128xf32>
      %cst_126 = arith.constant 5.000000e-01 : f32
      %351 = vector.broadcast %cst_126 : f32 to vector<8x128xf32>
      %352 = arith.addf %350, %351 : vector<8x128xf32>
      %353 = arith.mulf %342, %313 : vector<8x128xf32>
      %354 = arith.mulf %334, %344 : vector<8x128xf32>
      %355 = arith.addf %353, %354 : vector<8x128xf32>
      %356 = math.tanh %355 : vector<8x128xf32>
      %357 = arith.mulf %352, %356 : vector<8x128xf32>
      %358 = arith.index_cast %c7_i32 : i32 to index
      %c0_127 = arith.constant 0 : index
      %c0_128 = arith.constant 0 : index
      %359 = vector.load %arg6[%358, %c0_127, %c0_128] : memref<8x8x128xf32, #tpu.memory_space<vmem>>, vector<1x8x128xf32>
      %360 = vector.shape_cast %359 : vector<1x8x128xf32> to vector<8x128xf32>
      %361 = vector.shape_cast %357 : vector<8x128xf32> to vector<1x8x128xf32>
      tpu.vector_store %arg6[%358, %c0_127, %c0_128], %361 {strides = array<i32>} : memref<8x8x128xf32, #tpu.memory_space<vmem>>, vector<1x8x128xf32>,
      %c8_i32_129 = arith.constant 8 : i32
      %c0_130 = arith.constant 0 : index
      %c0_131 = arith.constant 0 : index
      %362 = vector.load %arg8[%c0_130, %c0_131] : memref<8x128xf32, #tpu.memory_space<vmem>>, vector<8x128xf32>
      tpu.vector_store %arg8[%c0_130, %c0_131], %357 {strides = array<i32>} : memref<8x128xf32, #tpu.memory_space<vmem>>, vector<8x128xf32>,
      %c0_132 = arith.constant 0 : index
      %c0_133 = arith.constant 0 : index
      %363 = vector.load %arg9[%c0_132, %c0_133] : memref<8x128xf32, #tpu.memory_space<vmem>>, vector<8x128xf32>
      tpu.vector_store %arg9[%c0_132, %c0_133], %355 {strides = array<i32>} : memref<8x128xf32, #tpu.memory_space<vmem>>, vector<8x128xf32>,
      %c0_134 = arith.constant 0 : index
      %c0_135 = arith.constant 0 : index
      %364 = vector.load %arg7[%c0_134, %c0_135] : memref<8x128xf32, #tpu.memory_space<vmem>>, vector<8x128xf32>
      tpu.vector_store %arg7[%c0_134, %c0_135], %355 {strides = array<i32>} : memref<8x128xf32, #tpu.memory_space<vmem>>, vector<8x128xf32>,
    } else {
    }
    return
  }
  func.func @transform_0(%arg0: i32, %arg1: i32) -> (i32, i32, i32) {
    %c0_i32 = arith.constant 0 : i32
    %0 = arith.minsi %arg1, %c0_i32 : i32
    %c0_i32_0 = arith.constant 0 : i32
    %c0_i32_1 = arith.constant 0 : i32
    return %0, %arg0, %c0_i32_0 : i32, i32, i32
  }
  func.func @transform_1(%arg0: i32, %arg1: i32) -> (i32, i32) {
    %c0_i32 = arith.constant 0 : i32
    %c0_i32_0 = arith.constant 0 : i32
    %c0_i32_1 = arith.constant 0 : i32
    return %c0_i32, %c0_i32_0 : i32, i32
  }
  func.func @transform_2(%arg0: i32, %arg1: i32) -> (i32, i32) {
    %c0_i32 = arith.constant 0 : i32
    %c0_i32_0 = arith.constant 0 : i32
    %c0_i32_1 = arith.constant 0 : i32
    return %c0_i32, %c0_i32_0 : i32, i32
  }
  func.func @transform_3(%arg0: i32, %arg1: i32) -> (i32, i32) {
    %c0_i32 = arith.constant 0 : i32
    %c0_i32_0 = arith.constant 0 : i32
    %c0_i32_1 = arith.constant 0 : i32
    return %c0_i32, %c0_i32_0 : i32, i32
  }
  func.func @transform_4(%arg0: i32, %arg1: i32) -> (i32, i32, i32) {
    %c1_i32 = arith.constant 1 : i32
    %0 = arith.subi %arg1, %c1_i32 : i32
    %c0_i32 = arith.constant 0 : i32
    %1 = arith.maxsi %0, %c0_i32 : i32
    %c0_i32_0 = arith.constant 0 : i32
    %c0_i32_1 = arith.constant 0 : i32
    return %1, %arg0, %c0_i32_0 : i32, i32, i32
  }
  func.func @transform_5(%arg0: i32, %arg1: i32) -> (i32, i32) {
    %c0_i32 = arith.constant 0 : i32
    %c0_i32_0 = arith.constant 0 : i32
    return %arg0, %c0_i32 : i32, i32
  }
}

</mosaic_0001>

<bundles_post_ra>
// kernel: my_lstm_forward.1
= control target key start
LH: loop header
LB: loop body
LE: loop exit
PB: predicated region body
PF: predicated region fallthrough
CT: control target
= control target key end

     0   :  { %11 = vsyncpa [#allocation6], 0  ;;  %s5572_s18 = smov 0   ;;  %s5574_s19 = smov 0   ;;  %s7079_s0 = inlined_call_operand.vmem [shape: f32[8,8,16], index: 0, kind: input, shape index: {}]   ;;  %s7080_s1 = inlined_call_operand.vmem [shape: f32[16,512], index: 1, kind: input, shape index: {}]   ;;  %s7081_s2 = inlined_call_operand.vmem [shape: f32[128,512], index: 2, kind: input, shape index: {}]   ;;  %s7082_s3 = inlined_call_operand.vmem [shape: f32[1,512], index: 3, kind: input, shape index: {}]   ;;  %s7083_s4 = inlined_call_operand.vmem [shape: f32[8,8,128], index: 4, kind: output, shape index: {0}]   ;;  %s7084_s5 = inlined_call_operand.hbm [shape: f32[8,128], index: 5, kind: output, shape index: {1}]  }
   0x1   :  { %s5576_s20 = smov 0  }
   0x2 LB: > { %s4114_s21 = sadd.s32 4294967295, %s5536_s20   ;;  %s26_s22 = sadd.s32 1, %s5532_s19  ;;  %s5536_s20 = sphi %s5576_s20, %s17_s20   ;;  %s5532_s19 = sphi %s5574_s19, %s7087_s19   ;;  %s5528_s18 = sphi %s5572_s18, %s7086_s18  }
   0x3   : > { %p27_p0 = scmp.ge.s32.totalorder %s26_s22, 2  ;;  %p4120_p1 = scmp.ge.s32.totalorder %s5536_s20, 1 }
   0x4   : > { %p225_p2 = scmp.lt.s32.totalorder %s5536_s20, 3 }
   0x5   : > { %s7089_s22 = smov (%p27_p0, %s26_s22), 0 }
   0x6   : > { %p226_p3 = pnand %p4120_p1, %p225_p2 }
   0x7   : > { %p264_p4 = scmp.lt.s32.totalorder (!%p226_p3), %s5528_s18, 0  ;;  %s5595_s23 = sadd.s32 (!%p226_p3), 4294967295, %s5528_s18 }
   0x8   : > { %229 = sbr.rel (%p226_p3) target bundleno = 4375 (0x1117), region = 36  ;;  %p278_p5 = scmp.gt.s32.totalorder (!%p226_p3), %s5595_s23, 0 }
   0x9   : > { %p4126_p8 = scmp.ne.s32.totalorder (!%p226_p3), %s5528_s18, 0 }
   0xf   : > { %s265_s24 = scalar_select %p264_p4, %s5528_s18, 0 }
  0x10   : > { %s279_s25 = scalar_select %p278_p5, %s5595_s23, 0 }
  0x11   : > { %s4121_s26 = sshll.u32 %s265_s24, 3  ;;  %295 = sbr.rel (%p4126_p8) target bundleno = 270 (0x10e), region = 40  ;;  %v307_v0 = vld [vmem:[%s7080_s1 + $0x8] sm:$0xff] (!%p4126_p8)  ;;  %v309_v2 = vld [vmem:[%s7080_s1 + $0x18] sm:$0xff] (!%p4126_p8)  ;;  %v306_v5 = vld [vmem:[%s7080_s1] sm:$0xff] (!%p4126_p8)  ;;  %v5538_v7 = vmov (!%p4126_p8), 0.0   ;;  %v316_v21 = vlaneseq (!%p4126_p8) }
  0x12   : > { %p267_p6 = scmp.lt.s32.totalorder %s4121_s26, 7  ;;  %s4124_s27 = sshll.u32 %s279_s25, 3  ;;  %v311_v1 = vld [vmem:[%s7080_s1 + $0x28] sm:$0xff] (!%p4126_p8)  ;;  %v313_v4 = vld [vmem:[%s7080_s1 + $0x38] sm:$0xff] (!%p4126_p8)  ;;  %v310_v6 = vld [vmem:[%s7080_s1 + $0x20] sm:$0xff] (!%p4126_p8)  ;;  %296 = vst [vmem:[#allocation2] sm:$0xff] (!%p4126_p8), %v5538_v7  ;;  %425 = vmatprep.mubr.f32.mxu0 (!%p4126_p8), %v5538_v7  ;;  %538 = vmatprep.mubr.f32.mxu1 (!%p4126_p8), %v5538_v7 }
  0x13   : > { %p281_p7 = scmp.lt.s32.totalorder %s4124_s27, 7  ;;  %v4250_v3 = vpack.c.bf16 (!%p4126_p8), %v311_v1, %v307_v0  ;;  %297 = vst [vmem:[#allocation3] sm:$0xff] (!%p4126_p8), %v5538_v7  ;;  %v4254_v8 = vpack.c.bf16 (!%p4126_p8), %v313_v4, %v309_v2  ;;  %v4252_v9 = vpack.c.bf16 (!%p4126_p8), %v310_v6, %v306_v5  ;;  %v308_v10 = vld [vmem:[%s7080_s1 + $0x10] sm:$0xff] (!%p4126_p8)  ;;  %vm336_vm0 = vcmask (!%p4126_p8), 130048   ;;  %s588_s9 = ssub.s32 (!%p4126_p8), 0, %s5528_s18 }
  0x14   : > { %s7091_s26 = smov (!%p267_p6, %s4121_s26), 7  ;;  %v312_v11 = vld [vmem:[%s7080_s1 + $0x30] sm:$0xff] (!%p4126_p8)  ;;  %s4143_s11 = smin.u32 (!%p4126_p8), %s5528_s18, %s588_s9  ;;  %v317_v22 = vshrl.u32 (!%p4126_p8), %v316_v21, 7  ;;  %v314_v24 = vld [vmem:[%s7082_s3] sm:$0xf] (!%p4126_p8) }
  0x15   : > { %s7093_s27 = smov (!%p281_p7, %s4124_s27), 7  ;;  %s4122_s28 = sshll.u32 %s7091_s26, 3  ;;  %4251 = vmatprep.subr.bf16.mxu0 (!%p4126_p8), %v4250_v3  ;;  %v4256_v12 = vpack.c.bf16 (!%p4126_p8), %v312_v11, %v308_v10  ;;  %4255 = vmatprep.subr.bf16.mxu1 (!%p4126_p8), %v4254_v8 }
  0x16   : > { %s5605_s6 = scalar_lea.vmem %s7079_s0, %s4122_s28  ;;  %s4125_s7 = sshll.u32 %s7093_s27, 3  ;;  %4253 = vmatpush1.bf16.msra.mxu0 (!%p4126_p8), %v4252_v9  ;;  %v318_v23 = vsub.s32 (!%p4126_p8), 0, %v317_v22  ;;  %v326_v25 = vsub.s32 (!%p4126_p8), 2, %v317_v22  ;;  %v322_v26 = vsub.s32 (!%p4126_p8), 1, %v317_v22  ;;  %v330_v27 = vsub.s32 (!%p4126_p8), 3, %v317_v22 }
  0x17   : > { %s5610_s10 = scalar_lea.vmem %s7083_s4, %s4125_s7  ;;  %v298_v13 = vld [vmem:[%s5605_s6] sm:$0xff] (!%p4126_p8)  ;;  %4257 = vmatpush1.bf16.msra.mxu1 (!%p4126_p8), %v4256_v12  ;;  %v299_v14 = vld [vmem:[%s5605_s6 + $0x8] sm:$0xff] (!%p4126_p8)  ;;  %v300_v15 = vld [vmem:[%s5605_s6 + $0x10] sm:$0xff] (!%p4126_p8)  ;;  %s590_s12 = sand.u32 (!%p4126_p8), 1, %s4143_s11  }
  0x18   : > { %v301_v16 = vld [vmem:[%s5605_s6 + $0x18] sm:$0xff]  ;;  %v302_v17 = vld [vmem:[%s5605_s6 + $0x20] sm:$0xff]  ;;  %v303_v18 = vld [vmem:[%s5605_s6 + $0x28] sm:$0xff]  ;;  %s591_s13 = ssub.s32 0, %s590_s12  ;;  %v5668_v28 = vrot.slane %v314_v24, %v318_v23  ;;  %v5670_v29 = vrot.slane %v314_v24, %v326_v25  ;;  %v5672_v30 = vrot.slane %v314_v24, %v322_v26  ;;  %v5674_v31 = vrot.slane %v314_v24, %v330_v27 }
  0x19   : > { %4127 = vmatmul.mubr.msk.f32.vlgmr.msra.gmra.mrb[0].mxu0 %vm336_vm0, %v298_v13  ;;  %v304_v19 = vld [vmem:[%s5605_s6 + $0x30] sm:$0xff]  ;;  %v305_v20 = vld [vmem:[%s5605_s6 + $0x38] sm:$0xff]  ;;  %s7095_s13 = smov (!%p264_p4, %s591_s13), %s590_s12 }
  0x1a   : > { %4135 = vmatmul.mubr.msk.f32.vlgmr.msra.gmra.mrb[0].mxu1 %vm336_vm0, %v298_v13  ;;  %431 = vmatprep.mubr.f32.mxu0 %v5538_v7  ;;  %p4145_p9 = scmp.lt.s32.totalorder %s7095_s13, 0  ;;  %s597_s14 = sadd.s32 2, %s7095_s13 }
  0x1b   : > { %544 = vmatprep.mubr.f32.mxu1 %v5538_v7 }
  0x1c   : > { %s7097_s14 = smov (!%p4145_p9, %s597_s14), %s7095_s13 }
  0x1d   : > { %4128 = vmatmul.mubr.msk.f32.gmra.mrb[2].mxu0 %vm336_vm0, %v299_v14  ;;  %s4146_s15 = sshll.u32 %s7097_s14, 6 }
  0x1e   : > { %4136 = vmatmul.mubr.msk.f32.gmra.mrb[2].mxu1 %vm336_vm0, %v299_v14  ;;  %437 = vmatprep.mubr.f32.mxu0 %v5538_v7  ;;  %s600_s24 = sshra.s32 %s4146_s15, 3 }
  0x1f   : > { %550 = vmatprep.mubr.f32.mxu1 %v5538_v7  ;;  %s4232_s25 = sshll.u32 %s600_s24, 5 }
  0x20   : > { %s5679_s26 = scalar_lea.vmem [#allocation4], %s4232_s25 }
  0x21   : > { %4129 = vmatmul.mubr.msk.f32.gmra.mrb[4].mxu0 %vm336_vm0, %v300_v15 }
  0x22   : > { %4137 = vmatmul.mubr.msk.f32.gmra.mrb[4].mxu1 %vm336_vm0, %v300_v15  ;;  %443 = vmatprep.mubr.f32.mxu0 %v5538_v7 }
  0x23   : > { %556 = vmatprep.mubr.f32.mxu1 %v5538_v7 }
  0x25   : > { %4130 = vmatmul.mubr.msk.f32.gmra.mrb[6].mxu0 %vm336_vm0, %v301_v16 }
  0x26   : > { %4138 = vmatmul.mubr.msk.f32.gmra.mrb[6].mxu1 %vm336_vm0, %v301_v16  ;;  %449 = vmatprep.mubr.f32.mxu0 %v5538_v7 }
  0x27   : > { %562 = vmatprep.mubr.f32.mxu1 %v5538_v7 }
  0x29   : > { %4131 = vmatmul.mubr.msk.f32.gmra.mrb[8].mxu0 %vm336_vm0, %v302_v17 }
  0x2a   : > { %4139 = vmatmul.mubr.msk.f32.gmra.mrb[8].mxu1 %vm336_vm0, %v302_v17  ;;  %455 = vmatprep.mubr.f32.mxu0 %v5538_v7 }
  0x2b   : > { %568 = vmatprep.mubr.f32.mxu1 %v5538_v7 }
  0x2d   : > { %4132 = vmatmul.mubr.msk.f32.gmra.mrb[10].mxu0 %vm336_vm0, %v303_v18 }
  0x2e   : > { %4140 = vmatmul.mubr.msk.f32.gmra.mrb[10].mxu1 %vm336_vm0, %v303_v18  ;;  %461 = vmatprep.mubr.f32.mxu0 %v5538_v7 }
  0x2f   : > { %574 = vmatprep.mubr.f32.mxu1 %v5538_v7 }
  0x31   : > { %4133 = vmatmul.mubr.msk.f32.gmra.mrb[12].mxu0 %vm336_vm0, %v304_v19 }
  0x32   : > { %4141 = vmatmul.mubr.msk.f32.gmra.mrb[12].mxu1 %vm336_vm0, %v304_v19  ;;  %467 = vmatprep.mubr.f32.mxu0 %v5538_v7 }
  0x33   : > { %580 = vmatprep.mubr.f32.mxu1 %v5538_v7 }
  0x35   : > { %4134 = vmatmul.mubr.msk.f32.gmra.mrb[14].mxu0 %vm336_vm0, %v305_v20 }
  0x36   : > { %4142 = vmatmul.mubr.msk.f32.gmra.mrb[14].mxu1 %vm336_vm0, %v305_v20 }
  0xec   : > { %v427_v32 = vpop.f32.mrb[0].mxu0 }
  0xed   : > { %v428_v33 = vadd.f32 %v427_v32, %v5668_v28  ;;  %v540_v34 = vpop.f32.mrb[0].mxu1  ;;  %v429_v35 = vpop.f32.mrb[1].mxu0 }
  0xee   : > { %v541_v36 = vadd.f32 %v540_v34, %v5670_v29  ;;  %v430_v37 = vadd.f32 %v429_v35, %v5672_v30  ;;  %v542_v38 = vpop.f32.mrb[1].mxu1 }
  0xef   : > { %605 = vst [vmem:[%s5679_s26] sm:$0xff] %v428_v33  ;;  %v543_v39 = vadd.f32 %v542_v38, %v5674_v31 }
  0xf0   : > { %607 = vst [vmem:[%s5679_s26 + $0x10] sm:$0xff] %v541_v36  ;;  %606 = vst [vmem:[%s5679_s26 + $0x8] sm:$0xff] %v430_v37  ;;  %v433_v40 = vpop.f32.mrb[2].mxu0 }
  0xf1   : > { %608 = vst [vmem:[%s5679_s26 + $0x18] sm:$0xff] %v543_v39  ;;  %v434_v41 = vadd.f32 %v433_v40, %v5668_v28  ;;  %v546_v42 = vpop.f32.mrb[2].mxu1  ;;  %v435_v43 = vpop.f32.mrb[3].mxu0 }
  0xf2   : > { %v547_v44 = vadd.f32 %v546_v42, %v5670_v29  ;;  %v436_v45 = vadd.f32 %v435_v43, %v5672_v30  ;;  %v548_v46 = vpop.f32.mrb[3].mxu1 }
  0xf3   : > { %609 = vst [vmem:[%s5679_s26 + $0x20] sm:$0xff] %v434_v41  ;;  %v549_v47 = vadd.f32 %v548_v46, %v5674_v31 }
  0xf4   : > { %611 = vst [vmem:[%s5679_s26 + $0x30] sm:$0xff] %v547_v44  ;;  %610 = vst [vmem:[%s5679_s26 + $0x28] sm:$0xff] %v436_v45  ;;  %v439_v48 = vpop.f32.mrb[4].mxu0 }
  0xf5   : > { %612 = vst [vmem:[%s5679_s26 + $0x38] sm:$0xff] %v549_v47  ;;  %v440_v49 = vadd.f32 %v439_v48, %v5668_v28  ;;  %v552_v50 = vpop.f32.mrb[4].mxu1  ;;  %v441_v51 = vpop.f32.mrb[5].mxu0 }
  0xf6   : > { %v553_v52 = vadd.f32 %v552_v50, %v5670_v29  ;;  %v442_v53 = vadd.f32 %v441_v51, %v5672_v30  ;;  %v554_v54 = vpop.f32.mrb[5].mxu1 }
  0xf7   : > { %613 = vst [vmem:[%s5679_s26 + $0x40] sm:$0xff] %v440_v49  ;;  %v555_v55 = vadd.f32 %v554_v54, %v5674_v31 }
  0xf8   : > { %615 = vst [vmem:[%s5679_s26 + $0x50] sm:$0xff] %v553_v52  ;;  %614 = vst [vmem:[%s5679_s26 + $0x48] sm:$0xff] %v442_v53  ;;  %v445_v56 = vpop.f32.mrb[6].mxu0 }
  0xf9   : > { %616 = vst [vmem:[%s5679_s26 + $0x58] sm:$0xff] %v555_v55  ;;  %v446_v57 = vadd.f32 %v445_v56, %v5668_v28  ;;  %v558_v58 = vpop.f32.mrb[6].mxu1  ;;  %v447_v59 = vpop.f32.mrb[7].mxu0 }
  0xfa   : > { %v559_v60 = vadd.f32 %v558_v58, %v5670_v29  ;;  %v448_v61 = vadd.f32 %v447_v59, %v5672_v30  ;;  %v560_v62 = vpop.f32.mrb[7].mxu1 }
  0xfb   : > { %617 = vst [vmem:[%s5679_s26 + $0x60] sm:$0xff] %v446_v57  ;;  %v561_v63 = vadd.f32 %v560_v62, %v5674_v31 }
  0xfc   : > { %619 = vst [vmem:[%s5679_s26 + $0x70] sm:$0xff] %v559_v60  ;;  %618 = vst [vmem:[%s5679_s26 + $0x68] sm:$0xff] %v448_v61  ;;  %v451_v0 = vpop.f32.mrb[8].mxu0 }
  0xfd   : > { %620 = vst [vmem:[%s5679_s26 + $0x78] sm:$0xff] %v561_v63  ;;  %v452_v1 = vadd.f32 %v451_v0, %v5668_v28  ;;  %v564_v2 = vpop.f32.mrb[8].mxu1  ;;  %v453_v3 = vpop.f32.mrb[9].mxu0 }
  0xfe   : > { %v565_v4 = vadd.f32 %v564_v2, %v5670_v29  ;;  %v454_v5 = vadd.f32 %v453_v3, %v5672_v30  ;;  %v566_v6 = vpop.f32.mrb[9].mxu1 }
  0xff   : > { %621 = vst [vmem:[%s5679_s26 + $0x80] sm:$0xff] %v452_v1  ;;  %v567_v7 = vadd.f32 %v566_v6, %v5674_v31 }
 0x100   : > { %623 = vst [vmem:[%s5679_s26 + $0x90] sm:$0xff] %v565_v4  ;;  %622 = vst [vmem:[%s5679_s26 + $0x88] sm:$0xff] %v454_v5  ;;  %v457_v8 = vpop.f32.mrb[10].mxu0 }
 0x101   : > { %624 = vst [vmem:[%s5679_s26 + $0x98] sm:$0xff] %v567_v7  ;;  %v458_v9 = vadd.f32 %v457_v8, %v5668_v28  ;;  %v570_v10 = vpop.f32.mrb[10].mxu1  ;;  %v459_v11 = vpop.f32.mrb[11].mxu0 }
 0x102   : > { %v571_v12 = vadd.f32 %v570_v10, %v5670_v29  ;;  %v460_v13 = vadd.f32 %v459_v11, %v5672_v30  ;;  %v572_v14 = vpop.f32.mrb[11].mxu1 }
 0x103   : > { %625 = vst [vmem:[%s5679_s26 + $0xa0] sm:$0xff] %v458_v9  ;;  %v573_v15 = vadd.f32 %v572_v14, %v5674_v31 }
 0x104   : > { %627 = vst [vmem:[%s5679_s26 + $0xb0] sm:$0xff] %v571_v12  ;;  %626 = vst [vmem:[%s5679_s26 + $0xa8] sm:$0xff] %v460_v13  ;;  %v463_v16 = vpop.f32.mrb[12].mxu0 }
 0x105   : > { %628 = vst [vmem:[%s5679_s26 + $0xb8] sm:$0xff] %v573_v15  ;;  %v464_v17 = vadd.f32 %v463_v16, %v5668_v28  ;;  %v576_v18 = vpop.f32.mrb[12].mxu1  ;;  %v465_v19 = vpop.f32.mrb[13].mxu0 }
 0x106   : > { %v577_v20 = vadd.f32 %v576_v18, %v5670_v29  ;;  %v466_v21 = vadd.f32 %v465_v19, %v5672_v30  ;;  %v578_v22 = vpop.f32.mrb[13].mxu1 }
 0x107   : > { %629 = vst [vmem:[%s5679_s26 + $0xc0] sm:$0xff] %v464_v17  ;;  %v579_v23 = vadd.f32 %v578_v22, %v5674_v31 }
 0x108   : > { %631 = vst [vmem:[%s5679_s26 + $0xd0] sm:$0xff] %v577_v20  ;;  %630 = vst [vmem:[%s5679_s26 + $0xc8] sm:$0xff] %v466_v21  ;;  %v469_v24 = vpop.f32.mrb[14].mxu0 }
 0x109   : > { %632 = vst [vmem:[%s5679_s26 + $0xd8] sm:$0xff] %v579_v23  ;;  %v470_v25 = vadd.f32 %v469_v24, %v5668_v28  ;;  %v582_v26 = vpop.f32.mrb[14].mxu1  ;;  %v471_v27 = vpop.f32.mrb[15].mxu0 }
 0x10a   : > { %v583_v32 = vadd.f32 %v582_v26, %v5670_v29  ;;  %v472_v33 = vadd.f32 %v471_v27, %v5672_v30  ;;  %v584_v34 = vpop.f32.mrb[15].mxu1 }
 0x10b   : > { %633 = vst [vmem:[%s5679_s26 + $0xe0] sm:$0xff] %v470_v25  ;;  %v585_v35 = vadd.f32 %v584_v34, %v5674_v31 }
 0x10c   : > { %635 = vst [vmem:[%s5679_s26 + $0xf0] sm:$0xff] %v583_v32  ;;  %634 = vst [vmem:[%s5679_s26 + $0xe8] sm:$0xff] %v472_v33 }
 0x10d   : > { %636 = vst [vmem:[%s5679_s26 + $0xf8] sm:$0xff] %v585_v35 }
 0x10e PF: > { %p637_p10 = scmp.gt.s32.totalorder %s5528_s18, 0  ;;  %p638_p11 = scmp.lt.s32.totalorder %s5528_s18, 1 }
 0x110   : > { %p639_p12 = pnand %p638_p11, %p637_p10 }
 0x111   : > { %v652_v28 = vld [vmem:[%s7080_s1 + $0x8] sm:$0xff] (!%p639_p12)  ;;  %v654_v30 = vld [vmem:[%s7080_s1 + $0x18] sm:$0xff] (!%p639_p12)  ;;  %v651_v37 = vld [vmem:[%s7080_s1] sm:$0xff] (!%p639_p12)  ;;  %v5539_v39 = vmov (!%p639_p12), 0.0   ;;  %vm681_vm1 = vcmask (!%p639_p12), 130048   ;;  %s1048_s26 = ssub.s32 (!%p639_p12), 0, %s5595_s23 }
 0x112   : > { %642 = sbr.rel (%p639_p12) target bundleno = 2320 (0x910), region = 44  ;;  %v656_v29 = vld [vmem:[%s7080_s1 + $0x28] sm:$0xff] (!%p639_p12)  ;;  %v658_v36 = vld [vmem:[%s7080_s1 + $0x38] sm:$0xff] (!%p639_p12)  ;;  %v655_v38 = vld [vmem:[%s7080_s1 + $0x20] sm:$0xff] (!%p639_p12)  ;;  %770 = vmatprep.mubr.f32.mxu0 (!%p639_p12), %v5539_v39  ;;  %883 = vmatprep.mubr.f32.mxu1 (!%p639_p12), %v5539_v39  ;;  %s6151_s28 = smin.u32 (!%p639_p12), %s5595_s23, %s1048_s26 }
 0x113   : > { %v4258_v31 = vpack.c.bf16 (!%p639_p12), %v656_v29, %v652_v28  ;;  %v4262_v40 = vpack.c.bf16 (!%p639_p12), %v658_v36, %v654_v30  ;;  %v4260_v41 = vpack.c.bf16 (!%p639_p12), %v655_v38, %v651_v37  ;;  %v653_v42 = vld [vmem:[%s7080_s1 + $0x10] sm:$0xff] (!%p639_p12)  ;;  %v643_v44 = vld [vmem:[%s5605_s6] sm:$0xff] (!%p639_p12)  ;;  %v983_v46 = vld [vmem:[%s7081_s2 + $0x8] sm:$0xff] (!%p639_p12)  ;;  %s1050_s29 = sand.u32 (!%p639_p12), 1, %s6151_s28   ;;  %p1047_p0 = scmp.lt.s32.totalorder (!%p639_p12), %s5595_s23, 0 }
 0x114   : > { %v657_v43 = vld [vmem:[%s7080_s1 + $0x30] sm:$0xff] (!%p639_p12)  ;;  %v987_v47 = vld [vmem:[%s7081_s2 + $0x28] sm:$0xff] (!%p639_p12)  ;;  %v985_v48 = vld [vmem:[%s7081_s2 + $0x18] sm:$0xff] (!%p639_p12)  ;;  %s1051_s7 = ssub.s32 (!%p639_p12), 0, %s1050_s29 }
 0x115   : > { %4259 = vmatprep.subr.bf16.mxu0 (!%p639_p12), %v4258_v31  ;;  %v4264_v45 = vpack.c.bf16 (!%p639_p12), %v657_v43, %v653_v42  ;;  %4263 = vmatprep.subr.bf16.mxu1 (!%p639_p12), %v4262_v40  ;;  %v5780_v49 = vpack.c.bf16 (!%p639_p12), %v987_v47, %v983_v46  ;;  %v989_v50 = vld [vmem:[%s7081_s2 + $0x38] sm:$0xff] (!%p639_p12)  ;;  %v982_v51 = vld [vmem:[%s7081_s2] sm:$0xff] (!%p639_p12)  ;;  %v984_v55 = vld [vmem:[%s7081_s2 + $0x10] sm:$0xff] (!%p639_p12) }
 0x116   : > { %4261 = vmatpush1.bf16.msra.mxu0 (!%p639_p12), %v4260_v41  ;;  %v986_v52 = vld [vmem:[%s7081_s2 + $0x20] sm:$0xff] (!%p639_p12)  ;;  %v5791_v53 = vpack.c.bf16 (!%p639_p12), %v989_v50, %v985_v48  ;;  %v988_v56 = vld [vmem:[%s7081_s2 + $0x30] sm:$0xff] (!%p639_p12)  ;;  %v991_v58 = vld [vmem:[%s7081_s2 + $0x48] sm:$0xff] (!%p639_p12) }
 0x117   : > { %4265 = vmatpush1.bf16.msra.mxu1 (!%p639_p12), %v4264_v45  ;;  %v5793_v54 = vpack.c.bf16 (!%p639_p12), %v986_v52, %v982_v51  ;;  %4267 = vmatprep.subr.bf16.mxu0 (!%p639_p12), %v5780_v49  ;;  %v5802_v57 = vpack.c.bf16 (!%p639_p12), %v988_v56, %v984_v55  ;;  %v995_v59 = vld [vmem:[%s7081_s2 + $0x68] sm:$0xff] (!%p639_p12)  ;;  %v993_v60 = vld [vmem:[%s7081_s2 + $0x58] sm:$0xff] (!%p639_p12)  ;;  %v990_v63 = vld [vmem:[%s7081_s2 + $0x40] sm:$0xff] (!%p639_p12) }
 0x118   : > { %4299 = vmatprep.subr.bf16.mxu1 (!%p639_p12), %v5791_v53  ;;  %v5815_v61 = vpack.c.bf16 (!%p639_p12), %v995_v59, %v991_v58  ;;  %v997_v62 = vld [vmem:[%s7081_s2 + $0x78] sm:$0xff] (!%p639_p12)  ;;  %v994_v0 = vld [vmem:[%s7081_s2 + $0x60] sm:$0xff] (!%p639_p12)  ;;  %v644_v1 = vld [vmem:[%s5605_s6 + $0x8] sm:$0xff] (!%p639_p12) }
 0x119   : > { %4149 = vmatmul.mubr.msk.f32.vlgmr.msra.gmra.mrb[0].mxu0 %vm681_vm1, %v643_v44  ;;  %v5829_v2 = vpack.c.bf16 %v997_v62, %v993_v60  ;;  %v5831_v3 = vpack.c.bf16 %v994_v0, %v990_v63  ;;  %v992_v4 = vld [vmem:[%s7081_s2 + $0x50] sm:$0xff]  ;;  %v999_v7 = vld [vmem:[%s7081_s2 + $0x88] sm:$0xff]  ;;  %v1001_v9 = vld [vmem:[%s7081_s2 + $0x98] sm:$0xff]  ;;  %s7103_s7 = smov (!%p1047_p0, %s1051_s7), %s1050_s29 }
 0x11a   : > { %4157 = vmatmul.mubr.msk.f32.vlgmr.msra.gmra.mrb[0].mxu1 %vm681_vm1, %v643_v44  ;;  %4269 = vmatpush1.bf16.msra.mxu0 %v5793_v54  ;;  %v996_v5 = vld [vmem:[%s7081_s2 + $0x70] sm:$0xff]  ;;  %v1003_v8 = vld [vmem:[%s7081_s2 + $0xa8] sm:$0xff]  ;;  %v1005_v11 = vld [vmem:[%s7081_s2 + $0xb8] sm:$0xff]  ;;  %p4174_p1 = scmp.lt.s32.totalorder %s7103_s7, 0  ;;  %s1057_s8 = sadd.s32 2, %s7103_s7 }
 0x11b   : > { %4301 = vmatpush1.bf16.msra.mxu1 %v5802_v57  ;;  %776 = vmatprep.mubr.f32.mxu0 %v5539_v39  ;;  %v5841_v6 = vpack.c.bf16 %v996_v5, %v992_v4  ;;  %v5854_v10 = vpack.c.bf16 %v1003_v8, %v999_v7  ;;  %v998_v12 = vld [vmem:[%s7081_s2 + $0x80] sm:$0xff]  ;;  %v645_v14 = vld [vmem:[%s5605_s6 + $0x10] sm:$0xff]  ;;  %v5868_v15 = vpack.c.bf16 %v1005_v11, %v1001_v9  ;;  %v1007_v19 = vld [vmem:[%s7081_s2 + $0xc8] sm:$0xff] }
 0x11c   : > { %889 = vmatprep.mubr.f32.mxu1 %v5539_v39  ;;  %4271 = vmatprep.subr.bf16.mxu0 %v5815_v61  ;;  %v1002_v13 = vld [vmem:[%s7081_s2 + $0xa0] sm:$0xff]  ;;  %v1000_v16 = vld [vmem:[%s7081_s2 + $0x90] sm:$0xff]  ;;  %v1011_v20 = vld [vmem:[%s7081_s2 + $0xe8] sm:$0xff]  ;;  %s7105_s8 = smov (!%p4174_p1, %s1057_s8), %s7103_s7 }
 0x11d   : > { %4150 = vmatmul.mubr.msk.f32.gmra.mrb[2].mxu0 %vm681_vm1, %v644_v1  ;;  %4303 = vmatprep.subr.bf16.mxu1 %v5829_v2  ;;  %v1004_v17 = vld [vmem:[%s7081_s2 + $0xb0] sm:$0xff]  ;;  %v5878_v18 = vpack.c.bf16 %v1002_v13, %v998_v12  ;;  %v1009_v21 = vld [vmem:[%s7081_s2 + $0xd8] sm:$0xff]  ;;  %v1006_v24 = vld [vmem:[%s7081_s2 + $0xc0] sm:$0xff]  ;;  %v5904_v26 = vpack.c.bf16 %v1011_v20, %v1007_v19  ;;  %s6199_s9 = sshll.u32 %s7105_s8, 6 }
 0x11e   : > { %4158 = vmatmul.mubr.msk.f32.gmra.mrb[2].mxu1 %vm681_vm1, %v644_v1  ;;  %4273 = vmatpush1.bf16.msra.mxu0 %v5831_v3  ;;  %v5891_v22 = vpack.c.bf16 %v1004_v17, %v1000_v16  ;;  %v1013_v23 = vld [vmem:[%s7081_s2 + $0xf8] sm:$0xff]  ;;  %v1010_v25 = vld [vmem:[%s7081_s2 + $0xe0] sm:$0xff]  ;;  %v1008_v27 = vld [vmem:[%s7081_s2 + $0xd0] sm:$0xff]  ;;  %s1062_s11 = sshra.s32 %s6199_s9, 3  ;;  %s1412_s17 = sadd.s32 16, %s6199_s9 }
 0x11f   : > { %4305 = vmatpush1.bf16.msra.mxu1 %v5841_v6  ;;  %782 = vmatprep.mubr.f32.mxu0 %v5539_v39  ;;  %v1012_v32 = vld [vmem:[%s7081_s2 + $0xf0] sm:$0xff]  ;;  %v5914_v33 = vpack.c.bf16 %v1013_v23, %v1009_v21  ;;  %v1015_v34 = vld [vmem:[%s7081_s2 + $0x108] sm:$0xff]  ;;  %v646_v28 = vld [vmem:[%s5605_s6 + $0x18] sm:$0xff]  ;;  %v5925_v29 = vpack.c.bf16 %v1010_v25, %v1006_v24  ;;  %s1413_s24 = sshra.s32 %s1412_s17, 3  ;;  %s1764_s7 = sadd.s32 32, %s6199_s9 }
 0x120   : > { %895 = vmatprep.mubr.f32.mxu1 %v5539_v39  ;;  %4275 = vmatprep.subr.bf16.mxu0 %v5854_v10  ;;  %v1019_v35 = vld [vmem:[%s7081_s2 + $0x128] sm:$0xff]  ;;  %v1017_v30 = vld [vmem:[%s7081_s2 + $0x118] sm:$0xff]  ;;  %v5935_v36 = vpack.c.bf16 %v1012_v32, %v1008_v27  ;;  %v1014_v37 = vld [vmem:[%s7081_s2 + $0x100] sm:$0xff]  ;;  %s1765_s8 = sshra.s32 %s1764_s7, 3 }
 0x121   : > { %4151 = vmatmul.mubr.msk.f32.gmra.mrb[4].mxu0 %vm681_vm1, %v645_v14  ;;  %4307 = vmatprep.subr.bf16.mxu1 %v5868_v15  ;;  %v1021_v31 = vld [vmem:[%s7081_s2 + $0x138] sm:$0xff]  ;;  %v1018_v38 = vld [vmem:[%s7081_s2 + $0x120] sm:$0xff]  ;;  %v5945_v40 = vpack.c.bf16 %v1019_v35, %v1015_v34  ;;  %v1016_v41 = vld [vmem:[%s7081_s2 + $0x110] sm:$0xff] }
 0x122   : > { %4159 = vmatmul.mubr.msk.f32.gmra.mrb[4].mxu1 %vm681_vm1, %v645_v14  ;;  %4277 = vmatpush1.bf16.msra.mxu0 %v5878_v18  ;;  %v1020_v42 = vld [vmem:[%s7081_s2 + $0x130] sm:$0xff]  ;;  %v5955_v43 = vpack.c.bf16 %v1021_v31, %v1017_v30  ;;  %v1023_v44 = vld [vmem:[%s7081_s2 + $0x148] sm:$0xff]  ;;  %v647_v46 = vld [vmem:[%s5605_s6 + $0x20] sm:$0xff]  ;;  %v5966_v47 = vpack.c.bf16 %v1018_v38, %v1014_v37 }
 0x123   : > { %4309 = vmatpush1.bf16.msra.mxu1 %v5891_v22  ;;  %788 = vmatprep.mubr.f32.mxu0 %v5539_v39  ;;  %v1027_v45 = vld [vmem:[%s7081_s2 + $0x168] sm:$0xff]  ;;  %v1025_v48 = vld [vmem:[%s7081_s2 + $0x158] sm:$0xff]  ;;  %v5976_v51 = vpack.c.bf16 %v1020_v42, %v1016_v41  ;;  %v1022_v52 = vld [vmem:[%s7081_s2 + $0x140] sm:$0xff]  ;;  %v661_v41 = vlaneseq }
 0x124   : > { %901 = vmatprep.mubr.f32.mxu1 %v5539_v39  ;;  %4279 = vmatprep.subr.bf16.mxu0 %v5904_v26  ;;  %v1029_v50 = vld [vmem:[%s7081_s2 + $0x178] sm:$0xff]  ;;  %v1026_v55 = vld [vmem:[%s7081_s2 + $0x160] sm:$0xff]  ;;  %v5986_v56 = vpack.c.bf16 %v1027_v45, %v1023_v44  ;;  %v1024_v58 = vld [vmem:[%s7081_s2 + $0x150] sm:$0xff] }
 0x125   : > { %4152 = vmatmul.mubr.msk.f32.gmra.mrb[6].mxu0 %vm681_vm1, %v646_v28  ;;  %4311 = vmatprep.subr.bf16.mxu1 %v5914_v33  ;;  %v1028_v59 = vld [vmem:[%s7081_s2 + $0x170] sm:$0xff]  ;;  %v5996_v60 = vpack.c.bf16 %v1029_v50, %v1025_v48  ;;  %v1031_v62 = vld [vmem:[%s7081_s2 + $0x188] sm:$0xff]  ;;  %v6007_v1 = vpack.c.bf16 %v1026_v55, %v1022_v52  ;;  %v1033_v4 = vld [vmem:[%s7081_s2 + $0x198] sm:$0xff]  ;;  %v662_v42 = vshrl.u32 %v661_v41, 7 }
 0x126   : > { %4160 = vmatmul.mubr.msk.f32.gmra.mrb[6].mxu1 %vm681_vm1, %v646_v28  ;;  %4281 = vmatpush1.bf16.msra.mxu0 %v5925_v29  ;;  %v1035_v63 = vld [vmem:[%s7081_s2 + $0x1a8] sm:$0xff]  ;;  %v1037_v5 = vld [vmem:[%s7081_s2 + $0x1b8] sm:$0xff]  ;;  %v6017_v7 = vpack.c.bf16 %v1028_v59, %v1024_v58  ;;  %v1030_v8 = vld [vmem:[%s7081_s2 + $0x180] sm:$0xff] }
 0x127   : > { %4313 = vmatpush1.bf16.msra.mxu1 %v5935_v36  ;;  %794 = vmatprep.mubr.f32.mxu0 %v5539_v39  ;;  %v648_v0 = vld [vmem:[%s5605_s6 + $0x28] sm:$0xff]  ;;  %v1034_v9 = vld [vmem:[%s7081_s2 + $0x1a0] sm:$0xff]  ;;  %v6027_v11 = vpack.c.bf16 %v1035_v63, %v1031_v62  ;;  %v1032_v12 = vld [vmem:[%s7081_s2 + $0x190] sm:$0xff]  ;;  %v6037_v14 = vpack.c.bf16 %v1037_v5, %v1033_v4  ;;  %v663_v44 = vsub.s32 0, %v662_v42  ;;  %v671_v48 = vsub.s32 2, %v662_v42 }
 0x128   : > { %907 = vmatprep.mubr.f32.mxu1 %v5539_v39  ;;  %4283 = vmatprep.subr.bf16.mxu0 %v5945_v40  ;;  %v1036_v13 = vld [vmem:[%s7081_s2 + $0x1b0] sm:$0xff]  ;;  %v1039_v16 = vld [vmem:[%s7081_s2 + $0x1c8] sm:$0xff]  ;;  %v6048_v20 = vpack.c.bf16 %v1034_v9, %v1030_v8  ;;  %v1041_v21 = vld [vmem:[%s7081_s2 + $0x1d8] sm:$0xff]  ;;  %v675_v50 = vsub.s32 3, %v662_v42 }
 0x129   : > { %4153 = vmatmul.mubr.msk.f32.gmra.mrb[8].mxu0 %vm681_vm1, %v647_v46  ;;  %4315 = vmatprep.subr.bf16.mxu1 %v5955_v43  ;;  %v1043_v17 = vld [vmem:[%s7081_s2 + $0x1e8] sm:$0xff]  ;;  %v649_v19 = vld [vmem:[%s5605_s6 + $0x30] sm:$0xff]  ;;  %v1045_v23 = vld [vmem:[%s7081_s2 + $0x1f8] sm:$0xff]  ;;  %v6058_v24 = vpack.c.bf16 %v1036_v13, %v1032_v12 }
 0x12a   : > { %4161 = vmatmul.mubr.msk.f32.gmra.mrb[8].mxu1 %vm681_vm1, %v647_v46  ;;  %4285 = vmatpush1.bf16.msra.mxu0 %v5966_v47  ;;  %v1038_v25 = vld [vmem:[%s7081_s2 + $0x1c0] sm:$0xff]  ;;  %v6068_v32 = vpack.c.bf16 %v1043_v17, %v1039_v16  ;;  %v1040_v34 = vld [vmem:[%s7081_s2 + $0x1d0] sm:$0xff]  ;;  %v6078_v28 = vpack.c.bf16 %v1045_v23, %v1041_v21  ;;  %v650_v30 = vld [vmem:[%s5605_s6 + $0x38] sm:$0xff]  ;;  %s933_s6 = ssub.s32 0, %s5528_s18  ;;  %v667_v46 = vsub.s32 1, %v662_v42 }
 0x12b   : > { %4317 = vmatpush1.bf16.msra.mxu1 %v5976_v51  ;;  %800 = vmatprep.mubr.f32.mxu0 %v5539_v39  ;;  %v1042_v27 = vld [vmem:[%s7081_s2 + $0x1e0] sm:$0xff]  ;;  %v1044_v35 = vld [vmem:[%s7081_s2 + $0x1f0] sm:$0xff]  ;;  %s4165_s12 = smin.u32 %s5528_s18, %s933_s6  ;;  %s4234_s6 = sshll.u32 %s1062_s11, 5 }
 0x12c   : > { %913 = vmatprep.mubr.f32.mxu1 %v5539_v39  ;;  %4287 = vmatprep.subr.bf16.mxu0 %v5986_v56  ;;  %v6083_v31 = vpack.c.bf16 %v1042_v27, %v1038_v25  ;;  %v6087_v37 = vpack.c.bf16 %v1044_v35, %v1040_v34  ;;  %v1060_v38 = vld [vmem:[#allocation2] sm:$0xff]  ;;  %s935_s13 = sand.u32 1, %s4165_s12   ;;  %s1066_s12 = scalar_lea.vmem [#allocation4], %s4234_s6 }
 0x12d   : > { %4154 = vmatmul.mubr.msk.f32.gmra.mrb[10].mxu0 %vm681_vm1, %v648_v0  ;;  %4319 = vmatprep.subr.bf16.mxu1 %v5996_v60  ;;  %s936_s14 = ssub.s32 0, %s935_s13  ;;  %v659_v45 = vld [vmem:[%s7082_s3] sm:$0xf]  ;;  %s4238_s11 = sshll.u32 %s1765_s8, 5 }
 0x12e   : > { %4162 = vmatmul.mubr.msk.f32.gmra.mrb[10].mxu1 %vm681_vm1, %v648_v0  ;;  %4289 = vmatpush1.bf16.msra.mxu0 %v6007_v1  ;;  %s7099_s14 = smov (!%p264_p4, %s936_s14), %s935_s13  ;;  %v6142_v52 = vrot.slane %v659_v45, %v663_v44  ;;  %v6144_v55 = vrot.slane %v659_v45, %v667_v46  ;;  %v6146_v58 = vrot.slane %v659_v45, %v671_v48  ;;  %s1236_s13 = sadd.s32 8, %s6199_s9 }
 0x12f   : > { %4321 = vmatpush1.bf16.msra.mxu1 %v6017_v7  ;;  %806 = vmatprep.mubr.f32.mxu0 %v5539_v39  ;;  %p4167_p13 = scmp.lt.s32.totalorder %s7099_s14, 0  ;;  %s942_s15 = sadd.s32 2, %s7099_s14  ;;  %v6148_v59 = vrot.slane %v659_v45, %v675_v50 }
 0x130   : > { %919 = vmatprep.mubr.f32.mxu1 %v5539_v39  ;;  %4291 = vmatprep.subr.bf16.mxu0 %v6027_v11  ;;  %s1769_s6 = scalar_lea.vmem [#allocation4], %s4238_s11 }
 0x131   : > { %4155 = vmatmul.mubr.msk.f32.gmra.mrb[12].mxu0 %vm681_vm1, %v649_v19  ;;  %4323 = vmatprep.subr.bf16.mxu1 %v6037_v14  ;;  %s7101_s15 = smov (!%p4167_p13, %s942_s15), %s7099_s14  ;;  %s1237_s14 = sshra.s32 %s1236_s13, 3 }
 0x132   : > { %4163 = vmatmul.mubr.msk.f32.gmra.mrb[12].mxu1 %vm681_vm1, %v649_v19  ;;  %4293 = vmatpush1.bf16.msra.mxu0 %v6048_v20  ;;  %s4168_s16 = sshll.u32 %s7101_s15, 6  ;;  %s4235_s15 = sshll.u32 %s1237_s14, 5 }
 0x133   : > { %4325 = vmatpush1.bf16.msra.mxu1 %v6058_v24  ;;  %812 = vmatprep.mubr.f32.mxu0 %v5539_v39  ;;  %s945_s25 = sshra.s32 %s4168_s16, 3  ;;  %s1241_s16 = scalar_lea.vmem [#allocation4], %s4235_s15 }
 0x134   : > { %925 = vmatprep.mubr.f32.mxu1 %v5539_v39  ;;  %4295 = vmatprep.subr.bf16.mxu0 %v6068_v32  ;;  %s4233_s27 = sshll.u32 %s945_s25, 5  ;;  %s4236_s25 = sshll.u32 %s1413_s24, 5 }
 0x135   : > { %4156 = vmatmul.mubr.msk.f32.gmra.mrb[14].mxu0 %vm681_vm1, %v650_v30  ;;  %4327 = vmatprep.subr.bf16.mxu1 %v6078_v28  ;;  %s6157_s30 = scalar_lea.vmem [#allocation4], %s4233_s27  ;;  %s1417_s26 = scalar_lea.vmem [#allocation4], %s4236_s25 }
 0x136   : > { %4164 = vmatmul.mubr.msk.f32.gmra.mrb[14].mxu1 %vm681_vm1, %v650_v30  ;;  %4297 = vmatpush1.bf16.msra.mxu0 %v6083_v31  ;;  %s1588_s27 = sadd.s32 24, %s6199_s9 }
 0x137   : > { %4329 = vmatpush1.bf16.msra.mxu1 %v6087_v37  ;;  %1135 = vmatprep.mubr.f32.mxu0 %v5539_v39  ;;  %s1589_s28 = sshra.s32 %s1588_s27, 3 }
 0x138   : > { %1206 = vmatprep.mubr.f32.mxu1 %v5539_v39  ;;  %4331 = vmatprep.subr.bf16.mxu0 %v5780_v49  ;;  %s4237_s29 = sshll.u32 %s1589_s28, 5 }
 0x139   : > { %1136 = vmatmul.mubr.f32.vlgmr.msra.gmra.mrb[16].mxu0 %v1060_v38  ;;  %4363 = vmatprep.subr.bf16.mxu1 %v5791_v53 }
 0x13a   : > { %1207 = vmatmul.mubr.f32.vlgmr.msra.gmra.mrb[16].mxu1 %v1060_v38  ;;  %4333 = vmatpush1.bf16.msra.mxu0 %v5793_v54 }
 0x13b   : > { %4365 = vmatpush1.bf16.msra.mxu1 %v5802_v57  ;;  %4335 = vmatprep.subr.bf16.mxu0 %v5815_v61 }
 0x13c   : > { %4367 = vmatprep.subr.bf16.mxu1 %v5829_v2  ;;  %1310 = vmatprep.mubr.f32.mxu0 %v5539_v39 }
 0x13d   : > { %1381 = vmatprep.mubr.f32.mxu1 %v5539_v39 }
 0x13e   : > { %4337 = vmatpush1.bf16.msra.mxu0 %v5831_v3 }
 0x13f   : > { %4369 = vmatpush1.bf16.msra.mxu1 %v5841_v6  ;;  %4339 = vmatprep.subr.bf16.mxu0 %v5854_v10 }
 0x140   : > { %4371 = vmatprep.subr.bf16.mxu1 %v5868_v15 }
 0x142   : > { %4341 = vmatpush1.bf16.msra.mxu0 %v5878_v18 }
 0x143   : > { %4373 = vmatpush1.bf16.msra.mxu1 %v5891_v22  ;;  %4343 = vmatprep.subr.bf16.mxu0 %v5904_v26 }
 0x144   : > { %4375 = vmatprep.subr.bf16.mxu1 %v5914_v33 }
 0x146   : > { %4345 = vmatpush1.bf16.msra.mxu0 %v5925_v29 }
 0x147   : > { %4377 = vmatpush1.bf16.msra.mxu1 %v5935_v36  ;;  %4347 = vmatprep.subr.bf16.mxu0 %v5945_v40 }
 0x148   : > { %4379 = vmatprep.subr.bf16.mxu1 %v5955_v43 }
 0x14a   : > { %4349 = vmatpush1.bf16.msra.mxu0 %v5966_v47 }
 0x14b   : > { %4381 = vmatpush1.bf16.msra.mxu1 %v5976_v51  ;;  %4351 = vmatprep.subr.bf16.mxu0 %v5986_v56 }
 0x14c   : > { %4383 = vmatprep.subr.bf16.mxu1 %v5996_v60 }
 0x14e   : > { %4353 = vmatpush1.bf16.msra.mxu0 %v6007_v1 }
 0x14f   : > { %4385 = vmatpush1.bf16.msra.mxu1 %v6017_v7  ;;  %4355 = vmatprep.subr.bf16.mxu0 %v6027_v11 }
 0x150   : > { %4387 = vmatprep.subr.bf16.mxu1 %v6037_v14 }
 0x152   : > { %4357 = vmatpush1.bf16.msra.mxu0 %v6048_v20 }
 0x153   : > { %4389 = vmatpush1.bf16.msra.mxu1 %v6058_v24  ;;  %4359 = vmatprep.subr.bf16.mxu0 %v6068_v32 }
 0x154   : > { %4391 = vmatprep.subr.bf16.mxu1 %v6078_v28 }
 0x156   : > { %4361 = vmatpush1.bf16.msra.mxu0 %v6083_v31 }
 0x157   : > { %4393 = vmatpush1.bf16.msra.mxu1 %v6087_v37  ;;  %4395 = vmatprep.subr.bf16.mxu0 %v5780_v49 }
 0x158   : > { %4427 = vmatprep.subr.bf16.mxu1 %v5791_v53 }
 0x1ec   : > { %v772_v62 = vpop.f32.mrb[0].mxu0 }
 0x1ed   : > { %v773_v63 = vadd.f32 %v772_v62, %v6142_v52  ;;  %v774_v0 = vpop.f32.mrb[1].mxu0  ;;  %v885_v4 = vpop.f32.mrb[0].mxu1 }
 0x1ee   : > { %v775_v5 = vadd.f32 %v774_v0, %v6144_v55  ;;  %v886_v8 = vadd.f32 %v885_v4, %v6146_v58  ;;  %v887_v9 = vpop.f32.mrb[1].mxu1 }
 0x1ef   : > { %950 = vst [vmem:[%s6157_s30] sm:$0xff] %v773_v63  ;;  %v888_v12 = vadd.f32 %v887_v9, %v6148_v59 }
 0x1f0   : > { %951 = vst [vmem:[%s6157_s30 + $0x8] sm:$0xff] %v775_v5  ;;  %v778_v13 = vpop.f32.mrb[2].mxu0  ;;  %952 = vst [vmem:[%s6157_s30 + $0x10] sm:$0xff] %v886_v8 }
 0x1f1   : > { %v779_v16 = vadd.f32 %v778_v13, %v6142_v52  ;;  %v780_v17 = vpop.f32.mrb[3].mxu0  ;;  %953 = vst [vmem:[%s6157_s30 + $0x18] sm:$0xff] %v888_v12  ;;  %v891_v19 = vpop.f32.mrb[2].mxu1 }
 0x1f2   : > { %v781_v21 = vadd.f32 %v780_v17, %v6144_v55  ;;  %v892_v23 = vadd.f32 %v891_v19, %v6146_v58  ;;  %v893_v25 = vpop.f32.mrb[3].mxu1 }
 0x1f3   : > { %954 = vst [vmem:[%s6157_s30 + $0x20] sm:$0xff] %v779_v16  ;;  %v894_v27 = vadd.f32 %v893_v25, %v6148_v59 }
 0x1f4   : > { %955 = vst [vmem:[%s6157_s30 + $0x28] sm:$0xff] %v781_v21  ;;  %v784_v34 = vpop.f32.mrb[4].mxu0  ;;  %956 = vst [vmem:[%s6157_s30 + $0x30] sm:$0xff] %v892_v23 }
 0x1f5   : > { %v785_v35 = vadd.f32 %v784_v34, %v6142_v52  ;;  %v786_v30 = vpop.f32.mrb[5].mxu0  ;;  %957 = vst [vmem:[%s6157_s30 + $0x38] sm:$0xff] %v894_v27  ;;  %v897_v38 = vpop.f32.mrb[4].mxu1 }
 0x1f6   : > { %v787_v41 = vadd.f32 %v786_v30, %v6144_v55  ;;  %v898_v42 = vadd.f32 %v897_v38, %v6146_v58  ;;  %v899_v44 = vpop.f32.mrb[5].mxu1 }
 0x1f7   : > { %958 = vst [vmem:[%s6157_s30 + $0x40] sm:$0xff] %v785_v35  ;;  %v900_v45 = vadd.f32 %v899_v44, %v6148_v59 }
 0x1f8   : > { %959 = vst [vmem:[%s6157_s30 + $0x48] sm:$0xff] %v787_v41  ;;  %v790_v46 = vpop.f32.mrb[6].mxu0  ;;  %960 = vst [vmem:[%s6157_s30 + $0x50] sm:$0xff] %v898_v42 }
 0x1f9   : > { %v791_v48 = vadd.f32 %v790_v46, %v6142_v52  ;;  %v792_v50 = vpop.f32.mrb[7].mxu0  ;;  %961 = vst [vmem:[%s6157_s30 + $0x58] sm:$0xff] %v900_v45  ;;  %v903_v62 = vpop.f32.mrb[6].mxu1 }
 0x1fa   : > { %v793_v63 = vadd.f32 %v792_v50, %v6144_v55  ;;  %v904_v0 = vadd.f32 %v903_v62, %v6146_v58  ;;  %v905_v4 = vpop.f32.mrb[7].mxu1 }
 0x1fb   : > { %962 = vst [vmem:[%s6157_s30 + $0x60] sm:$0xff] %v791_v48  ;;  %v906_v5 = vadd.f32 %v905_v4, %v6148_v59 }
 0x1fc   : > { %963 = vst [vmem:[%s6157_s30 + $0x68] sm:$0xff] %v793_v63  ;;  %v796_v8 = vpop.f32.mrb[8].mxu0  ;;  %964 = vst [vmem:[%s6157_s30 + $0x70] sm:$0xff] %v904_v0 }
 0x1fd   : > { %v797_v9 = vadd.f32 %v796_v8, %v6142_v52  ;;  %v798_v12 = vpop.f32.mrb[9].mxu0  ;;  %965 = vst [vmem:[%s6157_s30 + $0x78] sm:$0xff] %v906_v5  ;;  %v909_v13 = vpop.f32.mrb[8].mxu1 }
 0x1fe   : > { %v799_v16 = vadd.f32 %v798_v12, %v6144_v55  ;;  %v910_v17 = vadd.f32 %v909_v13, %v6146_v58  ;;  %v911_v19 = vpop.f32.mrb[9].mxu1 }
 0x1ff   : > { %966 = vst [vmem:[%s6157_s30 + $0x80] sm:$0xff] %v797_v9  ;;  %v912_v21 = vadd.f32 %v911_v19, %v6148_v59 }
 0x200   : > { %967 = vst [vmem:[%s6157_s30 + $0x88] sm:$0xff] %v799_v16  ;;  %v802_v23 = vpop.f32.mrb[10].mxu0  ;;  %968 = vst [vmem:[%s6157_s30 + $0x90] sm:$0xff] %v910_v17 }
 0x201   : > { %v803_v25 = vadd.f32 %v802_v23, %v6142_v52  ;;  %v804_v27 = vpop.f32.mrb[11].mxu0  ;;  %969 = vst [vmem:[%s6157_s30 + $0x98] sm:$0xff] %v912_v21  ;;  %v915_v34 = vpop.f32.mrb[10].mxu1 }
 0x202   : > { %v805_v35 = vadd.f32 %v804_v27, %v6144_v55  ;;  %v916_v30 = vadd.f32 %v915_v34, %v6146_v58  ;;  %v917_v38 = vpop.f32.mrb[11].mxu1 }
 0x203   : > { %970 = vst [vmem:[%s6157_s30 + $0xa0] sm:$0xff] %v803_v25  ;;  %v918_v41 = vadd.f32 %v917_v38, %v6148_v59 }
 0x204   : > { %971 = vst [vmem:[%s6157_s30 + $0xa8] sm:$0xff] %v805_v35  ;;  %v808_v42 = vpop.f32.mrb[12].mxu0  ;;  %972 = vst [vmem:[%s6157_s30 + $0xb0] sm:$0xff] %v916_v30 }
 0x205   : > { %v809_v44 = vadd.f32 %v808_v42, %v6142_v52  ;;  %v810_v45 = vpop.f32.mrb[13].mxu0  ;;  %973 = vst [vmem:[%s6157_s30 + $0xb8] sm:$0xff] %v918_v41  ;;  %v921_v46 = vpop.f32.mrb[12].mxu1 }
 0x206   : > { %v811_v48 = vadd.f32 %v810_v45, %v6144_v55  ;;  %v922_v50 = vadd.f32 %v921_v46, %v6146_v58  ;;  %v923_v62 = vpop.f32.mrb[13].mxu1 }
 0x207   : > { %974 = vst [vmem:[%s6157_s30 + $0xc0] sm:$0xff] %v809_v44  ;;  %v924_v63 = vadd.f32 %v923_v62, %v6148_v59 }
 0x208   : > { %975 = vst [vmem:[%s6157_s30 + $0xc8] sm:$0xff] %v811_v48  ;;  %v814_v0 = vpop.f32.mrb[14].mxu0  ;;  %976 = vst [vmem:[%s6157_s30 + $0xd0] sm:$0xff] %v922_v50  ;;  %v1061_v50 = vld [vmem:[#allocation3] sm:$0xff] }
 0x209   : > { %v815_v4 = vadd.f32 %v814_v0, %v6142_v52  ;;  %v816_v5 = vpop.f32.mrb[15].mxu0  ;;  %977 = vst [vmem:[%s6157_s30 + $0xd8] sm:$0xff] %v924_v63  ;;  %v927_v8 = vpop.f32.mrb[14].mxu1 }
 0x20a   : > { %v817_v9 = vadd.f32 %v816_v5, %v6144_v55  ;;  %v928_v12 = vadd.f32 %v927_v8, %v6146_v58  ;;  %v929_v13 = vpop.f32.mrb[15].mxu1 }
 0x20b   : > { %978 = vst [vmem:[%s6157_s30 + $0xe0] sm:$0xff] %v815_v4  ;;  %v930_v16 = vadd.f32 %v929_v13, %v6148_v59 }
 0x20c   : > { %979 = vst [vmem:[%s6157_s30 + $0xe8] sm:$0xff] %v817_v9  ;;  %980 = vst [vmem:[%s6157_s30 + $0xf0] sm:$0xff] %v928_v12  ;;  %v1137_v19 = vpop.f32.mrb[16].mxu0 }
 0x20d   : > { %v1208_v23 = vpop.f32.mrb[16].mxu1  ;;  %v1139_v25 = vpop.f32.mrb[17].mxu0 }
 0x20e   : > { %v1210_v34 = vpop.f32.mrb[17].mxu1 }
 0x213   : > { %v1067_v17 = vld [vmem:[%s1066_s12] sm:$0xff] }
 0x214   : > { %981 = vst [vmem:[%s6157_s30 + $0xf8] sm:$0xff] %v930_v16  ;;  %v1213_v21 = vadd.f32 %v1137_v19, %v1067_v17  ;;  %s1593_s30 = scalar_lea.vmem [#allocation4], %s4237_s29 }
 0x216   : > { %v1217_v35 = vmul.f32 0.5, %v1213_v21 }
 0x218   : > { %5324 = vtanh.f32 %v1217_v35 }
 0x21b   : > { %v1068_v52 = vld [vmem:[%s1066_s12 + $0x8] sm:$0xff]  ;;  %v1069_v55 = vld [vmem:[%s1066_s12 + $0x10] sm:$0xff]  ;;  %v1070_v38 = vld [vmem:[%s1066_s12 + $0x18] sm:$0xff]  ;;  %s1940_s12 = sadd.s32 40, %s6199_s9 }
 0x21c   : > { %v1214_v27 = vadd.f32 %v1139_v25, %v1068_v52  ;;  %v1215_v58 = vadd.f32 %v1208_v23, %v1069_v55  ;;  %v1216_v59 = vadd.f32 %v1210_v34, %v1070_v38  ;;  %v1242_v17 = vld [vmem:[%s1241_s16] sm:$0xff]  ;;  %v1244_v21 = vld [vmem:[%s1241_s16 + $0x10] sm:$0xff]  ;;  %v1245_v35 = vld [vmem:[%s1241_s16 + $0x18] sm:$0xff]  ;;  %s1941_s13 = sshra.s32 %s1940_s12, 3 }
 0x21d   : > { %s4239_s14 = sshll.u32 %s1941_s13, 5 }
 0x21e   : > { %v1221_v30 = vmul.f32 0.5, %v1214_v27  ;;  %v1226_v41 = vmul.f32 0.5, %v1216_v59  ;;  %v1243_v27 = vld [vmem:[%s1241_s16 + $0x8] sm:$0xff]  ;;  %s1945_s15 = scalar_lea.vmem [#allocation4], %s4239_s14  ;;  %s2116_s16 = sadd.s32 48, %s6199_s9 }
 0x21f   : > { %s2117_s17 = sshra.s32 %s2116_s16, 3 }
 0x220   : > { %5326 = vtanh.f32 %v1221_v30  ;;  %s4240_s24 = sshll.u32 %s2117_s17, 5 }
 0x221   : > { %5328 = vtanh.f32 %v1215_v58  ;;  %s2121_s25 = scalar_lea.vmem [#allocation4], %s4240_s24 }
 0x222   : > { %v5325_v42 = vpop.eup %5324  ;;  %5330 = vtanh.f32 %v1226_v41 }
 0x223   : > { %v1219_v45 = vmul.f32 0.5, %v5325_v42 }
 0x225   : > { %v1220_v48 = vadd.f32 0.5, %v1219_v45 }
 0x22a   : > { %v5327_v44 = vpop.eup %5326 }
 0x22b   : > { %v1223_v46 = vmul.f32 0.5, %v5327_v44  ;;  %v5329_v62 = vpop.eup %5328 }
 0x22c   : > { %v1231_v0 = vmul.f32 %v5329_v62, %v1220_v48  ;;  %v5331_v8 = vpop.eup %5330 }
 0x22d   : > { %v1224_v63 = vadd.f32 0.5, %v1223_v46  ;;  %v1228_v9 = vmul.f32 0.5, %v5331_v8 }
 0x22f   : > { %v1230_v4 = vmul.f32 %v1224_v63, %v1061_v50  ;;  %v1229_v12 = vadd.f32 0.5, %v1228_v9 }
 0x231   : > { %v6227_v5 = vadd.f32 %v1231_v0, %v1230_v4 }
 0x233   : > { %5332 = vtanh.f32 %v6227_v5 }
 0x23d   : > { %v5333_v13 = vpop.eup %5332 }
 0x23e   : > { %v1234_v16 = vmul.f32 %v5333_v13, %v1229_v12 }
 0x240   : > { %1235 = vst [vmem:[%s5610_s10] sm:$0xff] %v1234_v16  ;;  %1311 = vmatmul.mubr.f32.vlgmr.msra.gmra.mrb[18].mxu0 %v1234_v16  ;;  %1382 = vmatmul.mubr.f32.vlgmr.msra.gmra.mrb[18].mxu1 %v1234_v16 }
 0x241   : > { %4397 = vmatpush1.bf16.msra.mxu0 %v5793_v54  ;;  %4429 = vmatpush1.bf16.msra.mxu1 %v5802_v57 }
 0x242   : > { %4399 = vmatprep.subr.bf16.mxu0 %v5815_v61  ;;  %4431 = vmatprep.subr.bf16.mxu1 %v5829_v2 }
 0x243   : > { %1486 = vmatprep.mubr.f32.mxu0 %v5539_v39  ;;  %1557 = vmatprep.mubr.f32.mxu1 %v5539_v39 }
 0x245   : > { %4401 = vmatpush1.bf16.msra.mxu0 %v5831_v3  ;;  %4433 = vmatpush1.bf16.msra.mxu1 %v5841_v6 }
 0x246   : > { %4403 = vmatprep.subr.bf16.mxu0 %v5854_v10  ;;  %4435 = vmatprep.subr.bf16.mxu1 %v5868_v15 }
 0x249   : > { %4405 = vmatpush1.bf16.msra.mxu0 %v5878_v18  ;;  %4437 = vmatpush1.bf16.msra.mxu1 %v5891_v22 }
 0x24a   : > { %4407 = vmatprep.subr.bf16.mxu0 %v5904_v26  ;;  %4439 = vmatprep.subr.bf16.mxu1 %v5914_v33 }
 0x24d   : > { %4409 = vmatpush1.bf16.msra.mxu0 %v5925_v29  ;;  %4441 = vmatpush1.bf16.msra.mxu1 %v5935_v36 }
 0x24e   : > { %4411 = vmatprep.subr.bf16.mxu0 %v5945_v40  ;;  %4443 = vmatprep.subr.bf16.mxu1 %v5955_v43 }
 0x251   : > { %4413 = vmatpush1.bf16.msra.mxu0 %v5966_v47  ;;  %4445 = vmatpush1.bf16.msra.mxu1 %v5976_v51 }
 0x252   : > { %4415 = vmatprep.subr.bf16.mxu0 %v5986_v56  ;;  %4447 = vmatprep.subr.bf16.mxu1 %v5996_v60 }
 0x255   : > { %4417 = vmatpush1.bf16.msra.mxu0 %v6007_v1  ;;  %4449 = vmatpush1.bf16.msra.mxu1 %v6017_v7 }
 0x256   : > { %4419 = vmatprep.subr.bf16.mxu0 %v6027_v11  ;;  %4451 = vmatprep.subr.bf16.mxu1 %v6037_v14 }
 0x259   : > { %4421 = vmatpush1.bf16.msra.mxu0 %v6048_v20  ;;  %4453 = vmatpush1.bf16.msra.mxu1 %v6058_v24 }
 0x25a   : > { %4423 = vmatprep.subr.bf16.mxu0 %v6068_v32  ;;  %4455 = vmatprep.subr.bf16.mxu1 %v6078_v28 }
 0x25d   : > { %4425 = vmatpush1.bf16.msra.mxu0 %v6083_v31  ;;  %4457 = vmatpush1.bf16.msra.mxu1 %v6087_v37 }
 0x25e   : > { %4459 = vmatprep.subr.bf16.mxu0 %v5780_v49  ;;  %4491 = vmatprep.subr.bf16.mxu1 %v5791_v53 }
 0x313   : > { %v1312_v19 = vpop.f32.mrb[18].mxu0  ;;  %v1383_v23 = vpop.f32.mrb[18].mxu1 }
 0x314   : > { %v1388_v52 = vadd.f32 %v1312_v19, %v1242_v17  ;;  %v1390_v25 = vadd.f32 %v1383_v23, %v1244_v21  ;;  %v1314_v34 = vpop.f32.mrb[19].mxu0  ;;  %v1385_v55 = vpop.f32.mrb[19].mxu1  ;;  %v1420_v19 = vld [vmem:[%s1417_s26 + $0x10] sm:$0xff] }
 0x315   : > { %v1389_v30 = vadd.f32 %v1314_v34, %v1243_v27  ;;  %v1391_v58 = vadd.f32 %v1385_v55, %v1245_v35  ;;  %v1421_v34 = vld [vmem:[%s1417_s26 + $0x18] sm:$0xff] }
 0x316   : > { %v1392_v38 = vmul.f32 0.5, %v1388_v52 }
 0x317   : > { %v1396_v59 = vmul.f32 0.5, %v1389_v30  ;;  %v1401_v41 = vmul.f32 0.5, %v1391_v58 }
 0x318   : > { %5334 = vtanh.f32 %v1392_v38 }
 0x319   : > { %5336 = vtanh.f32 %v1396_v59 }
 0x31a   : > { %5338 = vtanh.f32 %v1390_v25  ;;  %v1419_v25 = vld [vmem:[%s1417_s26 + $0x8] sm:$0xff] }
 0x31b   : > { %5340 = vtanh.f32 %v1401_v41 }
 0x322   : > { %v5335_v42 = vpop.eup %5334 }
 0x323   : > { %v5337_v44 = vpop.eup %5336  ;;  %v1394_v45 = vmul.f32 0.5, %v5335_v42 }
 0x324   : > { %v1398_v46 = vmul.f32 0.5, %v5337_v44  ;;  %v5339_v50 = vpop.eup %5338 }
 0x325   : > { %v1395_v48 = vadd.f32 0.5, %v1394_v45  ;;  %v5341_v8 = vpop.eup %5340 }
 0x326   : > { %v1399_v62 = vadd.f32 0.5, %v1398_v46  ;;  %v1403_v9 = vmul.f32 0.5, %v5341_v8 }
 0x327   : > { %v1406_v63 = vmul.f32 %v5339_v50, %v1395_v48 }
 0x328   : > { %v1405_v0 = vmul.f32 %v1399_v62, %v6227_v5  ;;  %v1404_v12 = vadd.f32 0.5, %v1403_v9  ;;  %v1418_v5 = vld [vmem:[%s1417_s26] sm:$0xff]  ;;  %s2292_s26 = sadd.s32 56, %s6199_s9 }
 0x329   : > { %s2293_s27 = sshra.s32 %s2292_s26, 3 }
 0x32a   : > { %v6267_v4 = vadd.f32 %v1406_v63, %v1405_v0  ;;  %s4241_s28 = sshll.u32 %s2293_s27, 5 }
 0x32b   : > { %s2297_s29 = scalar_lea.vmem [#allocation4], %s4241_s28 }
 0x32c   : > { %5342 = vtanh.f32 %v6267_v4 }
 0x336   : > { %v5343_v13 = vpop.eup %5342 }
 0x337   : > { %v1409_v16 = vmul.f32 %v5343_v13, %v1404_v12 }
 0x339   : > { %4180 = vst [vmem:[%s5610_s10 + $0x8] sm:$0xff] %v1409_v16  ;;  %1487 = vmatmul.mubr.f32.vlgmr.msra.gmra.mrb[20].mxu0 %v1409_v16  ;;  %1558 = vmatmul.mubr.f32.vlgmr.msra.gmra.mrb[20].mxu1 %v1409_v16 }
 0x33a   : > { %4461 = vmatpush1.bf16.msra.mxu0 %v5793_v54  ;;  %4493 = vmatpush1.bf16.msra.mxu1 %v5802_v57 }
 0x33b   : > { %4463 = vmatprep.subr.bf16.mxu0 %v5815_v61  ;;  %4495 = vmatprep.subr.bf16.mxu1 %v5829_v2 }
 0x33c   : > { %1662 = vmatprep.mubr.f32.mxu0 %v5539_v39  ;;  %1733 = vmatprep.mubr.f32.mxu1 %v5539_v39 }
 0x33e   : > { %4465 = vmatpush1.bf16.msra.mxu0 %v5831_v3  ;;  %4497 = vmatpush1.bf16.msra.mxu1 %v5841_v6 }
 0x33f   : > { %4467 = vmatprep.subr.bf16.mxu0 %v5854_v10  ;;  %4499 = vmatprep.subr.bf16.mxu1 %v5868_v15 }
 0x342   : > { %4469 = vmatpush1.bf16.msra.mxu0 %v5878_v18  ;;  %4501 = vmatpush1.bf16.msra.mxu1 %v5891_v22 }
 0x343   : > { %4471 = vmatprep.subr.bf16.mxu0 %v5904_v26  ;;  %4503 = vmatprep.subr.bf16.mxu1 %v5914_v33 }
 0x346   : > { %4473 = vmatpush1.bf16.msra.mxu0 %v5925_v29  ;;  %4505 = vmatpush1.bf16.msra.mxu1 %v5935_v36 }
 0x347   : > { %4475 = vmatprep.subr.bf16.mxu0 %v5945_v40  ;;  %4507 = vmatprep.subr.bf16.mxu1 %v5955_v43 }
 0x34a   : > { %4477 = vmatpush1.bf16.msra.mxu0 %v5966_v47  ;;  %4509 = vmatpush1.bf16.msra.mxu1 %v5976_v51 }
 0x34b   : > { %4479 = vmatprep.subr.bf16.mxu0 %v5986_v56  ;;  %4511 = vmatprep.subr.bf16.mxu1 %v5996_v60 }
 0x34e   : > { %4481 = vmatpush1.bf16.msra.mxu0 %v6007_v1  ;;  %4513 = vmatpush1.bf16.msra.mxu1 %v6017_v7 }
 0x34f   : > { %4483 = vmatprep.subr.bf16.mxu0 %v6027_v11  ;;  %4515 = vmatprep.subr.bf16.mxu1 %v6037_v14 }
 0x352   : > { %4485 = vmatpush1.bf16.msra.mxu0 %v6048_v20  ;;  %4517 = vmatpush1.bf16.msra.mxu1 %v6058_v24 }
 0x353   : > { %4487 = vmatprep.subr.bf16.mxu0 %v6068_v32  ;;  %4519 = vmatprep.subr.bf16.mxu1 %v6078_v28 }
 0x356   : > { %4489 = vmatpush1.bf16.msra.mxu0 %v6083_v31  ;;  %4521 = vmatpush1.bf16.msra.mxu1 %v6087_v37 }
 0x357   : > { %4523 = vmatprep.subr.bf16.mxu0 %v5780_v49  ;;  %4555 = vmatprep.subr.bf16.mxu1 %v5791_v53 }
 0x40c   : > { %v1488_v17 = vpop.f32.mrb[20].mxu0  ;;  %v1559_v21 = vpop.f32.mrb[20].mxu1 }
 0x40d   : > { %v1564_v23 = vadd.f32 %v1488_v17, %v1418_v5  ;;  %v1566_v52 = vadd.f32 %v1559_v21, %v1420_v19  ;;  %v1490_v27 = vpop.f32.mrb[21].mxu0  ;;  %v1561_v35 = vpop.f32.mrb[21].mxu1  ;;  %v1596_v17 = vld [vmem:[%s1593_s30 + $0x10] sm:$0xff] }
 0x40e   : > { %v1565_v55 = vadd.f32 %v1490_v27, %v1419_v25  ;;  %v1567_v30 = vadd.f32 %v1561_v35, %v1421_v34  ;;  %v1597_v27 = vld [vmem:[%s1593_s30 + $0x18] sm:$0xff] }
 0x40f   : > { %v1568_v58 = vmul.f32 0.5, %v1564_v23 }
 0x410   : > { %v1572_v38 = vmul.f32 0.5, %v1565_v55  ;;  %v1577_v59 = vmul.f32 0.5, %v1567_v30 }
 0x411   : > { %5344 = vtanh.f32 %v1568_v58 }
 0x412   : > { %5346 = vtanh.f32 %v1572_v38 }
 0x413   : > { %5348 = vtanh.f32 %v1566_v52  ;;  %v1595_v52 = vld [vmem:[%s1593_s30 + $0x8] sm:$0xff] }
 0x414   : > { %5350 = vtanh.f32 %v1577_v59 }
 0x41b   : > { %v5345_v41 = vpop.eup %5344 }
 0x41c   : > { %v5347_v42 = vpop.eup %5346  ;;  %v1570_v44 = vmul.f32 0.5, %v5345_v41 }
 0x41d   : > { %v1574_v45 = vmul.f32 0.5, %v5347_v42  ;;  %v5349_v48 = vpop.eup %5348 }
 0x41e   : > { %v1571_v46 = vadd.f32 0.5, %v1570_v44  ;;  %v5351_v8 = vpop.eup %5350 }
 0x41f   : > { %v1575_v50 = vadd.f32 0.5, %v1574_v45  ;;  %v1579_v9 = vmul.f32 0.5, %v5351_v8 }
 0x420   : > { %v1582_v62 = vmul.f32 %v5349_v48, %v1571_v46 }
 0x421   : > { %v1581_v63 = vmul.f32 %v1575_v50, %v6267_v4  ;;  %v1580_v12 = vadd.f32 0.5, %v1579_v9  ;;  %v1594_v4 = vld [vmem:[%s1593_s30] sm:$0xff] }
 0x423   : > { %v6307_v0 = vadd.f32 %v1582_v62, %v1581_v63 }
 0x425   : > { %5352 = vtanh.f32 %v6307_v0 }
 0x42f   : > { %v5353_v13 = vpop.eup %5352 }
 0x430   : > { %v1585_v16 = vmul.f32 %v5353_v13, %v1580_v12 }
 0x432   : > { %4183 = vst [vmem:[%s5610_s10 + $0x10] sm:$0xff] %v1585_v16  ;;  %1663 = vmatmul.mubr.f32.vlgmr.msra.gmra.mrb[22].mxu0 %v1585_v16  ;;  %1734 = vmatmul.mubr.f32.vlgmr.msra.gmra.mrb[22].mxu1 %v1585_v16 }
 0x433   : > { %4525 = vmatpush1.bf16.msra.mxu0 %v5793_v54  ;;  %4557 = vmatpush1.bf16.msra.mxu1 %v5802_v57 }
 0x434   : > { %4527 = vmatprep.subr.bf16.mxu0 %v5815_v61  ;;  %4559 = vmatprep.subr.bf16.mxu1 %v5829_v2 }
 0x435   : > { %1838 = vmatprep.mubr.f32.mxu0 %v5539_v39  ;;  %1909 = vmatprep.mubr.f32.mxu1 %v5539_v39 }
 0x437   : > { %4529 = vmatpush1.bf16.msra.mxu0 %v5831_v3  ;;  %4561 = vmatpush1.bf16.msra.mxu1 %v5841_v6 }
 0x438   : > { %4531 = vmatprep.subr.bf16.mxu0 %v5854_v10  ;;  %4563 = vmatprep.subr.bf16.mxu1 %v5868_v15 }
 0x43b   : > { %4533 = vmatpush1.bf16.msra.mxu0 %v5878_v18  ;;  %4565 = vmatpush1.bf16.msra.mxu1 %v5891_v22 }
 0x43c   : > { %4535 = vmatprep.subr.bf16.mxu0 %v5904_v26  ;;  %4567 = vmatprep.subr.bf16.mxu1 %v5914_v33 }
 0x43f   : > { %4537 = vmatpush1.bf16.msra.mxu0 %v5925_v29  ;;  %4569 = vmatpush1.bf16.msra.mxu1 %v5935_v36 }
 0x440   : > { %4539 = vmatprep.subr.bf16.mxu0 %v5945_v40  ;;  %4571 = vmatprep.subr.bf16.mxu1 %v5955_v43 }
 0x443   : > { %4541 = vmatpush1.bf16.msra.mxu0 %v5966_v47  ;;  %4573 = vmatpush1.bf16.msra.mxu1 %v5976_v51 }
 0x444   : > { %4543 = vmatprep.subr.bf16.mxu0 %v5986_v56  ;;  %4575 = vmatprep.subr.bf16.mxu1 %v5996_v60 }
 0x447   : > { %4545 = vmatpush1.bf16.msra.mxu0 %v6007_v1  ;;  %4577 = vmatpush1.bf16.msra.mxu1 %v6017_v7 }
 0x448   : > { %4547 = vmatprep.subr.bf16.mxu0 %v6027_v11  ;;  %4579 = vmatprep.subr.bf16.mxu1 %v6037_v14 }
 0x44b   : > { %4549 = vmatpush1.bf16.msra.mxu0 %v6048_v20  ;;  %4581 = vmatpush1.bf16.msra.mxu1 %v6058_v24 }
 0x44c   : > { %4551 = vmatprep.subr.bf16.mxu0 %v6068_v32  ;;  %4583 = vmatprep.subr.bf16.mxu1 %v6078_v28 }
 0x44f   : > { %4553 = vmatpush1.bf16.msra.mxu0 %v6083_v31  ;;  %4585 = vmatpush1.bf16.msra.mxu1 %v6087_v37 }
 0x450   : > { %4587 = vmatprep.subr.bf16.mxu0 %v5780_v49  ;;  %4619 = vmatprep.subr.bf16.mxu1 %v5791_v53 }
 0x505   : > { %v1664_v5 = vpop.f32.mrb[22].mxu0  ;;  %v1735_v19 = vpop.f32.mrb[22].mxu1 }
 0x506   : > { %v1740_v21 = vadd.f32 %v1664_v5, %v1594_v4  ;;  %v1742_v23 = vadd.f32 %v1735_v19, %v1596_v17  ;;  %v1666_v25 = vpop.f32.mrb[23].mxu0  ;;  %v1737_v34 = vpop.f32.mrb[23].mxu1  ;;  %v1772_v5 = vld [vmem:[%s1769_s6 + $0x10] sm:$0xff] }
 0x507   : > { %v1741_v35 = vadd.f32 %v1666_v25, %v1595_v52  ;;  %v1743_v55 = vadd.f32 %v1737_v34, %v1597_v27  ;;  %v1773_v25 = vld [vmem:[%s1769_s6 + $0x18] sm:$0xff] }
 0x508   : > { %v1744_v30 = vmul.f32 0.5, %v1740_v21 }
 0x509   : > { %v1748_v58 = vmul.f32 0.5, %v1741_v35  ;;  %v1753_v38 = vmul.f32 0.5, %v1743_v55 }
 0x50a   : > { %5354 = vtanh.f32 %v1744_v30 }
 0x50b   : > { %5356 = vtanh.f32 %v1748_v58 }
 0x50c   : > { %5358 = vtanh.f32 %v1742_v23  ;;  %v1771_v23 = vld [vmem:[%s1769_s6 + $0x8] sm:$0xff] }
 0x50d   : > { %5360 = vtanh.f32 %v1753_v38 }
 0x514   : > { %v5355_v59 = vpop.eup %5354 }
 0x515   : > { %v5357_v41 = vpop.eup %5356  ;;  %v1746_v42 = vmul.f32 0.5, %v5355_v59 }
 0x516   : > { %v1750_v44 = vmul.f32 0.5, %v5357_v41  ;;  %v5359_v46 = vpop.eup %5358 }
 0x517   : > { %v1747_v45 = vadd.f32 0.5, %v1746_v42  ;;  %v5361_v8 = vpop.eup %5360 }
 0x518   : > { %v1751_v48 = vadd.f32 0.5, %v1750_v44  ;;  %v1755_v9 = vmul.f32 0.5, %v5361_v8 }
 0x519   : > { %v1758_v50 = vmul.f32 %v5359_v46, %v1747_v45 }
 0x51a   : > { %v1757_v62 = vmul.f32 %v1751_v48, %v6307_v0  ;;  %v1756_v12 = vadd.f32 0.5, %v1755_v9  ;;  %v1770_v0 = vld [vmem:[%s1769_s6] sm:$0xff] }
 0x51c   : > { %v6347_v63 = vadd.f32 %v1758_v50, %v1757_v62 }
 0x51e   : > { %5362 = vtanh.f32 %v6347_v63 }
 0x528   : > { %v5363_v13 = vpop.eup %5362 }
 0x529   : > { %v1761_v16 = vmul.f32 %v5363_v13, %v1756_v12 }
 0x52b   : > { %4186 = vst [vmem:[%s5610_s10 + $0x18] sm:$0xff] %v1761_v16  ;;  %1839 = vmatmul.mubr.f32.vlgmr.msra.gmra.mrb[24].mxu0 %v1761_v16  ;;  %1910 = vmatmul.mubr.f32.vlgmr.msra.gmra.mrb[24].mxu1 %v1761_v16 }
 0x52c   : > { %4589 = vmatpush1.bf16.msra.mxu0 %v5793_v54  ;;  %4621 = vmatpush1.bf16.msra.mxu1 %v5802_v57 }
 0x52d   : > { %4591 = vmatprep.subr.bf16.mxu0 %v5815_v61  ;;  %4623 = vmatprep.subr.bf16.mxu1 %v5829_v2 }
 0x52e   : > { %2014 = vmatprep.mubr.f32.mxu0 %v5539_v39  ;;  %2085 = vmatprep.mubr.f32.mxu1 %v5539_v39 }
 0x530   : > { %4593 = vmatpush1.bf16.msra.mxu0 %v5831_v3  ;;  %4625 = vmatpush1.bf16.msra.mxu1 %v5841_v6 }
 0x531   : > { %4595 = vmatprep.subr.bf16.mxu0 %v5854_v10  ;;  %4627 = vmatprep.subr.bf16.mxu1 %v5868_v15 }
 0x534   : > { %4597 = vmatpush1.bf16.msra.mxu0 %v5878_v18  ;;  %4629 = vmatpush1.bf16.msra.mxu1 %v5891_v22 }
 0x535   : > { %4599 = vmatprep.subr.bf16.mxu0 %v5904_v26  ;;  %4631 = vmatprep.subr.bf16.mxu1 %v5914_v33 }
 0x538   : > { %4601 = vmatpush1.bf16.msra.mxu0 %v5925_v29  ;;  %4633 = vmatpush1.bf16.msra.mxu1 %v5935_v36 }
 0x539   : > { %4603 = vmatprep.subr.bf16.mxu0 %v5945_v40  ;;  %4635 = vmatprep.subr.bf16.mxu1 %v5955_v43 }
 0x53c   : > { %4605 = vmatpush1.bf16.msra.mxu0 %v5966_v47  ;;  %4637 = vmatpush1.bf16.msra.mxu1 %v5976_v51 }
 0x53d   : > { %4607 = vmatprep.subr.bf16.mxu0 %v5986_v56  ;;  %4639 = vmatprep.subr.bf16.mxu1 %v5996_v60 }
 0x540   : > { %4609 = vmatpush1.bf16.msra.mxu0 %v6007_v1  ;;  %4641 = vmatpush1.bf16.msra.mxu1 %v6017_v7 }
 0x541   : > { %4611 = vmatprep.subr.bf16.mxu0 %v6027_v11  ;;  %4643 = vmatprep.subr.bf16.mxu1 %v6037_v14 }
 0x544   : > { %4613 = vmatpush1.bf16.msra.mxu0 %v6048_v20  ;;  %4645 = vmatpush1.bf16.msra.mxu1 %v6058_v24 }
 0x545   : > { %4615 = vmatprep.subr.bf16.mxu0 %v6068_v32  ;;  %4647 = vmatprep.subr.bf16.mxu1 %v6078_v28 }
 0x548   : > { %4617 = vmatpush1.bf16.msra.mxu0 %v6083_v31  ;;  %4649 = vmatpush1.bf16.msra.mxu1 %v6087_v37 }
 0x549   : > { %4651 = vmatprep.subr.bf16.mxu0 %v5780_v49  ;;  %4683 = vmatprep.subr.bf16.mxu1 %v5791_v53 }
 0x5fe   : > { %v1840_v4 = vpop.f32.mrb[24].mxu0  ;;  %v1911_v17 = vpop.f32.mrb[24].mxu1 }
 0x5ff   : > { %v1916_v19 = vadd.f32 %v1840_v4, %v1770_v0  ;;  %v1918_v21 = vadd.f32 %v1911_v17, %v1772_v5  ;;  %v1842_v52 = vpop.f32.mrb[25].mxu0  ;;  %v1913_v27 = vpop.f32.mrb[25].mxu1  ;;  %v1948_v4 = vld [vmem:[%s1945_s15 + $0x10] sm:$0xff] }
 0x600   : > { %v1917_v34 = vadd.f32 %v1842_v52, %v1771_v23  ;;  %v1919_v35 = vadd.f32 %v1913_v27, %v1773_v25  ;;  %v1949_v52 = vld [vmem:[%s1945_s15 + $0x18] sm:$0xff] }
 0x601   : > { %v1920_v55 = vmul.f32 0.5, %v1916_v19 }
 0x602   : > { %v1924_v30 = vmul.f32 0.5, %v1917_v34  ;;  %v1929_v58 = vmul.f32 0.5, %v1919_v35 }
 0x603   : > { %5364 = vtanh.f32 %v1920_v55 }
 0x604   : > { %5366 = vtanh.f32 %v1924_v30 }
 0x605   : > { %5368 = vtanh.f32 %v1918_v21  ;;  %v1947_v21 = vld [vmem:[%s1945_s15 + $0x8] sm:$0xff] }
 0x606   : > { %5370 = vtanh.f32 %v1929_v58 }
 0x60d   : > { %v5365_v38 = vpop.eup %5364 }
 0x60e   : > { %v5367_v59 = vpop.eup %5366  ;;  %v1922_v41 = vmul.f32 0.5, %v5365_v38 }
 0x60f   : > { %v1926_v42 = vmul.f32 0.5, %v5367_v59  ;;  %v5369_v45 = vpop.eup %5368 }
 0x610   : > { %v1923_v44 = vadd.f32 0.5, %v1922_v41  ;;  %v5371_v8 = vpop.eup %5370 }
 0x611   : > { %v1927_v46 = vadd.f32 0.5, %v1926_v42  ;;  %v1931_v9 = vmul.f32 0.5, %v5371_v8 }
 0x612   : > { %v1934_v48 = vmul.f32 %v5369_v45, %v1923_v44 }
 0x613   : > { %v1933_v50 = vmul.f32 %v1927_v46, %v6347_v63  ;;  %v1932_v12 = vadd.f32 0.5, %v1931_v9  ;;  %v1946_v63 = vld [vmem:[%s1945_s15] sm:$0xff] }
 0x615   : > { %v6387_v62 = vadd.f32 %v1934_v48, %v1933_v50 }
 0x617   : > { %5372 = vtanh.f32 %v6387_v62 }
 0x621   : > { %v5373_v13 = vpop.eup %5372 }
 0x622   : > { %v1937_v16 = vmul.f32 %v5373_v13, %v1932_v12  ;;  %v2300_v13 = vld [vmem:[%s2297_s29 + $0x10] sm:$0xff] }
 0x624   : > { %4189 = vst [vmem:[%s5610_s10 + $0x20] sm:$0xff] %v1937_v16  ;;  %2015 = vmatmul.mubr.f32.vlgmr.msra.gmra.mrb[26].mxu0 %v1937_v16  ;;  %2086 = vmatmul.mubr.f32.vlgmr.msra.gmra.mrb[26].mxu1 %v1937_v16 }
 0x625   : > { %4653 = vmatpush1.bf16.msra.mxu0 %v5793_v54  ;;  %4685 = vmatpush1.bf16.msra.mxu1 %v5802_v57 }
 0x626   : > { %4655 = vmatprep.subr.bf16.mxu0 %v5815_v61  ;;  %4687 = vmatprep.subr.bf16.mxu1 %v5829_v2 }
 0x627   : > { %2190 = vmatprep.mubr.f32.mxu0 %v5539_v39  ;;  %2261 = vmatprep.mubr.f32.mxu1 %v5539_v39 }
 0x629   : > { %4657 = vmatpush1.bf16.msra.mxu0 %v5831_v3  ;;  %4689 = vmatpush1.bf16.msra.mxu1 %v5841_v6 }
 0x62a   : > { %4659 = vmatprep.subr.bf16.mxu0 %v5854_v10  ;;  %4691 = vmatprep.subr.bf16.mxu1 %v5868_v15 }
 0x62d   : > { %4661 = vmatpush1.bf16.msra.mxu0 %v5878_v18  ;;  %4693 = vmatpush1.bf16.msra.mxu1 %v5891_v22 }
 0x62e   : > { %4663 = vmatprep.subr.bf16.mxu0 %v5904_v26  ;;  %4695 = vmatprep.subr.bf16.mxu1 %v5914_v33 }
 0x631   : > { %4665 = vmatpush1.bf16.msra.mxu0 %v5925_v29  ;;  %4697 = vmatpush1.bf16.msra.mxu1 %v5935_v36 }
 0x632   : > { %4667 = vmatprep.subr.bf16.mxu0 %v5945_v40  ;;  %4699 = vmatprep.subr.bf16.mxu1 %v5955_v43 }
 0x635   : > { %4669 = vmatpush1.bf16.msra.mxu0 %v5966_v47  ;;  %4701 = vmatpush1.bf16.msra.mxu1 %v5976_v51 }
 0x636   : > { %4671 = vmatprep.subr.bf16.mxu0 %v5986_v56  ;;  %4703 = vmatprep.subr.bf16.mxu1 %v5996_v60 }
 0x639   : > { %4673 = vmatpush1.bf16.msra.mxu0 %v6007_v1  ;;  %4705 = vmatpush1.bf16.msra.mxu1 %v6017_v7 }
 0x63a   : > { %4675 = vmatprep.subr.bf16.mxu0 %v6027_v11  ;;  %4707 = vmatprep.subr.bf16.mxu1 %v6037_v14 }
 0x63d   : > { %4677 = vmatpush1.bf16.msra.mxu0 %v6048_v20  ;;  %4709 = vmatpush1.bf16.msra.mxu1 %v6058_v24 }
 0x63e   : > { %4679 = vmatprep.subr.bf16.mxu0 %v6068_v32  ;;  %4711 = vmatprep.subr.bf16.mxu1 %v6078_v28 }
 0x641   : > { %4681 = vmatpush1.bf16.msra.mxu0 %v6083_v31  ;;  %4713 = vmatpush1.bf16.msra.mxu1 %v6087_v37 }
 0x642   : > { %4715 = vmatprep.subr.bf16.mxu0 %v5780_v49  ;;  %4747 = vmatprep.subr.bf16.mxu1 %v5791_v53 }
 0x6f7   : > { %v2016_v0 = vpop.f32.mrb[26].mxu0  ;;  %v2087_v5 = vpop.f32.mrb[26].mxu1 }
 0x6f8   : > { %v2092_v17 = vadd.f32 %v2016_v0, %v1946_v63  ;;  %v2094_v19 = vadd.f32 %v2087_v5, %v1948_v4  ;;  %v2018_v23 = vpop.f32.mrb[27].mxu0  ;;  %v2089_v25 = vpop.f32.mrb[27].mxu1  ;;  %v2299_v4 = vld [vmem:[%s2297_s29 + $0x8] sm:$0xff] }
 0x6f9   : > { %v2093_v27 = vadd.f32 %v2018_v23, %v1947_v21  ;;  %v2095_v34 = vadd.f32 %v2089_v25, %v1949_v52 }
 0x6fa   : > { %v2096_v35 = vmul.f32 0.5, %v2092_v17  ;;  %v2301_v17 = vld [vmem:[%s2297_s29 + $0x18] sm:$0xff] }
 0x6fb   : > { %v2100_v49 = vmul.f32 0.5, %v2093_v27  ;;  %v2105_v53 = vmul.f32 0.5, %v2095_v34 }
 0x6fc   : > { %5374 = vtanh.f32 %v2096_v35 }
 0x6fd   : > { %5376 = vtanh.f32 %v2100_v49 }
 0x6fe   : > { %5378 = vtanh.f32 %v2094_v19 }
 0x6ff   : > { %5380 = vtanh.f32 %v2105_v53 }
 0x706   : > { %v5375_v55 = vpop.eup %5374 }
 0x707   : > { %v5377_v30 = vpop.eup %5376  ;;  %v2098_v58 = vmul.f32 0.5, %v5375_v55 }
 0x708   : > { %v2102_v38 = vmul.f32 0.5, %v5377_v30  ;;  %v5379_v41 = vpop.eup %5378 }
 0x709   : > { %v2099_v59 = vadd.f32 0.5, %v2098_v58  ;;  %v5381_v48 = vpop.eup %5380 }
 0x70a   : > { %v2103_v42 = vadd.f32 0.5, %v2102_v38  ;;  %v2107_v50 = vmul.f32 0.5, %v5381_v48 }
 0x70b   : > { %v2110_v44 = vmul.f32 %v5379_v41, %v2099_v59 }
 0x70c   : > { %v2109_v45 = vmul.f32 %v2103_v42, %v6387_v62  ;;  %v2108_v8 = vadd.f32 0.5, %v2107_v50 }
 0x70e   : > { %v6427_v46 = vadd.f32 %v2110_v44, %v2109_v45 }
 0x710   : > { %5382 = vtanh.f32 %v6427_v46 }
 0x71a   : > { %v5383_v9 = vpop.eup %5382 }
 0x71b   : > { %v2113_v12 = vmul.f32 %v5383_v9, %v2108_v8 }
 0x71d   : > { %4192 = vst [vmem:[%s5610_s10 + $0x28] sm:$0xff] %v2113_v12  ;;  %2191 = vmatmul.mubr.f32.vlgmr.msra.gmra.mrb[28].mxu0 %v2113_v12  ;;  %2262 = vmatmul.mubr.f32.vlgmr.msra.gmra.mrb[28].mxu1 %v2113_v12 }
 0x71e   : > { %4717 = vmatpush1.bf16.msra.mxu0 %v5793_v54  ;;  %4749 = vmatpush1.bf16.msra.mxu1 %v5802_v57  ;;  %v2124_v57 = vld [vmem:[%s2121_s25 + $0x10] sm:$0xff] }
 0x71f   : > { %4719 = vmatprep.subr.bf16.mxu0 %v5815_v61  ;;  %4751 = vmatprep.subr.bf16.mxu1 %v5829_v2 }
 0x720   : > { %2366 = vmatprep.mubr.f32.mxu0 %v5539_v39  ;;  %2437 = vmatprep.mubr.f32.mxu1 %v5539_v39  ;;  %v2122_v39 = vld [vmem:[%s2121_s25] sm:$0xff] }
 0x722   : > { %4721 = vmatpush1.bf16.msra.mxu0 %v5831_v3  ;;  %4753 = vmatpush1.bf16.msra.mxu1 %v5841_v6  ;;  %v2123_v6 = vld [vmem:[%s2121_s25 + $0x8] sm:$0xff] }
 0x723   : > { %4723 = vmatprep.subr.bf16.mxu0 %v5854_v10  ;;  %4755 = vmatprep.subr.bf16.mxu1 %v5868_v15  ;;  %v2125_v15 = vld [vmem:[%s2121_s25 + $0x18] sm:$0xff] }
 0x726   : > { %4725 = vmatpush1.bf16.msra.mxu0 %v5878_v18  ;;  %4757 = vmatpush1.bf16.msra.mxu1 %v5891_v22 }
 0x727   : > { %4727 = vmatprep.subr.bf16.mxu0 %v5904_v26  ;;  %4759 = vmatprep.subr.bf16.mxu1 %v5914_v33 }
 0x72a   : > { %4729 = vmatpush1.bf16.msra.mxu0 %v5925_v29  ;;  %4761 = vmatpush1.bf16.msra.mxu1 %v5935_v36 }
 0x72b   : > { %4731 = vmatprep.subr.bf16.mxu0 %v5945_v40  ;;  %4763 = vmatprep.subr.bf16.mxu1 %v5955_v43 }
 0x72e   : > { %4733 = vmatpush1.bf16.msra.mxu0 %v5966_v47  ;;  %4765 = vmatpush1.bf16.msra.mxu1 %v5976_v51 }
 0x72f   : > { %4735 = vmatprep.subr.bf16.mxu0 %v5986_v56  ;;  %4767 = vmatprep.subr.bf16.mxu1 %v5996_v60 }
 0x732   : > { %4737 = vmatpush1.bf16.msra.mxu0 %v6007_v1  ;;  %4769 = vmatpush1.bf16.msra.mxu1 %v6017_v7 }
 0x733   : > { %4739 = vmatprep.subr.bf16.mxu0 %v6027_v11  ;;  %4771 = vmatprep.subr.bf16.mxu1 %v6037_v14 }
 0x736   : > { %4741 = vmatpush1.bf16.msra.mxu0 %v6048_v20  ;;  %4773 = vmatpush1.bf16.msra.mxu1 %v6058_v24 }
 0x737   : > { %4743 = vmatprep.subr.bf16.mxu0 %v6068_v32  ;;  %4775 = vmatprep.subr.bf16.mxu1 %v6078_v28 }
 0x73a   : > { %4745 = vmatpush1.bf16.msra.mxu0 %v6083_v31  ;;  %4777 = vmatpush1.bf16.msra.mxu1 %v6087_v37  ;;  %v2298_v37 = vld [vmem:[%s2297_s29] sm:$0xff] }
 0x7f0   : > { %v2192_v54 = vpop.f32.mrb[28].mxu0  ;;  %v2263_v61 = vpop.f32.mrb[28].mxu1 }
 0x7f1   : > { %v2268_v2 = vadd.f32 %v2192_v54, %v2122_v39  ;;  %v2270_v3 = vadd.f32 %v2263_v61, %v2124_v57  ;;  %v2194_v10 = vpop.f32.mrb[29].mxu0  ;;  %v2265_v18 = vpop.f32.mrb[29].mxu1 }
 0x7f2   : > { %v2269_v22 = vadd.f32 %v2194_v10, %v2123_v6  ;;  %v2271_v26 = vadd.f32 %v2265_v18, %v2125_v15 }
 0x7f3   : > { %v2272_v33 = vmul.f32 0.5, %v2268_v2 }
 0x7f4   : > { %v2276_v29 = vmul.f32 0.5, %v2269_v22  ;;  %v2281_v36 = vmul.f32 0.5, %v2271_v26 }
 0x7f5   : > { %5384 = vtanh.f32 %v2272_v33 }
 0x7f6   : > { %5386 = vtanh.f32 %v2276_v29 }
 0x7f7   : > { %5388 = vtanh.f32 %v2270_v3 }
 0x7f8   : > { %5390 = vtanh.f32 %v2281_v36 }
 0x7ff   : > { %v5385_v40 = vpop.eup %5384 }
 0x800   : > { %v5387_v43 = vpop.eup %5386  ;;  %v2274_v47 = vmul.f32 0.5, %v5385_v40 }
 0x801   : > { %v2278_v51 = vmul.f32 0.5, %v5387_v43  ;;  %v5389_v60 = vpop.eup %5388 }
 0x802   : > { %v2275_v56 = vadd.f32 0.5, %v2274_v47  ;;  %v5391_v20 = vpop.eup %5390 }
 0x803   : > { %v2279_v1 = vadd.f32 0.5, %v2278_v51  ;;  %v2283_v24 = vmul.f32 0.5, %v5391_v20 }
 0x804   : > { %v2286_v7 = vmul.f32 %v5389_v60, %v2275_v56 }
 0x805   : > { %v2285_v11 = vmul.f32 %v2279_v1, %v6427_v46  ;;  %v2284_v32 = vadd.f32 0.5, %v2283_v24 }
 0x807   : > { %v2287_v14 = vadd.f32 %v2286_v7, %v2285_v11 }
 0x809   : > { %5392 = vtanh.f32 %v2287_v14 }
 0x813   : > { %v5393_v28 = vpop.eup %5392 }
 0x814   : > { %v2289_v31 = vmul.f32 %v5393_v28, %v2284_v32 }
 0x816   : > { %4195 = vst [vmem:[%s5610_s10 + $0x30] sm:$0xff] %v2289_v31  ;;  %2367 = vmatmul.mubr.f32.vlgmr.msra.gmra.mrb[30].mxu0 %v2289_v31  ;;  %2438 = vmatmul.mubr.f32.vlgmr.msra.gmra.mrb[30].mxu1 %v2289_v31 }
 0x8e9   : > { %v2368_v62 = vpop.f32.mrb[30].mxu0  ;;  %v2439_v16 = vpop.f32.mrb[30].mxu1 }
 0x8ea   : > { %v2444_v63 = vadd.f32 %v2368_v62, %v2298_v37  ;;  %v2446_v0 = vadd.f32 %v2439_v16, %v2300_v13  ;;  %v2370_v5 = vpop.f32.mrb[31].mxu0  ;;  %v2441_v19 = vpop.f32.mrb[31].mxu1 }
 0x8eb   : > { %v2445_v21 = vadd.f32 %v2370_v5, %v2299_v4  ;;  %v2447_v23 = vadd.f32 %v2441_v19, %v2301_v17 }
 0x8ec   : > { %v2448_v52 = vmul.f32 0.5, %v2444_v63 }
 0x8ed   : > { %v2452_v25 = vmul.f32 0.5, %v2445_v21  ;;  %v2457_v27 = vmul.f32 0.5, %v2447_v23 }
 0x8ee   : > { %5394 = vtanh.f32 %v2448_v52 }
 0x8ef   : > { %5396 = vtanh.f32 %v2452_v25 }
 0x8f0   : > { %5398 = vtanh.f32 %v2446_v0 }
 0x8f1   : > { %5400 = vtanh.f32 %v2457_v27 }
 0x8f8   : > { %v5395_v34 = vpop.eup %5394 }
 0x8f9   : > { %v5397_v35 = vpop.eup %5396  ;;  %v2450_v49 = vmul.f32 0.5, %v5395_v34 }
 0x8fa   : > { %v2454_v53 = vmul.f32 0.5, %v5397_v35  ;;  %v5399_v30 = vpop.eup %5398 }
 0x8fb   : > { %v2451_v55 = vadd.f32 0.5, %v2450_v49  ;;  %v5401_v42 = vpop.eup %5400 }
 0x8fc   : > { %v2455_v58 = vadd.f32 0.5, %v2454_v53  ;;  %v2459_v44 = vmul.f32 0.5, %v5401_v42 }
 0x8fd   : > { %v2462_v38 = vmul.f32 %v5399_v30, %v2451_v55 }
 0x8fe   : > { %v2461_v59 = vmul.f32 %v2455_v58, %v2287_v14  ;;  %v2460_v45 = vadd.f32 0.5, %v2459_v44 }
 0x900   : > { %v2463_v41 = vadd.f32 %v2462_v38, %v2461_v59 }
 0x902   : > { %5402 = vtanh.f32 %v2463_v41  ;;  %2469 = vst [vmem:[#allocation3] sm:$0xff] %v2463_v41 }
 0x90c   : > { %v5403_v46 = vpop.eup %5402 }
 0x90d   : > { %v2465_v48 = vmul.f32 %v5403_v46, %v2460_v45 }
 0x90f   : > { %4198 = vst [vmem:[%s5610_s10 + $0x38] sm:$0xff] %v2465_v48  ;;  %2468 = vst [vmem:[#allocation2] sm:$0xff] %v2465_v48 }
 0x910 PF: > { %p4199_p2 = scmp.ne.s32.totalorder %s5528_s18, 1 }
 0x911   : > { %v2475_v50 = vld [vmem:[%s7081_s2 + $0x8] sm:$0xff] (!%p4199_p2)  ;;  %v2474_v9 = vld [vmem:[%s7081_s2] sm:$0xff] (!%p4199_p2)  ;;  %v5540_v61 = vmov (!%p4199_p2), 0.0   ;;  %v2477_v15 = vld [vmem:[%s7081_s2 + $0x18] sm:$0xff] (!%p4199_p2)  ;;  %s2540_s25 = ssub.s32 (!%p4199_p2), 0, %s5595_s23  ;;  %p2539_p3 = scmp.lt.s32.totalorder (!%p4199_p2), %s5595_s23, 0 }
 0x912   : > { %2473 = sbr.rel (%p4199_p2) target bundleno = 4350 (0x10fe), region = 48  ;;  %v2479_v8 = vld [vmem:[%s7081_s2 + $0x28] sm:$0xff] (!%p4199_p2)  ;;  %v2478_v39 = vld [vmem:[%s7081_s2 + $0x20] sm:$0xff] (!%p4199_p2)  ;;  %2627 = vmatprep.mubr.f32.mxu0 (!%p4199_p2), %v5540_v61  ;;  %2698 = vmatprep.mubr.f32.mxu1 (!%p4199_p2), %v5540_v61  ;;  %v2481_v18 = vld [vmem:[%s7081_s2 + $0x38] sm:$0xff] (!%p4199_p2)  ;;  %s4201_s26 = smin.u32 (!%p4199_p2), %s5595_s23, %s2540_s25 }
 0x913   : > { %v6478_v12 = vpack.c.bf16 (!%p4199_p2), %v2479_v8, %v2475_v50  ;;  %v2483_v54 = vld [vmem:[%s7081_s2 + $0x48] sm:$0xff] (!%p4199_p2)  ;;  %v6491_v2 = vpack.c.bf16 (!%p4199_p2), %v2478_v39, %v2474_v9  ;;  %v2482_v6 = vld [vmem:[%s7081_s2 + $0x40] sm:$0xff] (!%p4199_p2)  ;;  %v2476_v22 = vld [vmem:[%s7081_s2 + $0x10] sm:$0xff] (!%p4199_p2)  ;;  %v6517_v29 = vpack.c.bf16 (!%p4199_p2), %v2481_v18, %v2477_v15  ;;  %s2542_s27 = sand.u32 (!%p4199_p2), 1, %s4201_s26  }
 0x914   : > { %v2487_v57 = vld [vmem:[%s7081_s2 + $0x68] sm:$0xff] (!%p4199_p2)  ;;  %v2486_v10 = vld [vmem:[%s7081_s2 + $0x60] sm:$0xff] (!%p4199_p2)  ;;  %v2480_v26 = vld [vmem:[%s7081_s2 + $0x30] sm:$0xff] (!%p4199_p2)  ;;  %s2543_s28 = ssub.s32 (!%p4199_p2), 0, %s2542_s27 }
 0x915   : > { %v6493_v3 = vpack.c.bf16 (!%p4199_p2), %v2487_v57, %v2483_v54  ;;  %4779 = vmatprep.subr.bf16.mxu0 (!%p4199_p2), %v6478_v12  ;;  %v6515_v33 = vpack.c.bf16 (!%p4199_p2), %v2486_v10, %v2482_v6  ;;  %v6519_v36 = vpack.c.bf16 (!%p4199_p2), %v2480_v26, %v2476_v22  ;;  %v2491_v40 = vld [vmem:[%s7081_s2 + $0x88] sm:$0xff] (!%p4199_p2)  ;;  %v2490_v47 = vld [vmem:[%s7081_s2 + $0x80] sm:$0xff] (!%p4199_p2)  ;;  %v2485_v60 = vld [vmem:[%s7081_s2 + $0x58] sm:$0xff] (!%p4199_p2)  ;;  %4811 = vmatprep.subr.bf16.mxu1 (!%p4199_p2), %v6517_v29 }
 0x916   : > { %4781 = vmatpush1.bf16.msra.mxu0 (!%p4199_p2), %v6491_v2  ;;  %v2495_v43 = vld [vmem:[%s7081_s2 + $0xa8] sm:$0xff] (!%p4199_p2)  ;;  %v2494_v56 = vld [vmem:[%s7081_s2 + $0xa0] sm:$0xff] (!%p4199_p2)  ;;  %v2489_v1 = vld [vmem:[%s7081_s2 + $0x78] sm:$0xff] (!%p4199_p2) }
 0x917   : > { %4783 = vmatprep.subr.bf16.mxu0 (!%p4199_p2), %v6493_v3  ;;  %v6531_v51 = vpack.c.bf16 (!%p4199_p2), %v2495_v43, %v2491_v40  ;;  %v6543_v7 = vpack.c.bf16 (!%p4199_p2), %v2489_v1, %v2485_v60  ;;  %v2484_v11 = vld [vmem:[%s7081_s2 + $0x50] sm:$0xff] (!%p4199_p2)  ;;  %v2499_v20 = vld [vmem:[%s7081_s2 + $0xc8] sm:$0xff] (!%p4199_p2)  ;;  %4813 = vmatpush1.bf16.msra.mxu1 (!%p4199_p2), %v6519_v36  ;;  %v6561_v28 = vpack.c.bf16 (!%p4199_p2), %v2494_v56, %v2490_v47  ;;  %v2493_v31 = vld [vmem:[%s7081_s2 + $0x98] sm:$0xff] (!%p4199_p2) }
 0x918   : > { %v2488_v14 = vld [vmem:[%s7081_s2 + $0x70] sm:$0xff] (!%p4199_p2)  ;;  %v2503_v32 = vld [vmem:[%s7081_s2 + $0xe8] sm:$0xff] (!%p4199_p2)  ;;  %v2497_v37 = vld [vmem:[%s7081_s2 + $0xb8] sm:$0xff] (!%p4199_p2) }
 0x919   : > { %v6555_v24 = vpack.c.bf16 %v2488_v14, %v2484_v11  ;;  %4815 = vmatprep.subr.bf16.mxu1 %v6543_v7  ;;  %v2492_v62 = vld [vmem:[%s7081_s2 + $0x90] sm:$0xff]  ;;  %v6574_v13 = vpack.c.bf16 %v2503_v32, %v2499_v20  ;;  %v2498_v16 = vld [vmem:[%s7081_s2 + $0xc0] sm:$0xff]  ;;  %v6582_v0 = vpack.c.bf16 %v2497_v37, %v2493_v31  ;;  %v2507_v5 = vld [vmem:[%s7081_s2 + $0x108] sm:$0xff]  ;;  %s7107_s28 = smov (!%p2539_p3, %s2543_s28), %s2542_s27 }
 0x91a   : > { %4785 = vmatpush1.bf16.msra.mxu0 %v6515_v33  ;;  %v2502_v63 = vld [vmem:[%s7081_s2 + $0xe0] sm:$0xff]  ;;  %v2496_v4 = vld [vmem:[%s7081_s2 + $0xb0] sm:$0xff]  ;;  %v2511_v17 = vld [vmem:[%s7081_s2 + $0x128] sm:$0xff]  ;;  %p4203_p4 = scmp.lt.s32.totalorder %s7107_s28, 0  ;;  %s2549_s29 = sadd.s32 2, %s7107_s28 }
 0x91b   : > { %4787 = vmatprep.subr.bf16.mxu0 %v6531_v51  ;;  %v2501_v19 = vld [vmem:[%s7081_s2 + $0xd8] sm:$0xff]  ;;  %4817 = vmatpush1.bf16.msra.mxu1 %v6555_v24  ;;  %v6597_v21 = vpack.c.bf16 %v2496_v4, %v2492_v62  ;;  %v6603_v52 = vpack.c.bf16 %v2502_v63, %v2498_v16  ;;  %v2506_v25 = vld [vmem:[%s7081_s2 + $0x100] sm:$0xff]  ;;  %v2500_v34 = vld [vmem:[%s7081_s2 + $0xd0] sm:$0xff]  ;;  %v6618_v49 = vpack.c.bf16 %v2511_v17, %v2507_v5 }
 0x91c   : > { %v2505_v23 = vld [vmem:[%s7081_s2 + $0xf8] sm:$0xff]  ;;  %4819 = vmatprep.subr.bf16.mxu1 %v6582_v0  ;;  %v2504_v35 = vld [vmem:[%s7081_s2 + $0xf0] sm:$0xff]  ;;  %v2510_v53 = vld [vmem:[%s7081_s2 + $0x120] sm:$0xff]  ;;  %s7109_s29 = smov (!%p4203_p4, %s2549_s29), %s7107_s28 }
 0x91d   : > { %v6609_v27 = vpack.c.bf16 %v2505_v23, %v2501_v19  ;;  %v2509_v55 = vld [vmem:[%s7081_s2 + $0x118] sm:$0xff]  ;;  %v2515_v58 = vld [vmem:[%s7081_s2 + $0x148] sm:$0xff]  ;;  %v6636_v59 = vpack.c.bf16 %v2504_v35, %v2500_v34  ;;  %v6639_v41 = vpack.c.bf16 %v2510_v53, %v2506_v25  ;;  %v2514_v42 = vld [vmem:[%s7081_s2 + $0x140] sm:$0xff]  ;;  %s6798_s9 = sshll.u32 %s7109_s29, 6 }
 0x91e   : > { %4789 = vmatpush1.bf16.msra.mxu0 %v6561_v28  ;;  %v2513_v30 = vld [vmem:[%s7081_s2 + $0x138] sm:$0xff]  ;;  %v2519_v38 = vld [vmem:[%s7081_s2 + $0x168] sm:$0xff]  ;;  %v2508_v45 = vld [vmem:[%s7081_s2 + $0x110] sm:$0xff]  ;;  %s2554_s30 = sshra.s32 %s6798_s9, 3  ;;  %s2728_s23 = sadd.s32 8, %s6798_s9 }
 0x91f   : > { %4791 = vmatprep.subr.bf16.mxu0 %v6574_v13  ;;  %4821 = vmatpush1.bf16.msra.mxu1 %v6597_v21  ;;  %v6645_v44 = vpack.c.bf16 %v2513_v30, %v2509_v55  ;;  %v2512_v46 = vld [vmem:[%s7081_s2 + $0x130] sm:$0xff]  ;;  %v6654_v48 = vpack.c.bf16 %v2519_v38, %v2515_v58  ;;  %v2518_v50 = vld [vmem:[%s7081_s2 + $0x160] sm:$0xff]  ;;  %v2517_v8 = vld [vmem:[%s7081_s2 + $0x158] sm:$0xff]  ;;  %s4242_s7 = sshll.u32 %s2554_s30, 5  ;;  %s2729_s11 = sshra.s32 %s2728_s23, 3 }
 0x920   : > { %4823 = vmatprep.subr.bf16.mxu1 %v6609_v27  ;;  %v2521_v9 = vld [vmem:[%s7081_s2 + $0x178] sm:$0xff]  ;;  %v2523_v39 = vld [vmem:[%s7081_s2 + $0x188] sm:$0xff]  ;;  %v6672_v57 = vpack.c.bf16 %v2512_v46, %v2508_v45  ;;  %v6675_v6 = vpack.c.bf16 %v2518_v50, %v2514_v42  ;;  %v2522_v10 = vld [vmem:[%s7081_s2 + $0x180] sm:$0xff]  ;;  %s2558_s8 = scalar_lea.vmem [#allocation4], %s4242_s7  ;;  %s4243_s6 = sshll.u32 %s2729_s11, 5 }
 0x921   : > { %v2527_v54 = vld [vmem:[%s7081_s2 + $0x1a8] sm:$0xff]  ;;  %v6681_v15 = vpack.c.bf16 %v2521_v9, %v2517_v8  ;;  %v2516_v18 = vld [vmem:[%s7081_s2 + $0x150] sm:$0xff]  ;;  %v2526_v40 = vld [vmem:[%s7081_s2 + $0x1a0] sm:$0xff]  ;;  %s2733_s12 = scalar_lea.vmem [#allocation4], %s4243_s6  ;;  %s2904_s13 = sadd.s32 16, %s6798_s9 }
 0x922   : > { %4793 = vmatpush1.bf16.msra.mxu0 %v6603_v52  ;;  %v2520_v22 = vld [vmem:[%s7081_s2 + $0x170] sm:$0xff]  ;;  %v6690_v26 = vpack.c.bf16 %v2527_v54, %v2523_v39  ;;  %v2525_v43 = vld [vmem:[%s7081_s2 + $0x198] sm:$0xff]  ;;  %v2531_v56 = vld [vmem:[%s7081_s2 + $0x1c8] sm:$0xff]  ;;  %v6711_v11 = vpack.c.bf16 %v2526_v40, %v2522_v10  ;;  %s2905_s18 = sshra.s32 %s2904_s13, 3  ;;  %s3080_s16 = sadd.s32 24, %s6798_s9 }
 0x923   : > { %4795 = vmatprep.subr.bf16.mxu0 %v6618_v49  ;;  %4825 = vmatpush1.bf16.msra.mxu1 %v6636_v59  ;;  %v2529_v47 = vld [vmem:[%s7081_s2 + $0x1b8] sm:$0xff]  ;;  %v2535_v60 = vld [vmem:[%s7081_s2 + $0x1e8] sm:$0xff]  ;;  %v6708_v1 = vpack.c.bf16 %v2520_v22, %v2516_v18  ;;  %v2530_v14 = vld [vmem:[%s7081_s2 + $0x1c0] sm:$0xff]  ;;  %s4244_s14 = sshll.u32 %s2905_s18, 5  ;;  %s3081_s17 = sshra.s32 %s3080_s16, 3 }
 0x924   : > { %4827 = vmatprep.subr.bf16.mxu1 %v6645_v44  ;;  %v6717_v20 = vpack.c.bf16 %v2529_v47, %v2525_v43  ;;  %v2524_v32 = vld [vmem:[%s7081_s2 + $0x190] sm:$0xff]  ;;  %v6726_v37 = vpack.c.bf16 %v2535_v60, %v2531_v56  ;;  %v2534_v62 = vld [vmem:[%s7081_s2 + $0x1e0] sm:$0xff]  ;;  %v2533_v16 = vld [vmem:[%s7081_s2 + $0x1d8] sm:$0xff]  ;;  %s2909_s15 = scalar_lea.vmem [#allocation4], %s4244_s14  ;;  %s4245_s24 = sshll.u32 %s3081_s17, 5 }
 0x925   : > { %v2528_v31 = vld [vmem:[%s7081_s2 + $0x1b0] sm:$0xff]  ;;  %v2537_v63 = vld [vmem:[%s7081_s2 + $0x1f8] sm:$0xff]  ;;  %v6741_v5 = vpack.c.bf16 %v2534_v62, %v2530_v14  ;;  %v2552_v34 = vld [vmem:[#allocation2] sm:$0xff]  ;;  %s3085_s25 = scalar_lea.vmem [#allocation4], %s4245_s24  ;;  %s3256_s26 = sadd.s32 32, %s6798_s9 }
 0x926   : > { %4797 = vmatpush1.bf16.msra.mxu0 %v6639_v41  ;;  %v6738_v4 = vpack.c.bf16 %v2528_v31, %v2524_v32  ;;  %v6744_v17 = vpack.c.bf16 %v2537_v63, %v2533_v16  ;;  %v2532_v19 = vld [vmem:[%s7081_s2 + $0x1d0] sm:$0xff]  ;;  %v2559_v35 = vld [vmem:[%s2558_s8] sm:$0xff]  ;;  %v2560_v53 = vld [vmem:[%s2558_s8 + $0x8] sm:$0xff]  ;;  %s3257_s27 = sshra.s32 %s3256_s26, 3  ;;  %s3432_s30 = sadd.s32 40, %s6798_s9 }
 0x927   : > { %4799 = vmatprep.subr.bf16.mxu0 %v6654_v48  ;;  %4829 = vmatpush1.bf16.msra.mxu1 %v6672_v57  ;;  %v2536_v23 = vld [vmem:[%s7081_s2 + $0x1f0] sm:$0xff]  ;;  %v2562_v39 = vld [vmem:[%s2558_s8 + $0x18] sm:$0xff]  ;;  %v2553_v60 = vld [vmem:[#allocation3] sm:$0xff]  ;;  %s4246_s28 = sshll.u32 %s3257_s27, 5  ;;  %s3433_s7 = sshra.s32 %s3432_s30, 3 }
 0x928   : > { %4831 = vmatprep.subr.bf16.mxu1 %v6681_v15  ;;  %v6754_v25 = vpack.c.bf16 %v2536_v23, %v2532_v19  ;;  %v2561_v38 = vld [vmem:[%s2558_s8 + $0x10] sm:$0xff]  ;;  %s3261_s29 = scalar_lea.vmem [#allocation4], %s4246_s28  ;;  %s4247_s8 = sshll.u32 %s3433_s7, 5 }
 0x929   : > { %s3437_s23 = scalar_lea.vmem [#allocation4], %s4247_s8  ;;  %s3608_s11 = sadd.s32 48, %s6798_s9 }
 0x92a   : > { %4801 = vmatpush1.bf16.msra.mxu0 %v6675_v6  ;;  %s3609_s6 = sshra.s32 %s3608_s11, 3  ;;  %s3784_s18 = sadd.s32 56, %s6798_s9 }
 0x92b   : > { %4803 = vmatprep.subr.bf16.mxu0 %v6690_v26  ;;  %4833 = vmatpush1.bf16.msra.mxu1 %v6708_v1  ;;  %s3785_s14 = sshra.s32 %s3784_s18, 3 }
 0x92c   : > { %4835 = vmatprep.subr.bf16.mxu1 %v6717_v20 }
 0x92e   : > { %4805 = vmatpush1.bf16.msra.mxu0 %v6711_v11 }
 0x92f   : > { %4807 = vmatprep.subr.bf16.mxu0 %v6726_v37  ;;  %4837 = vmatpush1.bf16.msra.mxu1 %v6738_v4 }
 0x930   : > { %4839 = vmatprep.subr.bf16.mxu1 %v6744_v17 }
 0x932   : > { %4809 = vmatpush1.bf16.msra.mxu0 %v6741_v5 }
 0x933   : > { %4843 = vmatprep.subr.bf16.mxu0 %v6478_v12  ;;  %4841 = vmatpush1.bf16.msra.mxu1 %v6754_v25 }
 0x934   : > { %4875 = vmatprep.subr.bf16.mxu1 %v6517_v29 }
 0x935   : > { %2628 = vmatmul.mubr.f32.vlgmr.msra.gmra.mrb[0].mxu0 %v2552_v34 }
 0x936   : > { %4845 = vmatpush1.bf16.msra.mxu0 %v6491_v2  ;;  %2802 = vmatprep.mubr.f32.mxu0 %v5540_v61 }
 0x937   : > { %4847 = vmatprep.subr.bf16.mxu0 %v6493_v3  ;;  %2699 = vmatmul.mubr.f32.vlgmr.msra.gmra.mrb[0].mxu1 %v2552_v34 }
 0x938   : > { %4877 = vmatpush1.bf16.msra.mxu1 %v6519_v36  ;;  %2873 = vmatprep.mubr.f32.mxu1 %v5540_v61 }
 0x939   : > { %4879 = vmatprep.subr.bf16.mxu1 %v6543_v7 }
 0x93a   : > { %4849 = vmatpush1.bf16.msra.mxu0 %v6515_v33 }
 0x93b   : > { %4851 = vmatprep.subr.bf16.mxu0 %v6531_v51 }
 0x93c   : > { %4881 = vmatpush1.bf16.msra.mxu1 %v6555_v24 }
 0x93d   : > { %4883 = vmatprep.subr.bf16.mxu1 %v6582_v0 }
 0x93e   : > { %4853 = vmatpush1.bf16.msra.mxu0 %v6561_v28 }
 0x93f   : > { %4855 = vmatprep.subr.bf16.mxu0 %v6574_v13 }
 0x940   : > { %4885 = vmatpush1.bf16.msra.mxu1 %v6597_v21 }
 0x941   : > { %4887 = vmatprep.subr.bf16.mxu1 %v6609_v27 }
 0x942   : > { %4857 = vmatpush1.bf16.msra.mxu0 %v6603_v52 }
 0x943   : > { %4859 = vmatprep.subr.bf16.mxu0 %v6618_v49 }
 0x944   : > { %4889 = vmatpush1.bf16.msra.mxu1 %v6636_v59 }
 0x945   : > { %4891 = vmatprep.subr.bf16.mxu1 %v6645_v44 }
 0x946   : > { %4861 = vmatpush1.bf16.msra.mxu0 %v6639_v41 }
 0x947   : > { %4863 = vmatprep.subr.bf16.mxu0 %v6654_v48 }
 0x948   : > { %4893 = vmatpush1.bf16.msra.mxu1 %v6672_v57 }
 0x949   : > { %4895 = vmatprep.subr.bf16.mxu1 %v6681_v15 }
 0x94a   : > { %4865 = vmatpush1.bf16.msra.mxu0 %v6675_v6 }
 0x94b   : > { %4867 = vmatprep.subr.bf16.mxu0 %v6690_v26 }
 0x94c   : > { %4897 = vmatpush1.bf16.msra.mxu1 %v6708_v1 }
 0x94d   : > { %4899 = vmatprep.subr.bf16.mxu1 %v6717_v20 }
 0x94e   : > { %4869 = vmatpush1.bf16.msra.mxu0 %v6711_v11 }
 0x94f   : > { %4871 = vmatprep.subr.bf16.mxu0 %v6726_v37 }
 0x950   : > { %4901 = vmatpush1.bf16.msra.mxu1 %v6738_v4 }
 0x951   : > { %4903 = vmatprep.subr.bf16.mxu1 %v6744_v17 }
 0x952   : > { %4873 = vmatpush1.bf16.msra.mxu0 %v6741_v5 }
 0x953   : > { %4907 = vmatprep.subr.bf16.mxu0 %v6478_v12 }
 0x954   : > { %4905 = vmatpush1.bf16.msra.mxu1 %v6754_v25 }
 0x955   : > { %4939 = vmatprep.subr.bf16.mxu1 %v6517_v29 }
 0xa08   : > { %v2629_v55 = vpop.f32.mrb[0].mxu0 }
 0xa09   : > { %v2705_v30 = vadd.f32 %v2629_v55, %v2559_v35  ;;  %v2631_v58 = vpop.f32.mrb[1].mxu0  ;;  %v2734_v35 = vld [vmem:[%s2733_s12] sm:$0xff] }
 0xa0a   : > { %v2706_v42 = vadd.f32 %v2631_v58, %v2560_v53  ;;  %v2700_v46 = vpop.f32.mrb[0].mxu1  ;;  %v2735_v53 = vld [vmem:[%s2733_s12 + $0x8] sm:$0xff] }
 0xa0b   : > { %v2709_v45 = vmul.f32 0.5, %v2705_v30  ;;  %v2707_v8 = vadd.f32 %v2700_v46, %v2561_v38  ;;  %v2702_v9 = vpop.f32.mrb[1].mxu1 }
 0xa0c   : > { %v2713_v50 = vmul.f32 0.5, %v2706_v42  ;;  %v2708_v54 = vadd.f32 %v2702_v9, %v2562_v39  ;;  %v2737_v39 = vld [vmem:[%s2733_s12 + $0x18] sm:$0xff] }
 0xa0d   : > { %5404 = vtanh.f32 %v2709_v45  ;;  %v2736_v45 = vld [vmem:[%s2733_s12 + $0x10] sm:$0xff]  ;;  %s4248_s12 = sshll.u32 %s3609_s6, 5 }
 0xa0e   : > { %5406 = vtanh.f32 %v2713_v50  ;;  %v2718_v10 = vmul.f32 0.5, %v2708_v54  ;;  %s3613_s13 = scalar_lea.vmem [#allocation4], %s4248_s12 }
 0xa0f   : > { %5408 = vtanh.f32 %v2707_v8 }
 0xa10   : > { %5410 = vtanh.f32 %v2718_v10 }
 0xa17   : > { %v5405_v18 = vpop.eup %5404 }
 0xa18   : > { %v5407_v22 = vpop.eup %5406  ;;  %v2711_v40 = vmul.f32 0.5, %v5405_v18 }
 0xa19   : > { %v5409_v43 = vpop.eup %5408  ;;  %v2715_v47 = vmul.f32 0.5, %v5407_v22 }
 0xa1a   : > { %v2712_v56 = vadd.f32 0.5, %v2711_v40  ;;  %v5411_v16 = vpop.eup %5410 }
 0xa1b   : > { %v2716_v14 = vadd.f32 0.5, %v2715_v47  ;;  %v2720_v63 = vmul.f32 0.5, %v5411_v16 }
 0xa1c   : > { %v2723_v32 = vmul.f32 %v5409_v43, %v2712_v56 }
 0xa1d   : > { %v2722_v31 = vmul.f32 %v2716_v14, %v2553_v60  ;;  %v2721_v19 = vadd.f32 0.5, %v2720_v63 }
 0xa1f   : > { %v6801_v62 = vadd.f32 %v2723_v32, %v2722_v31 }
 0xa21   : > { %5412 = vtanh.f32 %v6801_v62 }
 0xa2b   : > { %v5413_v23 = vpop.eup %5412 }
 0xa2c   : > { %v2726_v34 = vmul.f32 %v5413_v23, %v2721_v19 }
 0xa2e   : > { %2727 = vst [vmem:[%s5610_s10] sm:$0xff] %v2726_v34  ;;  %2803 = vmatmul.mubr.f32.vlgmr.msra.gmra.mrb[2].mxu0 %v2726_v34  ;;  %2874 = vmatmul.mubr.f32.vlgmr.msra.gmra.mrb[2].mxu1 %v2726_v34 }
 0xa2f   : > { %4909 = vmatpush1.bf16.msra.mxu0 %v6491_v2  ;;  %4941 = vmatpush1.bf16.msra.mxu1 %v6519_v36 }
 0xa30   : > { %4911 = vmatprep.subr.bf16.mxu0 %v6493_v3  ;;  %4943 = vmatprep.subr.bf16.mxu1 %v6543_v7 }
 0xa31   : > { %2978 = vmatprep.mubr.f32.mxu0 %v5540_v61  ;;  %3049 = vmatprep.mubr.f32.mxu1 %v5540_v61 }
 0xa33   : > { %4913 = vmatpush1.bf16.msra.mxu0 %v6515_v33  ;;  %4945 = vmatpush1.bf16.msra.mxu1 %v6555_v24 }
 0xa34   : > { %4915 = vmatprep.subr.bf16.mxu0 %v6531_v51  ;;  %4947 = vmatprep.subr.bf16.mxu1 %v6582_v0 }
 0xa37   : > { %4917 = vmatpush1.bf16.msra.mxu0 %v6561_v28  ;;  %4949 = vmatpush1.bf16.msra.mxu1 %v6597_v21 }
 0xa38   : > { %4919 = vmatprep.subr.bf16.mxu0 %v6574_v13  ;;  %4951 = vmatprep.subr.bf16.mxu1 %v6609_v27 }
 0xa3b   : > { %4921 = vmatpush1.bf16.msra.mxu0 %v6603_v52  ;;  %4953 = vmatpush1.bf16.msra.mxu1 %v6636_v59 }
 0xa3c   : > { %4923 = vmatprep.subr.bf16.mxu0 %v6618_v49  ;;  %4955 = vmatprep.subr.bf16.mxu1 %v6645_v44 }
 0xa3f   : > { %4925 = vmatpush1.bf16.msra.mxu0 %v6639_v41  ;;  %4957 = vmatpush1.bf16.msra.mxu1 %v6672_v57 }
 0xa40   : > { %4927 = vmatprep.subr.bf16.mxu0 %v6654_v48  ;;  %4959 = vmatprep.subr.bf16.mxu1 %v6681_v15 }
 0xa43   : > { %4929 = vmatpush1.bf16.msra.mxu0 %v6675_v6  ;;  %4961 = vmatpush1.bf16.msra.mxu1 %v6708_v1 }
 0xa44   : > { %4931 = vmatprep.subr.bf16.mxu0 %v6690_v26  ;;  %4963 = vmatprep.subr.bf16.mxu1 %v6717_v20 }
 0xa47   : > { %4933 = vmatpush1.bf16.msra.mxu0 %v6711_v11  ;;  %4965 = vmatpush1.bf16.msra.mxu1 %v6738_v4 }
 0xa48   : > { %4935 = vmatprep.subr.bf16.mxu0 %v6726_v37  ;;  %4967 = vmatprep.subr.bf16.mxu1 %v6744_v17 }
 0xa4b   : > { %4937 = vmatpush1.bf16.msra.mxu0 %v6741_v5  ;;  %4969 = vmatpush1.bf16.msra.mxu1 %v6754_v25 }
 0xa4c   : > { %4971 = vmatprep.subr.bf16.mxu0 %v6478_v12  ;;  %5003 = vmatprep.subr.bf16.mxu1 %v6517_v29 }
 0xb01   : > { %v2804_v55 = vpop.f32.mrb[2].mxu0  ;;  %v2875_v30 = vpop.f32.mrb[2].mxu1 }
 0xb02   : > { %v2880_v58 = vadd.f32 %v2804_v55, %v2734_v35  ;;  %v2806_v38 = vpop.f32.mrb[3].mxu0  ;;  %v2877_v42 = vpop.f32.mrb[3].mxu1  ;;  %v2882_v9 = vadd.f32 %v2875_v30, %v2736_v45  ;;  %v2911_v35 = vld [vmem:[%s2909_s15 + $0x8] sm:$0xff] }
 0xb03   : > { %v2881_v46 = vadd.f32 %v2806_v38, %v2735_v53  ;;  %v2883_v54 = vadd.f32 %v2877_v42, %v2737_v39  ;;  %v2912_v42 = vld [vmem:[%s2909_s15 + $0x10] sm:$0xff] }
 0xb04   : > { %v2884_v50 = vmul.f32 0.5, %v2880_v58 }
 0xb05   : > { %v2888_v8 = vmul.f32 0.5, %v2881_v46  ;;  %v2893_v10 = vmul.f32 0.5, %v2883_v54 }
 0xb06   : > { %5414 = vtanh.f32 %v2884_v50 }
 0xb07   : > { %5416 = vtanh.f32 %v2888_v8 }
 0xb08   : > { %5418 = vtanh.f32 %v2882_v9  ;;  %v2913_v9 = vld [vmem:[%s2909_s15 + $0x18] sm:$0xff] }
 0xb09   : > { %5420 = vtanh.f32 %v2893_v10 }
 0xb10   : > { %v5415_v18 = vpop.eup %5414 }
 0xb11   : > { %v5417_v22 = vpop.eup %5416  ;;  %v2886_v40 = vmul.f32 0.5, %v5415_v18 }
 0xb12   : > { %v2890_v43 = vmul.f32 0.5, %v5417_v22  ;;  %v5419_v56 = vpop.eup %5418 }
 0xb13   : > { %v2887_v47 = vadd.f32 0.5, %v2886_v40  ;;  %v5421_v16 = vpop.eup %5420 }
 0xb14   : > { %v2891_v60 = vadd.f32 0.5, %v2890_v43  ;;  %v2895_v63 = vmul.f32 0.5, %v5421_v16 }
 0xb15   : > { %v2898_v14 = vmul.f32 %v5419_v56, %v2887_v47 }
 0xb16   : > { %v2897_v32 = vmul.f32 %v2891_v60, %v6801_v62  ;;  %v2896_v19 = vadd.f32 0.5, %v2895_v63  ;;  %v2910_v62 = vld [vmem:[%s2909_s15] sm:$0xff]  ;;  %s4249_s15 = sshll.u32 %s3785_s14, 5 }
 0xb17   : > { %s3789_s16 = scalar_lea.vmem [#allocation4], %s4249_s15 }
 0xb18   : > { %v6841_v31 = vadd.f32 %v2898_v14, %v2897_v32 }
 0xb1a   : > { %5422 = vtanh.f32 %v6841_v31 }
 0xb24   : > { %v5423_v23 = vpop.eup %5422 }
 0xb25   : > { %v2901_v34 = vmul.f32 %v5423_v23, %v2896_v19 }
 0xb27   : > { %4209 = vst [vmem:[%s5610_s10 + $0x8] sm:$0xff] %v2901_v34  ;;  %2979 = vmatmul.mubr.f32.vlgmr.msra.gmra.mrb[4].mxu0 %v2901_v34  ;;  %3050 = vmatmul.mubr.f32.vlgmr.msra.gmra.mrb[4].mxu1 %v2901_v34 }
 0xb28   : > { %4973 = vmatpush1.bf16.msra.mxu0 %v6491_v2  ;;  %5005 = vmatpush1.bf16.msra.mxu1 %v6519_v36 }
 0xb29   : > { %4975 = vmatprep.subr.bf16.mxu0 %v6493_v3  ;;  %5007 = vmatprep.subr.bf16.mxu1 %v6543_v7 }
 0xb2a   : > { %3154 = vmatprep.mubr.f32.mxu0 %v5540_v61  ;;  %3225 = vmatprep.mubr.f32.mxu1 %v5540_v61 }
 0xb2c   : > { %4977 = vmatpush1.bf16.msra.mxu0 %v6515_v33  ;;  %5009 = vmatpush1.bf16.msra.mxu1 %v6555_v24 }
 0xb2d   : > { %4979 = vmatprep.subr.bf16.mxu0 %v6531_v51  ;;  %5011 = vmatprep.subr.bf16.mxu1 %v6582_v0 }
 0xb30   : > { %4981 = vmatpush1.bf16.msra.mxu0 %v6561_v28  ;;  %5013 = vmatpush1.bf16.msra.mxu1 %v6597_v21 }
 0xb31   : > { %4983 = vmatprep.subr.bf16.mxu0 %v6574_v13  ;;  %5015 = vmatprep.subr.bf16.mxu1 %v6609_v27 }
 0xb34   : > { %4985 = vmatpush1.bf16.msra.mxu0 %v6603_v52  ;;  %5017 = vmatpush1.bf16.msra.mxu1 %v6636_v59 }
 0xb35   : > { %4987 = vmatprep.subr.bf16.mxu0 %v6618_v49  ;;  %5019 = vmatprep.subr.bf16.mxu1 %v6645_v44 }
 0xb38   : > { %4989 = vmatpush1.bf16.msra.mxu0 %v6639_v41  ;;  %5021 = vmatpush1.bf16.msra.mxu1 %v6672_v57 }
 0xb39   : > { %4991 = vmatprep.subr.bf16.mxu0 %v6654_v48  ;;  %5023 = vmatprep.subr.bf16.mxu1 %v6681_v15 }
 0xb3c   : > { %4993 = vmatpush1.bf16.msra.mxu0 %v6675_v6  ;;  %5025 = vmatpush1.bf16.msra.mxu1 %v6708_v1 }
 0xb3d   : > { %4995 = vmatprep.subr.bf16.mxu0 %v6690_v26  ;;  %5027 = vmatprep.subr.bf16.mxu1 %v6717_v20 }
 0xb40   : > { %4997 = vmatpush1.bf16.msra.mxu0 %v6711_v11  ;;  %5029 = vmatpush1.bf16.msra.mxu1 %v6738_v4 }
 0xb41   : > { %4999 = vmatprep.subr.bf16.mxu0 %v6726_v37  ;;  %5031 = vmatprep.subr.bf16.mxu1 %v6744_v17 }
 0xb44   : > { %5001 = vmatpush1.bf16.msra.mxu0 %v6741_v5  ;;  %5033 = vmatpush1.bf16.msra.mxu1 %v6754_v25 }
 0xb45   : > { %5035 = vmatprep.subr.bf16.mxu0 %v6478_v12  ;;  %5067 = vmatprep.subr.bf16.mxu1 %v6517_v29 }
 0xbfa   : > { %v2980_v53 = vpop.f32.mrb[4].mxu0  ;;  %v3051_v55 = vpop.f32.mrb[4].mxu1 }
 0xbfb   : > { %v3056_v30 = vadd.f32 %v2980_v53, %v2910_v62  ;;  %v2982_v58 = vpop.f32.mrb[5].mxu0  ;;  %v3053_v38 = vpop.f32.mrb[5].mxu1  ;;  %v3058_v8 = vadd.f32 %v3051_v55, %v2912_v42  ;;  %v3087_v62 = vld [vmem:[%s3085_s25 + $0x8] sm:$0xff] }
 0xbfc   : > { %v3057_v45 = vadd.f32 %v2982_v58, %v2911_v35  ;;  %v3059_v39 = vadd.f32 %v3053_v38, %v2913_v9  ;;  %v3088_v38 = vld [vmem:[%s3085_s25 + $0x10] sm:$0xff] }
 0xbfd   : > { %v3060_v46 = vmul.f32 0.5, %v3056_v30 }
 0xbfe   : > { %v3064_v50 = vmul.f32 0.5, %v3057_v45  ;;  %v3069_v54 = vmul.f32 0.5, %v3059_v39 }
 0xbff   : > { %5424 = vtanh.f32 %v3060_v46 }
 0xc00   : > { %5426 = vtanh.f32 %v3064_v50 }
 0xc01   : > { %5428 = vtanh.f32 %v3058_v8  ;;  %v3089_v8 = vld [vmem:[%s3085_s25 + $0x18] sm:$0xff] }
 0xc02   : > { %5430 = vtanh.f32 %v3069_v54 }
 0xc09   : > { %v5425_v10 = vpop.eup %5424 }
 0xc0a   : > { %v5427_v18 = vpop.eup %5426  ;;  %v3062_v22 = vmul.f32 0.5, %v5425_v10 }
 0xc0b   : > { %v3066_v40 = vmul.f32 0.5, %v5427_v18  ;;  %v5429_v47 = vpop.eup %5428 }
 0xc0c   : > { %v3063_v43 = vadd.f32 0.5, %v3062_v22  ;;  %v5431_v16 = vpop.eup %5430 }
 0xc0d   : > { %v3067_v56 = vadd.f32 0.5, %v3066_v40  ;;  %v3071_v63 = vmul.f32 0.5, %v5431_v16 }
 0xc0e   : > { %v3074_v60 = vmul.f32 %v5429_v47, %v3063_v43 }
 0xc0f   : > { %v3073_v14 = vmul.f32 %v3067_v56, %v6841_v31  ;;  %v3072_v19 = vadd.f32 0.5, %v3071_v63  ;;  %v3086_v31 = vld [vmem:[%s3085_s25] sm:$0xff] }
 0xc11   : > { %v6881_v32 = vadd.f32 %v3074_v60, %v3073_v14 }
 0xc13   : > { %5432 = vtanh.f32 %v6881_v32 }
 0xc1d   : > { %v5433_v23 = vpop.eup %5432 }
 0xc1e   : > { %v3077_v34 = vmul.f32 %v5433_v23, %v3072_v19 }
 0xc20   : > { %4212 = vst [vmem:[%s5610_s10 + $0x10] sm:$0xff] %v3077_v34  ;;  %3155 = vmatmul.mubr.f32.vlgmr.msra.gmra.mrb[6].mxu0 %v3077_v34  ;;  %3226 = vmatmul.mubr.f32.vlgmr.msra.gmra.mrb[6].mxu1 %v3077_v34 }
 0xc21   : > { %5037 = vmatpush1.bf16.msra.mxu0 %v6491_v2  ;;  %5069 = vmatpush1.bf16.msra.mxu1 %v6519_v36 }
 0xc22   : > { %5039 = vmatprep.subr.bf16.mxu0 %v6493_v3  ;;  %5071 = vmatprep.subr.bf16.mxu1 %v6543_v7 }
 0xc23   : > { %3330 = vmatprep.mubr.f32.mxu0 %v5540_v61  ;;  %3401 = vmatprep.mubr.f32.mxu1 %v5540_v61 }
 0xc25   : > { %5041 = vmatpush1.bf16.msra.mxu0 %v6515_v33  ;;  %5073 = vmatpush1.bf16.msra.mxu1 %v6555_v24 }
 0xc26   : > { %5043 = vmatprep.subr.bf16.mxu0 %v6531_v51  ;;  %5075 = vmatprep.subr.bf16.mxu1 %v6582_v0 }
 0xc29   : > { %5045 = vmatpush1.bf16.msra.mxu0 %v6561_v28  ;;  %5077 = vmatpush1.bf16.msra.mxu1 %v6597_v21 }
 0xc2a   : > { %5047 = vmatprep.subr.bf16.mxu0 %v6574_v13  ;;  %5079 = vmatprep.subr.bf16.mxu1 %v6609_v27 }
 0xc2d   : > { %5049 = vmatpush1.bf16.msra.mxu0 %v6603_v52  ;;  %5081 = vmatpush1.bf16.msra.mxu1 %v6636_v59 }
 0xc2e   : > { %5051 = vmatprep.subr.bf16.mxu0 %v6618_v49  ;;  %5083 = vmatprep.subr.bf16.mxu1 %v6645_v44 }
 0xc31   : > { %5053 = vmatpush1.bf16.msra.mxu0 %v6639_v41  ;;  %5085 = vmatpush1.bf16.msra.mxu1 %v6672_v57 }
 0xc32   : > { %5055 = vmatprep.subr.bf16.mxu0 %v6654_v48  ;;  %5087 = vmatprep.subr.bf16.mxu1 %v6681_v15 }
 0xc35   : > { %5057 = vmatpush1.bf16.msra.mxu0 %v6675_v6  ;;  %5089 = vmatpush1.bf16.msra.mxu1 %v6708_v1 }
 0xc36   : > { %5059 = vmatprep.subr.bf16.mxu0 %v6690_v26  ;;  %5091 = vmatprep.subr.bf16.mxu1 %v6717_v20 }
 0xc39   : > { %5061 = vmatpush1.bf16.msra.mxu0 %v6711_v11  ;;  %5093 = vmatpush1.bf16.msra.mxu1 %v6738_v4 }
 0xc3a   : > { %5063 = vmatprep.subr.bf16.mxu0 %v6726_v37  ;;  %5095 = vmatprep.subr.bf16.mxu1 %v6744_v17 }
 0xc3d   : > { %5065 = vmatpush1.bf16.msra.mxu0 %v6741_v5  ;;  %5097 = vmatpush1.bf16.msra.mxu1 %v6754_v25 }
 0xc3e   : > { %5099 = vmatprep.subr.bf16.mxu0 %v6478_v12  ;;  %5131 = vmatprep.subr.bf16.mxu1 %v6517_v29 }
 0xcf3   : > { %v3156_v35 = vpop.f32.mrb[6].mxu0  ;;  %v3227_v53 = vpop.f32.mrb[6].mxu1 }
 0xcf4   : > { %v3232_v55 = vadd.f32 %v3156_v35, %v3086_v31  ;;  %v3158_v30 = vpop.f32.mrb[7].mxu0  ;;  %v3229_v58 = vpop.f32.mrb[7].mxu1  ;;  %v3234_v50 = vadd.f32 %v3227_v53, %v3088_v38  ;;  %v3263_v31 = vld [vmem:[%s3261_s29 + $0x8] sm:$0xff] }
 0xcf5   : > { %v3233_v42 = vadd.f32 %v3158_v30, %v3087_v62  ;;  %v3235_v9 = vadd.f32 %v3229_v58, %v3089_v8  ;;  %v3264_v58 = vld [vmem:[%s3261_s29 + $0x10] sm:$0xff] }
 0xcf6   : > { %v3236_v45 = vmul.f32 0.5, %v3232_v55 }
 0xcf7   : > { %v3240_v46 = vmul.f32 0.5, %v3233_v42  ;;  %v3245_v39 = vmul.f32 0.5, %v3235_v9 }
 0xcf8   : > { %5434 = vtanh.f32 %v3236_v45 }
 0xcf9   : > { %5436 = vtanh.f32 %v3240_v46 }
 0xcfa   : > { %5438 = vtanh.f32 %v3234_v50  ;;  %v3265_v50 = vld [vmem:[%s3261_s29 + $0x18] sm:$0xff] }
 0xcfb   : > { %5440 = vtanh.f32 %v3245_v39 }
 0xd02   : > { %v5435_v54 = vpop.eup %5434 }
 0xd03   : > { %v5437_v10 = vpop.eup %5436  ;;  %v3238_v18 = vmul.f32 0.5, %v5435_v54 }
 0xd04   : > { %v3242_v22 = vmul.f32 0.5, %v5437_v10  ;;  %v5439_v43 = vpop.eup %5438 }
 0xd05   : > { %v3239_v40 = vadd.f32 0.5, %v3238_v18  ;;  %v5441_v16 = vpop.eup %5440 }
 0xd06   : > { %v3243_v47 = vadd.f32 0.5, %v3242_v22  ;;  %v3247_v63 = vmul.f32 0.5, %v5441_v16 }
 0xd07   : > { %v3250_v56 = vmul.f32 %v5439_v43, %v3239_v40 }
 0xd08   : > { %v3249_v60 = vmul.f32 %v3243_v47, %v6881_v32  ;;  %v3248_v19 = vadd.f32 0.5, %v3247_v63  ;;  %v3262_v32 = vld [vmem:[%s3261_s29] sm:$0xff] }
 0xd0a   : > { %v6921_v14 = vadd.f32 %v3250_v56, %v3249_v60 }
 0xd0c   : > { %5442 = vtanh.f32 %v6921_v14 }
 0xd16   : > { %v5443_v23 = vpop.eup %5442 }
 0xd17   : > { %v3253_v34 = vmul.f32 %v5443_v23, %v3248_v19 }
 0xd19   : > { %4215 = vst [vmem:[%s5610_s10 + $0x18] sm:$0xff] %v3253_v34  ;;  %3331 = vmatmul.mubr.f32.vlgmr.msra.gmra.mrb[8].mxu0 %v3253_v34  ;;  %3402 = vmatmul.mubr.f32.vlgmr.msra.gmra.mrb[8].mxu1 %v3253_v34 }
 0xd1a   : > { %5101 = vmatpush1.bf16.msra.mxu0 %v6491_v2  ;;  %5133 = vmatpush1.bf16.msra.mxu1 %v6519_v36 }
 0xd1b   : > { %5103 = vmatprep.subr.bf16.mxu0 %v6493_v3  ;;  %5135 = vmatprep.subr.bf16.mxu1 %v6543_v7 }
 0xd1c   : > { %3506 = vmatprep.mubr.f32.mxu0 %v5540_v61  ;;  %3577 = vmatprep.mubr.f32.mxu1 %v5540_v61 }
 0xd1e   : > { %5105 = vmatpush1.bf16.msra.mxu0 %v6515_v33  ;;  %5137 = vmatpush1.bf16.msra.mxu1 %v6555_v24 }
 0xd1f   : > { %5107 = vmatprep.subr.bf16.mxu0 %v6531_v51  ;;  %5139 = vmatprep.subr.bf16.mxu1 %v6582_v0 }
 0xd22   : > { %5109 = vmatpush1.bf16.msra.mxu0 %v6561_v28  ;;  %5141 = vmatpush1.bf16.msra.mxu1 %v6597_v21 }
 0xd23   : > { %5111 = vmatprep.subr.bf16.mxu0 %v6574_v13  ;;  %5143 = vmatprep.subr.bf16.mxu1 %v6609_v27 }
 0xd26   : > { %5113 = vmatpush1.bf16.msra.mxu0 %v6603_v52  ;;  %5145 = vmatpush1.bf16.msra.mxu1 %v6636_v59 }
 0xd27   : > { %5115 = vmatprep.subr.bf16.mxu0 %v6618_v49  ;;  %5147 = vmatprep.subr.bf16.mxu1 %v6645_v44 }
 0xd2a   : > { %5117 = vmatpush1.bf16.msra.mxu0 %v6639_v41  ;;  %5149 = vmatpush1.bf16.msra.mxu1 %v6672_v57 }
 0xd2b   : > { %5119 = vmatprep.subr.bf16.mxu0 %v6654_v48  ;;  %5151 = vmatprep.subr.bf16.mxu1 %v6681_v15 }
 0xd2e   : > { %5121 = vmatpush1.bf16.msra.mxu0 %v6675_v6  ;;  %5153 = vmatpush1.bf16.msra.mxu1 %v6708_v1 }
 0xd2f   : > { %5123 = vmatprep.subr.bf16.mxu0 %v6690_v26  ;;  %5155 = vmatprep.subr.bf16.mxu1 %v6717_v20 }
 0xd32   : > { %5125 = vmatpush1.bf16.msra.mxu0 %v6711_v11  ;;  %5157 = vmatpush1.bf16.msra.mxu1 %v6738_v4 }
 0xd33   : > { %5127 = vmatprep.subr.bf16.mxu0 %v6726_v37  ;;  %5159 = vmatprep.subr.bf16.mxu1 %v6744_v17 }
 0xd36   : > { %5129 = vmatpush1.bf16.msra.mxu0 %v6741_v5  ;;  %5161 = vmatpush1.bf16.msra.mxu1 %v6754_v25 }
 0xd37   : > { %5163 = vmatprep.subr.bf16.mxu0 %v6478_v12  ;;  %5195 = vmatprep.subr.bf16.mxu1 %v6517_v29 }
 0xdec   : > { %v3332_v62 = vpop.f32.mrb[8].mxu0  ;;  %v3403_v35 = vpop.f32.mrb[8].mxu1 }
 0xded   : > { %v3408_v53 = vadd.f32 %v3332_v62, %v3262_v32  ;;  %v3334_v55 = vpop.f32.mrb[9].mxu0  ;;  %v3405_v30 = vpop.f32.mrb[9].mxu1  ;;  %v3410_v46 = vadd.f32 %v3403_v35, %v3264_v58  ;;  %v3439_v32 = vld [vmem:[%s3437_s23 + $0x8] sm:$0xff] }
 0xdee   : > { %v3409_v38 = vadd.f32 %v3334_v55, %v3263_v31  ;;  %v3411_v8 = vadd.f32 %v3405_v30, %v3265_v50  ;;  %v3440_v30 = vld [vmem:[%s3437_s23 + $0x10] sm:$0xff] }
 0xdef   : > { %v3412_v42 = vmul.f32 0.5, %v3408_v53 }
 0xdf0   : > { %v3416_v45 = vmul.f32 0.5, %v3409_v38  ;;  %v3421_v9 = vmul.f32 0.5, %v3411_v8 }
 0xdf1   : > { %5444 = vtanh.f32 %v3412_v42 }
 0xdf2   : > { %5446 = vtanh.f32 %v3416_v45 }
 0xdf3   : > { %5448 = vtanh.f32 %v3410_v46 }
 0xdf4   : > { %5450 = vtanh.f32 %v3421_v9 }
 0xdfb   : > { %v5445_v39 = vpop.eup %5444 }
 0xdfc   : > { %v5447_v54 = vpop.eup %5446  ;;  %v3414_v10 = vmul.f32 0.5, %v5445_v39 }
 0xdfd   : > { %v3418_v18 = vmul.f32 0.5, %v5447_v54  ;;  %v5449_v40 = vpop.eup %5448 }
 0xdfe   : > { %v3415_v22 = vadd.f32 0.5, %v3414_v10  ;;  %v5451_v16 = vpop.eup %5450 }
 0xdff   : > { %v3419_v43 = vadd.f32 0.5, %v3418_v18  ;;  %v3423_v63 = vmul.f32 0.5, %v5451_v16 }
 0xe00   : > { %v3426_v47 = vmul.f32 %v5449_v40, %v3415_v22 }
 0xe01   : > { %v3425_v56 = vmul.f32 %v3419_v43, %v6921_v14  ;;  %v3424_v19 = vadd.f32 0.5, %v3423_v63  ;;  %v3438_v14 = vld [vmem:[%s3437_s23] sm:$0xff] }
 0xe03   : > { %v6961_v60 = vadd.f32 %v3426_v47, %v3425_v56 }
 0xe05   : > { %5452 = vtanh.f32 %v6961_v60 }
 0xe0f   : > { %v5453_v23 = vpop.eup %5452 }
 0xe10   : > { %v3429_v34 = vmul.f32 %v5453_v23, %v3424_v19 }
 0xe12   : > { %4218 = vst [vmem:[%s5610_s10 + $0x20] sm:$0xff] %v3429_v34  ;;  %3507 = vmatmul.mubr.f32.vlgmr.msra.gmra.mrb[10].mxu0 %v3429_v34  ;;  %3578 = vmatmul.mubr.f32.vlgmr.msra.gmra.mrb[10].mxu1 %v3429_v34 }
 0xe13   : > { %5165 = vmatpush1.bf16.msra.mxu0 %v6491_v2  ;;  %5197 = vmatpush1.bf16.msra.mxu1 %v6519_v36 }
 0xe14   : > { %5167 = vmatprep.subr.bf16.mxu0 %v6493_v3  ;;  %5199 = vmatprep.subr.bf16.mxu1 %v6543_v7 }
 0xe15   : > { %3682 = vmatprep.mubr.f32.mxu0 %v5540_v61  ;;  %3753 = vmatprep.mubr.f32.mxu1 %v5540_v61 }
 0xe17   : > { %5169 = vmatpush1.bf16.msra.mxu0 %v6515_v33  ;;  %5201 = vmatpush1.bf16.msra.mxu1 %v6555_v24 }
 0xe18   : > { %5171 = vmatprep.subr.bf16.mxu0 %v6531_v51  ;;  %5203 = vmatprep.subr.bf16.mxu1 %v6582_v0 }
 0xe1b   : > { %5173 = vmatpush1.bf16.msra.mxu0 %v6561_v28  ;;  %5205 = vmatpush1.bf16.msra.mxu1 %v6597_v21 }
 0xe1c   : > { %5175 = vmatprep.subr.bf16.mxu0 %v6574_v13  ;;  %5207 = vmatprep.subr.bf16.mxu1 %v6609_v27 }
 0xe1f   : > { %5177 = vmatpush1.bf16.msra.mxu0 %v6603_v52  ;;  %5209 = vmatpush1.bf16.msra.mxu1 %v6636_v59 }
 0xe20   : > { %5179 = vmatprep.subr.bf16.mxu0 %v6618_v49  ;;  %5211 = vmatprep.subr.bf16.mxu1 %v6645_v44 }
 0xe23   : > { %5181 = vmatpush1.bf16.msra.mxu0 %v6639_v41  ;;  %5213 = vmatpush1.bf16.msra.mxu1 %v6672_v57 }
 0xe24   : > { %5183 = vmatprep.subr.bf16.mxu0 %v6654_v48  ;;  %5215 = vmatprep.subr.bf16.mxu1 %v6681_v15 }
 0xe27   : > { %5185 = vmatpush1.bf16.msra.mxu0 %v6675_v6  ;;  %5217 = vmatpush1.bf16.msra.mxu1 %v6708_v1 }
 0xe28   : > { %5187 = vmatprep.subr.bf16.mxu0 %v6690_v26  ;;  %5219 = vmatprep.subr.bf16.mxu1 %v6717_v20 }
 0xe2b   : > { %5189 = vmatpush1.bf16.msra.mxu0 %v6711_v11  ;;  %5221 = vmatpush1.bf16.msra.mxu1 %v6738_v4 }
 0xe2c   : > { %5191 = vmatprep.subr.bf16.mxu0 %v6726_v37  ;;  %5223 = vmatprep.subr.bf16.mxu1 %v6744_v17 }
 0xe2f   : > { %5193 = vmatpush1.bf16.msra.mxu0 %v6741_v5  ;;  %5225 = vmatpush1.bf16.msra.mxu1 %v6754_v25 }
 0xe30   : > { %5227 = vmatprep.subr.bf16.mxu0 %v6478_v12  ;;  %5259 = vmatprep.subr.bf16.mxu1 %v6517_v29  ;;  %v3441_v12 = vld [vmem:[%s3437_s23 + $0x18] sm:$0xff] }
 0xee5   : > { %v3508_v31 = vpop.f32.mrb[10].mxu0  ;;  %v3579_v62 = vpop.f32.mrb[10].mxu1 }
 0xee6   : > { %v3584_v35 = vadd.f32 %v3508_v31, %v3438_v14  ;;  %v3510_v53 = vpop.f32.mrb[11].mxu0  ;;  %v3581_v55 = vpop.f32.mrb[11].mxu1  ;;  %v3586_v45 = vadd.f32 %v3579_v62, %v3440_v30  ;;  %v3792_v62 = vld [vmem:[%s3789_s16 + $0x10] sm:$0xff] }
 0xee7   : > { %v3585_v58 = vadd.f32 %v3510_v53, %v3439_v32  ;;  %v3587_v29 = vadd.f32 %v3581_v55, %v3441_v12 }
 0xee8   : > { %v3588_v38 = vmul.f32 0.5, %v3584_v35 }
 0xee9   : > { %v3592_v42 = vmul.f32 0.5, %v3585_v58  ;;  %v3597_v46 = vmul.f32 0.5, %v3587_v29  ;;  %v3793_v58 = vld [vmem:[%s3789_s16 + $0x18] sm:$0xff] }
 0xeea   : > { %5454 = vtanh.f32 %v3588_v38 }
 0xeeb   : > { %5456 = vtanh.f32 %v3592_v42 }
 0xeec   : > { %5458 = vtanh.f32 %v3586_v45 }
 0xeed   : > { %5460 = vtanh.f32 %v3597_v46 }
 0xef4   : > { %v5455_v50 = vpop.eup %5454 }
 0xef5   : > { %v5457_v8 = vpop.eup %5456  ;;  %v3590_v9 = vmul.f32 0.5, %v5455_v50 }
 0xef6   : > { %v3594_v39 = vmul.f32 0.5, %v5457_v8  ;;  %v5459_v10 = vpop.eup %5458 }
 0xef7   : > { %v3591_v54 = vadd.f32 0.5, %v3590_v9  ;;  %v5461_v47 = vpop.eup %5460 }
 0xef8   : > { %v3595_v18 = vadd.f32 0.5, %v3594_v39  ;;  %v3599_v56 = vmul.f32 0.5, %v5461_v47 }
 0xef9   : > { %v3602_v22 = vmul.f32 %v5459_v10, %v3591_v54 }
 0xefa   : > { %v3601_v40 = vmul.f32 %v3595_v18, %v6961_v60  ;;  %v3600_v16 = vadd.f32 0.5, %v3599_v56  ;;  %v3791_v60 = vld [vmem:[%s3789_s16 + $0x8] sm:$0xff] }
 0xefc   : > { %v7001_v43 = vadd.f32 %v3602_v22, %v3601_v40 }
 0xefe   : > { %5462 = vtanh.f32 %v7001_v43 }
 0xf08   : > { %v5463_v63 = vpop.eup %5462 }
 0xf09   : > { %v3605_v19 = vmul.f32 %v5463_v63, %v3600_v16 }
 0xf0b   : > { %4221 = vst [vmem:[%s5610_s10 + $0x28] sm:$0xff] %v3605_v19  ;;  %3683 = vmatmul.mubr.f32.vlgmr.msra.gmra.mrb[12].mxu0 %v3605_v19  ;;  %3754 = vmatmul.mubr.f32.vlgmr.msra.gmra.mrb[12].mxu1 %v3605_v19 }
 0xf0c   : > { %5229 = vmatpush1.bf16.msra.mxu0 %v6491_v2  ;;  %5261 = vmatpush1.bf16.msra.mxu1 %v6519_v36  ;;  %v3615_v2 = vld [vmem:[%s3613_s13 + $0x8] sm:$0xff] }
 0xf0d   : > { %5231 = vmatprep.subr.bf16.mxu0 %v6493_v3  ;;  %5263 = vmatprep.subr.bf16.mxu1 %v6543_v7 }
 0xf0e   : > { %3858 = vmatprep.mubr.f32.mxu0 %v5540_v61  ;;  %3929 = vmatprep.mubr.f32.mxu1 %v5540_v61  ;;  %v3614_v61 = vld [vmem:[%s3613_s13] sm:$0xff] }
 0xf10   : > { %5233 = vmatpush1.bf16.msra.mxu0 %v6515_v33  ;;  %5265 = vmatpush1.bf16.msra.mxu1 %v6555_v24  ;;  %v3616_v24 = vld [vmem:[%s3613_s13 + $0x10] sm:$0xff] }
 0xf11   : > { %5235 = vmatprep.subr.bf16.mxu0 %v6531_v51  ;;  %5267 = vmatprep.subr.bf16.mxu1 %v6582_v0 }
 0xf14   : > { %5237 = vmatpush1.bf16.msra.mxu0 %v6561_v28  ;;  %5269 = vmatpush1.bf16.msra.mxu1 %v6597_v21 }
 0xf15   : > { %5239 = vmatprep.subr.bf16.mxu0 %v6574_v13  ;;  %5271 = vmatprep.subr.bf16.mxu1 %v6609_v27 }
 0xf18   : > { %5241 = vmatpush1.bf16.msra.mxu0 %v6603_v52  ;;  %5273 = vmatpush1.bf16.msra.mxu1 %v6636_v59  ;;  %v3617_v52 = vld [vmem:[%s3613_s13 + $0x18] sm:$0xff] }
 0xf19   : > { %5243 = vmatprep.subr.bf16.mxu0 %v6618_v49  ;;  %5275 = vmatprep.subr.bf16.mxu1 %v6645_v44 }
 0xf1c   : > { %5245 = vmatpush1.bf16.msra.mxu0 %v6639_v41  ;;  %5277 = vmatpush1.bf16.msra.mxu1 %v6672_v57 }
 0xf1d   : > { %5247 = vmatprep.subr.bf16.mxu0 %v6654_v48  ;;  %5279 = vmatprep.subr.bf16.mxu1 %v6681_v15 }
 0xf20   : > { %5249 = vmatpush1.bf16.msra.mxu0 %v6675_v6  ;;  %5281 = vmatpush1.bf16.msra.mxu1 %v6708_v1 }
 0xf21   : > { %5251 = vmatprep.subr.bf16.mxu0 %v6690_v26  ;;  %5283 = vmatprep.subr.bf16.mxu1 %v6717_v20 }
 0xf24   : > { %5253 = vmatpush1.bf16.msra.mxu0 %v6711_v11  ;;  %5285 = vmatpush1.bf16.msra.mxu1 %v6738_v4 }
 0xf25   : > { %5255 = vmatprep.subr.bf16.mxu0 %v6726_v37  ;;  %5287 = vmatprep.subr.bf16.mxu1 %v6744_v17 }
 0xf28   : > { %5257 = vmatpush1.bf16.msra.mxu0 %v6741_v5  ;;  %5289 = vmatpush1.bf16.msra.mxu1 %v6754_v25  ;;  %v3790_v25 = vld [vmem:[%s3789_s16] sm:$0xff] }
 0xfde   : > { %v3684_v3 = vpop.f32.mrb[12].mxu0  ;;  %v3755_v33 = vpop.f32.mrb[12].mxu1 }
 0xfdf   : > { %v3760_v36 = vadd.f32 %v3684_v3, %v3614_v61  ;;  %v3686_v51 = vpop.f32.mrb[13].mxu0  ;;  %v3757_v7 = vpop.f32.mrb[13].mxu1  ;;  %v3762_v21 = vadd.f32 %v3755_v33, %v3616_v24 }
 0xfe0   : > { %v3761_v28 = vadd.f32 %v3686_v51, %v3615_v2  ;;  %v3763_v27 = vadd.f32 %v3757_v7, %v3617_v52 }
 0xfe1   : > { %v3764_v13 = vmul.f32 0.5, %v3760_v36 }
 0xfe2   : > { %v3768_v0 = vmul.f32 0.5, %v3761_v28  ;;  %v3773_v49 = vmul.f32 0.5, %v3763_v27 }
 0xfe3   : > { %5464 = vtanh.f32 %v3764_v13 }
 0xfe4   : > { %5466 = vtanh.f32 %v3768_v0 }
 0xfe5   : > { %5468 = vtanh.f32 %v3762_v21 }
 0xfe6   : > { %5470 = vtanh.f32 %v3773_v49 }
 0xfed   : > { %v5465_v59 = vpop.eup %5464 }
 0xfee   : > { %v5467_v41 = vpop.eup %5466  ;;  %v3766_v44 = vmul.f32 0.5, %v5465_v59 }
 0xfef   : > { %v3770_v48 = vmul.f32 0.5, %v5467_v41  ;;  %v5469_v6 = vpop.eup %5468 }
 0xff0   : > { %v3767_v57 = vadd.f32 0.5, %v3766_v44  ;;  %v5471_v20 = vpop.eup %5470 }
 0xff1   : > { %v3771_v15 = vadd.f32 0.5, %v3770_v48  ;;  %v3775_v37 = vmul.f32 0.5, %v5471_v20 }
 0xff2   : > { %v3778_v26 = vmul.f32 %v5469_v6, %v3767_v57 }
 0xff3   : > { %v3777_v1 = vmul.f32 %v3771_v15, %v7001_v43  ;;  %v3776_v4 = vadd.f32 0.5, %v3775_v37 }
 0xff5   : > { %v3779_v11 = vadd.f32 %v3778_v26, %v3777_v1 }
 0xff7   : > { %5472 = vtanh.f32 %v3779_v11 }
0x1001   : > { %v5473_v5 = vpop.eup %5472 }
0x1002   : > { %v3781_v17 = vmul.f32 %v5473_v5, %v3776_v4 }
0x1004   : > { %4224 = vst [vmem:[%s5610_s10 + $0x30] sm:$0xff] %v3781_v17  ;;  %3859 = vmatmul.mubr.f32.vlgmr.msra.gmra.mrb[14].mxu0 %v3781_v17  ;;  %3930 = vmatmul.mubr.f32.vlgmr.msra.gmra.mrb[14].mxu1 %v3781_v17 }
0x10d7   : > { %v3860_v23 = vpop.f32.mrb[14].mxu0  ;;  %v3931_v34 = vpop.f32.mrb[14].mxu1 }
0x10d8   : > { %v3936_v14 = vadd.f32 %v3860_v23, %v3790_v25  ;;  %v3862_v32 = vpop.f32.mrb[15].mxu0  ;;  %v3933_v31 = vpop.f32.mrb[15].mxu1  ;;  %v3938_v30 = vadd.f32 %v3931_v34, %v3792_v62 }
0x10d9   : > { %v3937_v35 = vadd.f32 %v3862_v32, %v3791_v60  ;;  %v3939_v38 = vadd.f32 %v3933_v31, %v3793_v58 }
0x10da   : > { %v3940_v53 = vmul.f32 0.5, %v3936_v14 }
0x10db   : > { %v3944_v55 = vmul.f32 0.5, %v3937_v35  ;;  %v3949_v42 = vmul.f32 0.5, %v3939_v38 }
0x10dc   : > { %5474 = vtanh.f32 %v3940_v53 }
0x10dd   : > { %5476 = vtanh.f32 %v3944_v55 }
0x10de   : > { %5478 = vtanh.f32 %v3938_v30 }
0x10df   : > { %5480 = vtanh.f32 %v3949_v42 }
0x10e6   : > { %v5475_v45 = vpop.eup %5474 }
0x10e7   : > { %v5477_v12 = vpop.eup %5476  ;;  %v3942_v29 = vmul.f32 0.5, %v5475_v45 }
0x10e8   : > { %v3946_v46 = vmul.f32 0.5, %v5477_v12  ;;  %v5479_v8 = vpop.eup %5478 }
0x10e9   : > { %v3943_v50 = vadd.f32 0.5, %v3942_v29  ;;  %v5481_v18 = vpop.eup %5480 }
0x10ea   : > { %v3947_v9 = vadd.f32 0.5, %v3946_v46  ;;  %v3951_v22 = vmul.f32 0.5, %v5481_v18 }
0x10eb   : > { %v3954_v39 = vmul.f32 %v5479_v8, %v3943_v50 }
0x10ec   : > { %v3953_v54 = vmul.f32 %v3947_v9, %v3779_v11  ;;  %v3952_v40 = vadd.f32 0.5, %v3951_v22 }
0x10ee   : > { %v3955_v10 = vadd.f32 %v3954_v39, %v3953_v54 }
0x10f0   : > { %5482 = vtanh.f32 %v3955_v10  ;;  %3961 = vst [vmem:[#allocation3] sm:$0xff] %v3955_v10  ;;  %3962 = vst [vmem:[#allocation5] sm:$0xff] %v3955_v10 }
0x10fa   : > { %v5483_v43 = vpop.eup %5482 }
0x10fb   : > { %v3957_v47 = vmul.f32 %v5483_v43, %v3952_v40 }
0x10fd   : > { %4227 = vst [vmem:[%s5610_s10 + $0x38] sm:$0xff] %v3957_v47  ;;  %3960 = vst [vmem:[#allocation2] sm:$0xff] %v3957_v47 }
0x10fe PF: > { %p7044_p5 = scmp.eq.s32.totalorder %s4114_s21, 1  ;;  %s5541_s17 = smov [#allocation5]  }
0x10ff   : > { %s3990_s24 = sshll.u32 %s5541_s17, 4  ;;  %s3991_s24 = int_to_ptr.vmem [resolvable:$true] %s3990_s24 }
0x1100   : > { %s5484_s25 = scalar_lea.vmem %s3991_s24, 128  ;;  %p5491_p9 = scmp.lt.s32.totalorder %s3991_s24, %s3991_s24 }
0x1101   : > { %p5485_p6 = scmp.ne.s32.totalorder %s3991_s24, %s5484_s25  ;;  %p5492_p10 = scmp.lt.s32.totalorder %s5484_s25, %s5484_s25 }
0x1103   : > { %p5486_p7 = pnand %p5485_p6, %p7044_p5  ;;  %p5493_p11 = por %p5492_p10, %p5491_p9 }
0x1105   : > { %p5487_p8 = pneg %p5486_p7 }
0x1107   : > { %p5494_p12 = pnand %p5493_p11, %p5487_p8 }
0x1109   : > { %5497 = shalt.err (!%p5494_p12)
}
0x110a   : > { %s5498_s21 = scalar_lea.hbm %s7084_s5, 128 }
0x110b   : > { %p5499_p13 = scmp.ne.s32.totalorder %s7084_s5, %s5498_s21  ;;  %p5504_p2 = scmp.lt.u32.totalorder %s5498_s21, %s7084_s5 }
0x110d   : > { %p5500_p0 = pnand %p5499_p13, %p7044_p5 }
0x110f   : > { %p5501_p1 = pneg %p5500_p0 }
0x1111   : > { %p5506_p3 = pnand %p5504_p2, %p5501_p1 }
0x1113   : > { %5509 = shalt.err (!%p5506_p3)
}
0x1114   : > { %5291 = dma.vmem_to_hbm [thread:$0]  (%p7044_p5), %s3991_s24, 128, %s7084_s5, [#allocation6]  }
0x1115   : > { %5523 = dma.done.wait (%p7044_p5), [#allocation6], 128  }
0x1116   : > { %5525 = vsyncadd (%p7044_p5), [#allocation6], 4294967168 }
0x1117 PF: > { %s17_s20 = sadd.s32 1, %s5536_s20   ;;  %s7086_s18 = smov %s5532_s19 }
0x1118   : > { %p14_p4 = scmp.ge.s32.totalorder %s17_s20, 4   ;;  %s7087_s19 = smov %s7089_s22 }
0x111a   :  { %16 = sbr.rel (!%p14_p4) target bundleno = 2 (0x2), region = 120 }
0x1121   :  { %4017 = vsyncpa [#allocation6], 1 }
0x1122   :  { %4019 = vsyncpa [#allocation6 + $0x1], 1 }

</bundles_post_ra>
